<compile_context>
chip_gen: v7x
topology: tpu7x:2x2x1
jax: 0.10.0
libtpu: 0.0.40
codegen_flags: <defaults>
</compile_context>

<pallas_src>
import functools

import jax
import jax.numpy as jnp
from jax.experimental import pallas as pl
from jax.experimental.pallas import tpu as pltpu


def _vq_kernel(z_ref, e_ref, esq_ref, zq_ref, idx_ref, cnt_ref, err_ref,
               *, tile_m, n_valid):
    i = pl.program_id(0)

    z = z_ref[...].astype(jnp.float32)            # (tile_m, e_dim)
    e = e_ref[...].astype(jnp.float32)            # (n_e, e_dim)
    e2 = esq_ref[...]                             # (1, n_e), precomputed |E|^2

    # argmin_j |z - E_j|^2 == argmin_j (|E_j|^2 - 2 z.E_j)  (|z|^2 dropped)
    d = e2 - 2.0 * jnp.dot(z, e.T, preferred_element_type=jnp.float32)  # (tm, n_e)

    idx = jnp.argmin(d, axis=1).astype(jnp.int32)                       # (tm,)

    # One-hot encodings and codebook gather via matmul (MXU-friendly).
    iota = jax.lax.broadcasted_iota(jnp.int32, d.shape, 1)              # (tm, n_e)
    onehot = (idx[:, None] == iota).astype(jnp.float32)                 # (tm, n_e)
    zq = jnp.dot(onehot, e, preferred_element_type=jnp.float32)         # (tm, e_dim)

    zq_ref[...] = zq.astype(zq_ref.dtype)
    idx_ref[...] = idx[None, None, :]             # lane-dense (1, 1, tile_m) row

    # Per-tile partial statistics; padded rows (if any) are masked out.
    diff_sq = (zq - z) ** 2
    if n_valid % tile_m == 0:
        cnt_ref[...] = jnp.sum(onehot, axis=0)[None, None, :]
        err_ref[...] = jnp.sum(diff_sq).reshape(1, 1, 1)
    else:
        row = jax.lax.broadcasted_iota(jnp.int32, (tile_m, 1), 0)
        mask = ((i * tile_m + row) < n_valid).astype(jnp.float32)       # (tm, 1)
        cnt_ref[...] = jnp.sum(onehot * mask, axis=0)[None, None, :]
        err_ref[...] = jnp.sum(diff_sq * mask).reshape(1, 1, 1)


def quantizer_forward(z, embedding_weight, beta, *, tile_m=512):
    """Pallas implementation of Quantizer.forward (forward values only).

    z: (..., e_dim) float32
    embedding_weight: (n_e, e_dim) float32
    Returns (loss, z_q, min_encoding_indices, perplexity).
    """
    n_e, e_dim = embedding_weight.shape
    assert z.shape[-1] == e_dim

    z_flat = z.reshape(-1, e_dim)
    n = z_flat.shape[0]
    grid_m = (n + tile_m - 1) // tile_m
    n_pad = grid_m * tile_m
    if n_pad != n:
        z_flat = jnp.pad(z_flat, ((0, n_pad - n), (0, 0)))

    # Hoisted |E|^2 (computed once per call, not once per grid step).
    e_sq = jnp.sum(embedding_weight.astype(jnp.float32) ** 2, axis=1)[None, :]

    out_shapes = (
        jax.ShapeDtypeStruct((n_pad, e_dim), z.dtype),        # z_q (flattened, padded)
        jax.ShapeDtypeStruct((grid_m, 1, tile_m), jnp.int32),  # indices (lane-dense rows)
        jax.ShapeDtypeStruct((grid_m, 1, n_e), jnp.float32),   # per-tile one-hot counts
        jax.ShapeDtypeStruct((grid_m, 1, 1), jnp.float32),     # per-tile sq-err partials
    )

    grid_spec = pltpu.PrefetchScalarGridSpec(
        num_scalar_prefetch=0,
        grid=(grid_m,),
        in_specs=[
            pl.BlockSpec((tile_m, e_dim), lambda i: (i, 0)),   # z tile
            pl.BlockSpec((n_e, e_dim), lambda i: (0, 0)),      # full codebook
            pl.BlockSpec((1, n_e), lambda i: (0, 0)),          # |E|^2 row
        ],
        out_specs=[
            pl.BlockSpec((tile_m, e_dim), lambda i: (i, 0)),   # z_q tile
            pl.BlockSpec((1, 1, tile_m), lambda i: (i, 0, 0)),  # idx row
            pl.BlockSpec((1, 1, n_e), lambda i: (i, 0, 0)),     # cnt partial
            pl.BlockSpec((1, 1, 1), lambda i: (i, 0, 0)),       # err partial
        ],
    )

    cost = pl.CostEstimate(
        flops=4 * n_pad * n_e * e_dim,                # two matmuls
        transcendentals=0,
        bytes_accessed=(2 * n_pad * e_dim + n_e * e_dim + n_e) * 4
                       + n_pad * 4 + grid_m * (n_e + 1) * 4,
    )

    kernel = functools.partial(_vq_kernel, tile_m=tile_m, n_valid=n)

    zq_pad, idx, cnt, err = pl.pallas_call(
        kernel,
        out_shape=out_shapes,
        grid_spec=grid_spec,
        compiler_params=pltpu.CompilerParams(
            dimension_semantics=("parallel",)),
        cost_estimate=cost,
    )(z_flat, embedding_weight, e_sq)

    # ---- cheap scalar glue (matches torch forward semantics numerically) ----
    z_q = zq_pad[:n].reshape(z.shape)
    min_encoding_indices = idx.reshape(-1)[:n]

    cnt_total = jnp.sum(cnt, axis=(0, 1))             # (n_e,)
    err_total = jnp.sum(err)

    num_el = jnp.float32(n * e_dim)
    mse = err_total / num_el
    # loss = mean((z_q - z.detach())**2) + beta * mean((z_q.detach() - z)**2)
    loss = mse + beta * mse
    e_mean = cnt_total / jnp.float32(n)
    perplexity = jnp.exp(-jnp.sum(e_mean * jnp.log(e_mean + 1e-10)))
    return loss, z_q, min_encoding_indices, perplexity


def reference_forward(z, embedding_weight, beta):
    """Pure-JAX reference mirroring the PyTorch module."""
    e_dim = embedding_weight.shape[1]
    n_e = embedding_weight.shape[0]
    zf = z.reshape(-1, e_dim)
    d = (jnp.sum(zf ** 2, axis=1, keepdims=True)
         + jnp.sum(embedding_weight ** 2, axis=1)
         - 2.0 * zf @ embedding_weight.T)
    idx = jnp.argmin(d, axis=1)
    z_q = embedding_weight[idx].reshape(z.shape)
    loss = jnp.mean((z_q - z) ** 2) + beta * jnp.mean((z_q - z) ** 2)
    one_hot = jax.nn.one_hot(idx, n_e, dtype=z.dtype)
    e_mean = jnp.mean(one_hot, axis=0)
    perplexity = jnp.exp(-jnp.sum(e_mean * jnp.log(e_mean + 1e-10)))
    return loss, z_q, idx.astype(jnp.int32), perplexity


if __name__ == "__main__":
    # Small shapes consistent with the module: n_e codes of dim e_dim,
    # input z of shape (batch, seq, e_dim).
    n_e, e_dim, beta = 64, 32, 0.25
    batch, seq = 2, 128  # N = 256 flattened rows (exercises the padding/mask path)

    key = jax.random.PRNGKey(0)
    k_emb, k_z = jax.random.split(key)

    # Deterministic "uniform_(-1/n_e, 1/n_e)" init of the embedding table.
    embedding_weight = jax.random.uniform(
        k_emb, (n_e, e_dim), dtype=jnp.float32,
        minval=-1.0 / n_e, maxval=1.0 / n_e)

    z = jax.random.normal(k_z, (batch, seq, e_dim), dtype=jnp.float32) * 0.05

    fwd = jax.jit(functools.partial(quantizer_forward, beta=beta))
    loss, z_q, idx, perplexity = fwd(z, embedding_weight)
    jax.block_until_ready((loss, z_q, idx, perplexity))

    # Correctness check against the pure-JAX reference.
    r_loss, r_zq, r_idx, r_ppl = reference_forward(z, embedding_weight, beta)
    assert jnp.allclose(loss, r_loss, atol=1e-5), (loss, r_loss)
    assert jnp.allclose(z_q, r_zq, atol=1e-5)
    assert jnp.array_equal(idx, r_idx)
    assert jnp.allclose(perplexity, r_ppl, atol=1e-4), (perplexity, r_ppl)

    print("KERNEL_OK")
</pallas_src>

<mosaic_0001>
module attributes {stable_mosaic.version = 11 : i64} {
  func.func @_vq_kernel(%arg0: i32, %arg1: memref<512x32xf32, #tpu.memory_space<vmem>>, %arg2: memref<64x32xf32, #tpu.memory_space<vmem>>, %arg3: memref<1x64xf32, #tpu.memory_space<vmem>>, %arg4: memref<512x32xf32, #tpu.memory_space<vmem>>, %arg5: memref<1x1x512xi32, #tpu.memory_space<vmem>>, %arg6: memref<1x1x64xf32, #tpu.memory_space<vmem>>, %arg7: memref<1x1x1xf32, #tpu.memory_space<vmem>>) attributes {dimension_semantics = [#tpu.dimension_semantics<parallel>], iteration_bounds = array<i64: 1>, scalar_prefetch = 0 : i64, scratch_operands = 0 : i64, tpu.core_type = #tpu.core_type<tc>, window_params = [{transform_indices = @transform_0, window_bounds = array<i64: 512, 32>}, {pipeline_mode = #tpu.pipeline_mode<synchronous>, transform_indices = @transform_1, window_bounds = array<i64: 64, 32>}, {pipeline_mode = #tpu.pipeline_mode<synchronous>, transform_indices = @transform_2, window_bounds = array<i64: 1, 64>}, {transform_indices = @transform_3, window_bounds = array<i64: 512, 32>}, {transform_indices = @transform_4, window_bounds = array<i64: 1, 1, 512>}, {transform_indices = @transform_5, window_bounds = array<i64: 1, 1, 64>}, {transform_indices = @transform_6, window_bounds = array<i64: 1, 1, 1>}]} {
    %c0 = arith.constant 0 : index
    %c0_0 = arith.constant 0 : index
    %0 = vector.load %arg1[%c0, %c0_0] : memref<512x32xf32, #tpu.memory_space<vmem>>, vector<512x32xf32>
    %c0_1 = arith.constant 0 : index
    %c0_2 = arith.constant 0 : index
    %1 = vector.load %arg2[%c0_1, %c0_2] : memref<64x32xf32, #tpu.memory_space<vmem>>, vector<64x32xf32>
    %c0_3 = arith.constant 0 : index
    %c0_4 = arith.constant 0 : index
    %2 = vector.load %arg3[%c0_3, %c0_4] : memref<1x64xf32, #tpu.memory_space<vmem>>, vector<1x64xf32>
    %3 = tpu.transpose %1, [1, 0] : vector<64x32xf32> -> vector<32x64xf32>
    %cst = arith.constant dense<0.000000e+00> : vector<512x64xf32>
    %4 = tpu.matmul %0, %3, %cst {dimension_numbers = #tpu.dot_dimension_numbers<[1], [0], [0], [1], [0, 0, 1, 1], [], []>} : vector<512x32xf32>, vector<32x64xf32>, vector<512x64xf32> -> vector<512x64xf32>
    %cst_5 = arith.constant 2.000000e+00 : f32
    %5 = vector.broadcast %cst_5 : f32 to vector<512x64xf32>
    %6 = arith.mulf %5, %4 : vector<512x64xf32>
    %7 = vector.broadcast %2 : vector<1x64xf32> to vector<512x64xf32>
    %8 = arith.subf %7, %6 : vector<512x64xf32>
    %9 = tpu.reduce_index %8 {axis = 1 : i32, kind = #tpu.reduction_kind<arg_min>} : vector<512x64xf32> -> vector<512xi32>
    %10 = tpu.iota {dimensions = array<i32: 1>} : vector<512x64xi32>
    %11 = vector.shape_cast %9 : vector<512xi32> to vector<512x1xi32>
    %12 = vector.broadcast %11 : vector<512x1xi32> to vector<512x64xi32>
    %13 = arith.cmpi eq, %12, %10 : vector<512x64xi32>
    %14 = arith.extui %13 : vector<512x64xi1> to vector<512x64xi32>
    %15 = arith.sitofp %14 : vector<512x64xi32> to vector<512x64xf32>
    %cst_6 = arith.constant dense<0.000000e+00> : vector<512x32xf32>
    %16 = tpu.matmul %15, %1, %cst_6 {dimension_numbers = #tpu.dot_dimension_numbers<[1], [0], [0], [1], [0, 0, 1, 1], [], []>} : vector<512x64xf32>, vector<64x32xf32>, vector<512x32xf32> -> vector<512x32xf32>
    %c0_7 = arith.constant 0 : index
    %c0_8 = arith.constant 0 : index
    %17 = vector.load %arg4[%c0_7, %c0_8] : memref<512x32xf32, #tpu.memory_space<vmem>>, vector<512x32xf32>
    tpu.vector_store %arg4[%c0_7, %c0_8], %16 {strides = array<i32>} : memref<512x32xf32, #tpu.memory_space<vmem>>, vector<512x32xf32>,
    %18 = vector.shape_cast %9 : vector<512xi32> to vector<1x1x512xi32>
    %c0_9 = arith.constant 0 : index
    %c0_10 = arith.constant 0 : index
    %c0_11 = arith.constant 0 : index
    %19 = vector.load %arg5[%c0_9, %c0_10, %c0_11] : memref<1x1x512xi32, #tpu.memory_space<vmem>>, vector<1x1x512xi32>
    tpu.vector_store %arg5[%c0_9, %c0_10, %c0_11], %18 {strides = array<i32>} : memref<1x1x512xi32, #tpu.memory_space<vmem>>, vector<1x1x512xi32>,
    %20 = arith.subf %16, %0 : vector<512x32xf32>
    %21 = arith.mulf %20, %20 : vector<512x32xf32>
    %22 = tpu.iota {dimensions = array<i32: 0>} : vector<512x1xi32>
    %c512_i32 = arith.constant 512 : i32
    %23 = arith.muli %arg0, %c512_i32 : i32
    %24 = vector.broadcast %23 : i32 to vector<512x1xi32>
    %25 = arith.addi %24, %22 : vector<512x1xi32>
    %c256_i32 = arith.constant 256 : i32
    %26 = vector.broadcast %c256_i32 : i32 to vector<512x1xi32>
    %27 = arith.cmpi slt, %25, %26 : vector<512x1xi32>
    %28 = arith.extui %27 : vector<512x1xi1> to vector<512x1xi32>
    %29 = arith.sitofp %28 : vector<512x1xi32> to vector<512x1xf32>
    %30 = vector.broadcast %29 : vector<512x1xf32> to vector<512x64xf32>
    %31 = arith.mulf %15, %30 : vector<512x64xf32>
    %cst_12 = arith.constant dense<0.000000e+00> : vector<64xf32>
    %32 = vector.multi_reduction <add>, %31, %cst_12 [0] : vector<512x64xf32> to vector<64xf32>
    %33 = vector.shape_cast %32 : vector<64xf32> to vector<1x1x64xf32>
    %c0_13 = arith.constant 0 : index
    %c0_14 = arith.constant 0 : index
    %c0_15 = arith.constant 0 : index
    %34 = vector.load %arg6[%c0_13, %c0_14, %c0_15] : memref<1x1x64xf32, #tpu.memory_space<vmem>>, vector<1x1x64xf32>
    tpu.vector_store %arg6[%c0_13, %c0_14, %c0_15], %33 {strides = array<i32>} : memref<1x1x64xf32, #tpu.memory_space<vmem>>, vector<1x1x64xf32>,
    %35 = vector.broadcast %29 : vector<512x1xf32> to vector<512x32xf32>
    %36 = arith.mulf %21, %35 : vector<512x32xf32>
    %37 = vector.shape_cast %36 : vector<512x32xf32> to vector<1x512x32xf32>
    %cst_16 = arith.constant dense<0.000000e+00> : vector<1xf32>
    %38 = vector.multi_reduction <add>, %37, %cst_16 [1, 2] : vector<1x512x32xf32> to vector<1xf32>
    %39 = vector.shape_cast %38 : vector<1xf32> to vector<1x1x1xf32>
    %40 = vector.extract %39[0, 0, 0] : f32 from vector<1x1x1xf32>
    %41 = vector.broadcast %40 : f32 to vector<1x1x1xf32>
    %c0_17 = arith.constant 0 : index
    %c0_18 = arith.constant 0 : index
    %c0_19 = arith.constant 0 : index
    %42 = vector.load %arg7[%c0_17, %c0_18, %c0_19] : memref<1x1x1xf32, #tpu.memory_space<vmem>>, vector<1x1x1xf32>
    tpu.vector_store %arg7[%c0_17, %c0_18, %c0_19], %41 {strides = array<i32>} : memref<1x1x1xf32, #tpu.memory_space<vmem>>, vector<1x1x1xf32>,
    return
  }
  func.func @transform_0(%arg0: i32) -> (i32, i32) {
    %c0_i32 = arith.constant 0 : i32
    %c0_i32_0 = arith.constant 0 : i32
    return %arg0, %c0_i32 : i32, i32
  }
  func.func @transform_1(%arg0: i32) -> (i32, i32) {
    %c0_i32 = arith.constant 0 : i32
    %c0_i32_0 = arith.constant 0 : i32
    %c0_i32_1 = arith.constant 0 : i32
    return %c0_i32, %c0_i32_0 : i32, i32
  }
  func.func @transform_2(%arg0: i32) -> (i32, i32) {
    %c0_i32 = arith.constant 0 : i32
    %c0_i32_0 = arith.constant 0 : i32
    %c0_i32_1 = arith.constant 0 : i32
    return %c0_i32, %c0_i32_0 : i32, i32
  }
  func.func @transform_3(%arg0: i32) -> (i32, i32) {
    %c0_i32 = arith.constant 0 : i32
    %c0_i32_0 = arith.constant 0 : i32
    return %arg0, %c0_i32 : i32, i32
  }
  func.func @transform_4(%arg0: i32) -> (i32, i32, i32) {
    %c0_i32 = arith.constant 0 : i32
    %c0_i32_0 = arith.constant 0 : i32
    %c0_i32_1 = arith.constant 0 : i32
    return %arg0, %c0_i32, %c0_i32_0 : i32, i32, i32
  }
  func.func @transform_5(%arg0: i32) -> (i32, i32, i32) {
    %c0_i32 = arith.constant 0 : i32
    %c0_i32_0 = arith.constant 0 : i32
    %c0_i32_1 = arith.constant 0 : i32
    return %arg0, %c0_i32, %c0_i32_0 : i32, i32, i32
  }
  func.func @transform_6(%arg0: i32) -> (i32, i32, i32) {
    %c0_i32 = arith.constant 0 : i32
    %c0_i32_0 = arith.constant 0 : i32
    %c0_i32_1 = arith.constant 0 : i32
    return %arg0, %c0_i32, %c0_i32_0 : i32, i32, i32
  }
}

</mosaic_0001>

<bundles_post_ra>
// kernel: quantizer_forward.1
= control target key start
LH: loop header
LB: loop body
LE: loop exit
PB: predicated region body
PF: predicated region fallthrough
CT: control target
= control target key end

     0   :  { %vm92_vm0 = vcmask 261120   ;;  %s12607_s0 = inlined_call_operand.vmem [shape: f32[512,32], index: 0, kind: input, shape index: {}]   ;;  %s12608_s1 = inlined_call_operand.vmem [shape: f32[64,32], index: 1, kind: input, shape index: {}]   ;;  %s12609_s2 = inlined_call_operand.vmem [shape: f32[1,64], index: 2, kind: input, shape index: {}]   ;;  %s12610_s3 = inlined_call_operand.vmem [shape: f32[512,32], index: 3, kind: output, shape index: {0}]   ;;  %s12611_s4 = inlined_call_operand.vmem [shape: s32[1,1,512], index: 4, kind: output, shape index: {1}]   ;;  %s12612_s5 = inlined_call_operand.vmem [shape: f32[1,1,64], index: 5, kind: output, shape index: {2}]   ;;  %s12613_s6 = inlined_call_operand.hbm [shape: f32[1,1,1], index: 6, kind: output, shape index: {3}]  }
   0x1   :  { %v83_v0 = vld [vmem:[%s12608_s1] sm:$0xff]  ;;  %v84_v1 = vld [vmem:[%s12608_s1 + $0x8] sm:$0xff]  ;;  %v85_v2 = vld [vmem:[%s12608_s1 + $0x10] sm:$0xff] }
   0x2   :  { %v9055_v3 = vpack.c.bf16 %v84_v1, %v83_v0  ;;  %vm9241_vm1 = vmpackc.low %vm92_vm0, %vm92_vm0  ;;  %v86_v5 = vld [vmem:[%s12608_s1 + $0x18] sm:$0xff]  ;;  %v19_v7 = vld [vmem:[%s12607_s0] sm:$0xff] }
   0x3   :  { %v9061_v6 = vpack.c.bf16 %v86_v5, %v85_v2  ;;  %8847 = vmatprep.mubr.msk.f32.mxu0 %vm92_vm0, %v19_v7  ;;  %v87_v8 = vld [vmem:[%s12608_s1 + $0x20] sm:$0xff]  ;;  %v88_v9 = vld [vmem:[%s12608_s1 + $0x28] sm:$0xff]  ;;  %v89_v11 = vld [vmem:[%s12608_s1 + $0x30] sm:$0xff] }
   0x4   :  { %9057 = vmatprep.subr.msk.bf16.mxu0 %vm9241_vm1, %v9055_v3  ;;  %9080 = vmatprep.subr.bf16.mxu1 %v9055_v3  ;;  %v9067_v10 = vpack.c.bf16 %v88_v9, %v87_v8  ;;  %v90_v12 = vld [vmem:[%s12608_s1 + $0x38] sm:$0xff] }
   0x5   :  { %9060 = vmatpush3.bf16.xpose.msk.msra.mxu0 %vm9241_vm1, %v9055_v3  ;;  %9082 = vmatpush3.bf16.msra.mxu1 %v9055_v3  ;;  %v9073_v13 = vpack.c.bf16 %v90_v12, %v89_v11 }
   0x6   :  { %9063 = vmatprep.subr.msk.bf16.mxu0 %vm9241_vm1, %v9061_v6  ;;  %9084 = vmatprep.subr.bf16.mxu1 %v9061_v6 }
   0x9   :  { %9086 = vmatpush3.bf16.msra.mxu1 %v9061_v6 }
   0xa   :  { %9088 = vmatprep.subr.bf16.mxu1 %v9067_v10 }
   0xd   :  { %9066 = vmatpush3.bf16.xpose.msk.msra.mxu0 %vm9241_vm1, %v9061_v6  ;;  %9090 = vmatpush3.bf16.msra.mxu1 %v9067_v10 }
   0xe   :  { %9069 = vmatprep.subr.msk.bf16.mxu0 %vm9241_vm1, %v9067_v10  ;;  %9092 = vmatprep.subr.bf16.mxu1 %v9073_v13 }
  0x11   :  { %9094 = vmatpush3.bf16.msra.mxu1 %v9073_v13 }
  0x15   :  { %9072 = vmatpush3.bf16.xpose.msk.msra.mxu0 %vm9241_vm1, %v9067_v10 }
  0x16   :  { %9075 = vmatprep.subr.msk.bf16.mxu0 %vm9241_vm1, %v9073_v13 }
  0x17   :  { %12 = vsyncpa [#allocation3], 0  ;;  %v20_v14 = vld [vmem:[%s12607_s0 + $0x8] sm:$0xff]  ;;  %v21_v15 = vld [vmem:[%s12607_s0 + $0x10] sm:$0xff]  ;;  %vm828_vm2 = vcmask 523264   ;;  %s9194_s8 = smov [#allocation2]  }
  0x18   :  { %v22_v16 = vld [vmem:[%s12607_s0 + $0x18] sm:$0xff]  ;;  %v23_v17 = vld [vmem:[%s12607_s0 + $0x20] sm:$0xff]  ;;  %v24_v18 = vld [vmem:[%s12607_s0 + $0x28] sm:$0xff]  ;;  %s8472_s9 = sshll.u32 %s9194_s8, 4  ;;  %s8473_s9 = int_to_ptr.vmem [resolvable:$true] %s8472_s9 }
  0x19   :  { %v25_v19 = vld [vmem:[%s12607_s0 + $0x30] sm:$0xff]  ;;  %v26_v20 = vld [vmem:[%s12607_s0 + $0x38] sm:$0xff]  ;;  %v27_v21 = vld [vmem:[%s12607_s0 + $0x40] sm:$0xff]  ;;  %s9167_s11 = scalar_lea.vmem %s8473_s9, 16  ;;  %s9171_s12 = scalar_lea.vmem %s8473_s9, 32 }
  0x1a   :  { %v28_v22 = vld [vmem:[%s12607_s0 + $0x48] sm:$0xff]  ;;  %v29_v23 = vld [vmem:[%s12607_s0 + $0x50] sm:$0xff]  ;;  %v30_v24 = vld [vmem:[%s12607_s0 + $0x58] sm:$0xff]  ;;  %p9168_p0 = scmp.ne.s32.totalorder %s8473_s9, %s9167_s11  ;;  %p9172_p1 = scmp.lt.s32.totalorder %s8473_s9, %s8473_s9 }
  0x1b   :  { %v31_v25 = vld [vmem:[%s12607_s0 + $0x60] sm:$0xff]  ;;  %v32_v26 = vld [vmem:[%s12607_s0 + $0x68] sm:$0xff]  ;;  %v33_v27 = vld [vmem:[%s12607_s0 + $0x70] sm:$0xff]  ;;  %p9173_p2 = scmp.lt.s32.totalorder %s9171_s12, %s9167_s11 }
  0x1c   :  { %v34_v28 = vld [vmem:[%s12607_s0 + $0x78] sm:$0xff]  ;;  %v35_v29 = vld [vmem:[%s12607_s0 + $0x80] sm:$0xff]  ;;  %v36_v30 = vld [vmem:[%s12607_s0 + $0x88] sm:$0xff] }
  0x1d   :  { %9078 = vmatpush3.bf16.xpose.msk.msra.mxu0 %vm9241_vm1, %v9073_v13  ;;  %v37_v31 = vld [vmem:[%s12607_s0 + $0x90] sm:$0xff]  ;;  %v38_v32 = vld [vmem:[%s12607_s0 + $0x98] sm:$0xff]  ;;  %v39_v33 = vld [vmem:[%s12607_s0 + $0xa0] sm:$0xff]  ;;  %p9174_p3 = por %p9173_p2, %p9172_p1 }
  0x1e   :  { %v40_v34 = vld [vmem:[%s12607_s0 + $0xa8] sm:$0xff]  ;;  %v41_v35 = vld [vmem:[%s12607_s0 + $0xb0] sm:$0xff]  ;;  %v42_v36 = vld [vmem:[%s12607_s0 + $0xb8] sm:$0xff] }
  0x1f   :  { %v43_v37 = vld [vmem:[%s12607_s0 + $0xc0] sm:$0xff]  ;;  %v44_v38 = vld [vmem:[%s12607_s0 + $0xc8] sm:$0xff]  ;;  %v45_v39 = vld [vmem:[%s12607_s0 + $0xd0] sm:$0xff]  ;;  %p9175_p4 = pnand %p9174_p3, %p9168_p0 }
  0x20   :  { %v46_v40 = vld [vmem:[%s12607_s0 + $0xd8] sm:$0xff]  ;;  %v47_v41 = vld [vmem:[%s12607_s0 + $0xe0] sm:$0xff]  ;;  %v48_v42 = vld [vmem:[%s12607_s0 + $0xe8] sm:$0xff] }
  0x21   :  { %v49_v43 = vld [vmem:[%s12607_s0 + $0xf0] sm:$0xff]  ;;  %v50_v44 = vld [vmem:[%s12607_s0 + $0xf8] sm:$0xff]  ;;  %v51_v45 = vld [vmem:[%s12607_s0 + $0x100] sm:$0xff] }
  0x22   :  { %v52_v46 = vld [vmem:[%s12607_s0 + $0x108] sm:$0xff]  ;;  %v53_v47 = vld [vmem:[%s12607_s0 + $0x110] sm:$0xff]  ;;  %v54_v48 = vld [vmem:[%s12607_s0 + $0x118] sm:$0xff] }
  0x23   :  { %v55_v49 = vld [vmem:[%s12607_s0 + $0x120] sm:$0xff]  ;;  %v56_v50 = vld [vmem:[%s12607_s0 + $0x128] sm:$0xff]  ;;  %v57_v51 = vld [vmem:[%s12607_s0 + $0x130] sm:$0xff] }
  0x24   :  { %8848 = vmatmul.mubr.msk.f32.vlgmr.msra.gmra.mrb[0].mxu0 %vm92_vm0, %v20_v14  ;;  %v58_v52 = vld [vmem:[%s12607_s0 + $0x138] sm:$0xff]  ;;  %v59_v53 = vld [vmem:[%s12607_s0 + $0x140] sm:$0xff]  ;;  %v60_v54 = vld [vmem:[%s12607_s0 + $0x148] sm:$0xff] }
  0x25   :  { %8850 = vmatprep.mubr.msk.f32.mxu0 %vm92_vm0, %v21_v15  ;;  %v61_v55 = vld [vmem:[%s12607_s0 + $0x150] sm:$0xff]  ;;  %v62_v56 = vld [vmem:[%s12607_s0 + $0x158] sm:$0xff]  ;;  %v63_v57 = vld [vmem:[%s12607_s0 + $0x160] sm:$0xff] }
  0x26   :  { %v64_v58 = vld [vmem:[%s12607_s0 + $0x168] sm:$0xff]  ;;  %v65_v59 = vld [vmem:[%s12607_s0 + $0x170] sm:$0xff]  ;;  %v66_v60 = vld [vmem:[%s12607_s0 + $0x178] sm:$0xff] }
  0x27   :  { %v67_v61 = vld [vmem:[%s12607_s0 + $0x180] sm:$0xff]  ;;  %v68_v62 = vld [vmem:[%s12607_s0 + $0x188] sm:$0xff]  ;;  %v69_v63 = vld [vmem:[%s12607_s0 + $0x190] sm:$0xff] }
  0x28   :  { %8851 = vmatmul.mubr.msk.f32.gmra.mrb[2].mxu0 %vm92_vm0, %v22_v16  ;;  %v70_v0 = vld [vmem:[%s12607_s0 + $0x198] sm:$0xff]  ;;  %v71_v1 = vld [vmem:[%s12607_s0 + $0x1a0] sm:$0xff]  ;;  %v72_v2 = vld [vmem:[%s12607_s0 + $0x1a8] sm:$0xff] }
  0x29   :  { %8853 = vmatprep.mubr.msk.f32.mxu0 %vm92_vm0, %v23_v17  ;;  %v73_v3 = vld [vmem:[%s12607_s0 + $0x1b0] sm:$0xff]  ;;  %v74_v4 = vld [vmem:[%s12607_s0 + $0x1b8] sm:$0xff]  ;;  %v75_v5 = vld [vmem:[%s12607_s0 + $0x1c0] sm:$0xff] }
  0x2a   :  { %v76_v6 = vld [vmem:[%s12607_s0 + $0x1c8] sm:$0xff]  ;;  %v77_v7 = vld [vmem:[%s12607_s0 + $0x1d0] sm:$0xff]  ;;  %v78_v8 = vld [vmem:[%s12607_s0 + $0x1d8] sm:$0xff] }
  0x2b   :  { %v79_v9 = vld [vmem:[%s12607_s0 + $0x1e0] sm:$0xff]  ;;  %v80_v10 = vld [vmem:[%s12607_s0 + $0x1e8] sm:$0xff]  ;;  %v81_v11 = vld [vmem:[%s12607_s0 + $0x1f0] sm:$0xff] }
  0x2c   :  { %8854 = vmatmul.mubr.msk.f32.gmra.mrb[4].mxu0 %vm92_vm0, %v24_v18  ;;  %v82_v12 = vld [vmem:[%s12607_s0 + $0x1f8] sm:$0xff]  ;;  %v9535_v15 = vld [vmem:[%s12609_s2] ss:$0 sm:$0xff] }
  0x2d   :  { %8856 = vmatprep.mubr.msk.f32.mxu0 %vm92_vm0, %v25_v19 }
  0x30   :  { %8857 = vmatmul.mubr.msk.f32.gmra.mrb[6].mxu0 %vm92_vm0, %v26_v20 }
  0x31   :  { %8859 = vmatprep.mubr.msk.f32.mxu0 %vm92_vm0, %v27_v21 }
  0x34   :  { %8860 = vmatmul.mubr.msk.f32.gmra.mrb[8].mxu0 %vm92_vm0, %v28_v22 }
  0x35   :  { %8862 = vmatprep.mubr.msk.f32.mxu0 %vm92_vm0, %v29_v23 }
  0x38   :  { %8863 = vmatmul.mubr.msk.f32.gmra.mrb[10].mxu0 %vm92_vm0, %v30_v24 }
  0x39   :  { %8865 = vmatprep.mubr.msk.f32.mxu0 %vm92_vm0, %v31_v25 }
  0x3c   :  { %8866 = vmatmul.mubr.msk.f32.gmra.mrb[12].mxu0 %vm92_vm0, %v32_v26 }
  0x3d   :  { %8868 = vmatprep.mubr.msk.f32.mxu0 %vm92_vm0, %v33_v27 }
  0x40   :  { %8869 = vmatmul.mubr.msk.f32.gmra.mrb[14].mxu0 %vm92_vm0, %v34_v28 }
  0x41   :  { %8871 = vmatprep.mubr.msk.f32.mxu0 %vm92_vm0, %v35_v29 }
  0x44   :  { %8872 = vmatmul.mubr.msk.f32.gmra.mrb[16].mxu0 %vm92_vm0, %v36_v30 }
  0x45   :  { %8874 = vmatprep.mubr.msk.f32.mxu0 %vm92_vm0, %v37_v31 }
  0x48   :  { %8875 = vmatmul.mubr.msk.f32.gmra.mrb[18].mxu0 %vm92_vm0, %v38_v32 }
  0x49   :  { %8877 = vmatprep.mubr.msk.f32.mxu0 %vm92_vm0, %v39_v33 }
  0x4c   :  { %8878 = vmatmul.mubr.msk.f32.gmra.mrb[20].mxu0 %vm92_vm0, %v40_v34 }
  0x4d   :  { %8880 = vmatprep.mubr.msk.f32.mxu0 %vm92_vm0, %v41_v35 }
  0x50   :  { %8881 = vmatmul.mubr.msk.f32.gmra.mrb[22].mxu0 %vm92_vm0, %v42_v36 }
  0x51   :  { %8883 = vmatprep.mubr.msk.f32.mxu0 %vm92_vm0, %v43_v37 }
  0x54   :  { %8884 = vmatmul.mubr.msk.f32.gmra.mrb[24].mxu0 %vm92_vm0, %v44_v38 }
  0x55   :  { %8886 = vmatprep.mubr.msk.f32.mxu0 %vm92_vm0, %v45_v39 }
  0x58   :  { %8887 = vmatmul.mubr.msk.f32.gmra.mrb[26].mxu0 %vm92_vm0, %v46_v40 }
  0x59   :  { %8889 = vmatprep.mubr.msk.f32.mxu0 %vm92_vm0, %v47_v41 }
  0x5c   :  { %8890 = vmatmul.mubr.msk.f32.gmra.mrb[28].mxu0 %vm92_vm0, %v48_v42 }
  0x5d   :  { %8892 = vmatprep.mubr.msk.f32.mxu0 %vm92_vm0, %v49_v43 }
  0x60   :  { %8893 = vmatmul.mubr.msk.f32.gmra.mrb[30].mxu0 %vm92_vm0, %v50_v44 }
  0x61   :  { %8895 = vmatprep.mubr.msk.f32.mxu0 %vm92_vm0, %v51_v45 }
  0x64   :  { %8896 = vmatmul.mubr.msk.f32.gmra.mrb[32].mxu0 %vm92_vm0, %v52_v46 }
  0x65   :  { %8898 = vmatprep.mubr.msk.f32.mxu0 %vm92_vm0, %v53_v47 }
  0x68   :  { %8899 = vmatmul.mubr.msk.f32.gmra.mrb[34].mxu0 %vm92_vm0, %v54_v48 }
  0x69   :  { %8901 = vmatprep.mubr.msk.f32.mxu0 %vm92_vm0, %v55_v49 }
  0x6c   :  { %8902 = vmatmul.mubr.msk.f32.gmra.mrb[36].mxu0 %vm92_vm0, %v56_v50 }
  0x6d   :  { %8904 = vmatprep.mubr.msk.f32.mxu0 %vm92_vm0, %v57_v51 }
  0x70   :  { %8905 = vmatmul.mubr.msk.f32.gmra.mrb[38].mxu0 %vm92_vm0, %v58_v52 }
  0x71   :  { %8907 = vmatprep.mubr.msk.f32.mxu0 %vm92_vm0, %v59_v53 }
  0x74   :  { %8908 = vmatmul.mubr.msk.f32.gmra.mrb[40].mxu0 %vm92_vm0, %v60_v54 }
  0x75   :  { %8910 = vmatprep.mubr.msk.f32.mxu0 %vm92_vm0, %v61_v55 }
  0x78   :  { %8911 = vmatmul.mubr.msk.f32.gmra.mrb[42].mxu0 %vm92_vm0, %v62_v56 }
  0x79   :  { %8913 = vmatprep.mubr.msk.f32.mxu0 %vm92_vm0, %v63_v57 }
  0x7c   :  { %8914 = vmatmul.mubr.msk.f32.gmra.mrb[44].mxu0 %vm92_vm0, %v64_v58 }
  0x7d   :  { %8916 = vmatprep.mubr.msk.f32.mxu0 %vm92_vm0, %v65_v59 }
  0x80   :  { %8917 = vmatmul.mubr.msk.f32.gmra.mrb[46].mxu0 %vm92_vm0, %v66_v60 }
  0x81   :  { %8919 = vmatprep.mubr.msk.f32.mxu0 %vm92_vm0, %v67_v61 }
  0x84   :  { %8920 = vmatmul.mubr.msk.f32.gmra.mrb[48].mxu0 %vm92_vm0, %v68_v62 }
  0x85   :  { %8922 = vmatprep.mubr.msk.f32.mxu0 %vm92_vm0, %v69_v63 }
  0x88   :  { %8923 = vmatmul.mubr.msk.f32.gmra.mrb[50].mxu0 %vm92_vm0, %v70_v0 }
  0x89   :  { %8925 = vmatprep.mubr.msk.f32.mxu0 %vm92_vm0, %v71_v1 }
  0x8c   :  { %8926 = vmatmul.mubr.msk.f32.gmra.mrb[52].mxu0 %vm92_vm0, %v72_v2 }
  0x8d   :  { %8928 = vmatprep.mubr.msk.f32.mxu0 %vm92_vm0, %v73_v3 }
  0x90   :  { %8929 = vmatmul.mubr.msk.f32.gmra.mrb[54].mxu0 %vm92_vm0, %v74_v4 }
  0x91   :  { %8931 = vmatprep.mubr.msk.f32.mxu0 %vm92_vm0, %v75_v5 }
  0x94   :  { %8932 = vmatmul.mubr.msk.f32.gmra.mrb[56].mxu0 %vm92_vm0, %v76_v6 }
  0x95   :  { %8934 = vmatprep.mubr.msk.f32.mxu0 %vm92_vm0, %v77_v7 }
  0x98   :  { %8935 = vmatmul.mubr.msk.f32.gmra.mrb[58].mxu0 %vm92_vm0, %v78_v8 }
  0x99   :  { %8937 = vmatprep.mubr.msk.f32.mxu0 %vm92_vm0, %v79_v9 }
  0x9c   :  { %8938 = vmatmul.mubr.msk.f32.gmra.mrb[60].mxu0 %vm92_vm0, %v80_v10 }
  0x9d   :  { %8940 = vmatprep.mubr.msk.f32.mxu0 %vm92_vm0, %v81_v11  ;;  %v9191_v11 = vmov 0  }
  0x9e   :  { %9102 = vset.pattern.permute.xlu0 %v9191_v11  ;;  %9101 = vset.pattern.permute.xlu1 %v9191_v11 }
  0xa0   :  { %8941 = vmatmul.mubr.msk.f32.gmra.mrb[62].mxu0 %vm92_vm0, %v82_v12 }
  0xf7   :  { %v8849_v13 = vpop.f32.mrb[0].mxu0 }
  0xf8   :  { %v375_v14 = vpop.f32.mrb[1].mxu0  ;;  %v695_v16 = vmul.f32 2.0, %v8849_v13 }
  0xf9   :  { %v694_v17 = vmul.f32 2.0, %v375_v14 }
  0xfa   :  { %v765_v24 = vsub.f32 %v9535_v15, %v695_v16 }
  0xfb   :  { %v8852_v18 = vpop.f32.mrb[2].mxu0  ;;  %v764_v19 = vsub.f32 %v9535_v15, %v694_v17 }
  0xfc   :  { %v385_v20 = vpop.f32.mrb[3].mxu0  ;;  %v697_v21 = vmul.f32 2.0, %v8852_v18  ;;  %v832_v30 = vsel %vm828_vm2, %v765_v24, inf }
  0xfd   :  { %v696_v22 = vmul.f32 2.0, %v385_v20  ;;  %v829_v23 = vsel %vm828_vm2, %v764_v19, inf }
  0xfe   :  { %830 = vmin.index.xlane.f32.xlu0 %v829_v23  ;;  %v767_v32 = vsub.f32 %v9535_v15, %v697_v21 }
  0xff   :  { %v8855_v25 = vpop.f32.mrb[4].mxu0  ;;  %v766_v26 = vsub.f32 %v9535_v15, %v696_v22 }
 0x100   :  { %v699_v27 = vmul.f32 2.0, %v8855_v25  ;;  %v395_v28 = vpop.f32.mrb[5].mxu0  ;;  %v838_v39 = vsel %vm828_vm2, %v767_v32, inf }
 0x101   :  { %v698_v29 = vmul.f32 2.0, %v395_v28  ;;  %v835_v31 = vsel %vm828_vm2, %v766_v26, inf }
 0x102   :  { %833 = vmin.index.xlane.f32.xlu0 %v832_v30  ;;  %836 = vmin.index.xlane.f32.xlu1 %v835_v31  ;;  %v769_v36 = vsub.f32 %v9535_v15, %v699_v27 }
 0x103   :  { %v8858_v33 = vpop.f32.mrb[6].mxu0  ;;  %v768_v34 = vsub.f32 %v9535_v15, %v698_v29 }
 0x104   :  { %v405_v35 = vpop.f32.mrb[7].mxu0  ;;  %v701_v37 = vmul.f32 2.0, %v8858_v33  ;;  %v844_v44 = vsel %vm828_vm2, %v769_v36, inf }
 0x105   :  { %v700_v38 = vmul.f32 2.0, %v405_v35  ;;  %v841_v40 = vsel %vm828_vm2, %v768_v34, inf }
 0x106   :  { %839 = vmin.index.xlane.f32.xlu1 %v838_v39  ;;  %842 = vmin.index.xlane.f32.xlu0 %v841_v40  ;;  %v771_v48 = vsub.f32 %v9535_v15, %v701_v37 }
 0x107   :  { %v8861_v41 = vpop.f32.mrb[8].mxu0  ;;  %v770_v42 = vsub.f32 %v9535_v15, %v700_v38 }
 0x108   :  { %v415_v43 = vpop.f32.mrb[9].mxu0  ;;  %v703_v45 = vmul.f32 2.0, %v8861_v41  ;;  %v850_v54 = vsel %vm828_vm2, %v771_v48, inf }
 0x109   :  { %v702_v46 = vmul.f32 2.0, %v415_v43  ;;  %v847_v47 = vsel %vm828_vm2, %v770_v42, inf }
 0x10a   :  { %845 = vmin.index.xlane.f32.xlu1 %v844_v44  ;;  %848 = vmin.index.xlane.f32.xlu0 %v847_v47  ;;  %v773_v56 = vsub.f32 %v9535_v15, %v703_v45 }
 0x10b   :  { %v8864_v49 = vpop.f32.mrb[10].mxu0  ;;  %v772_v50 = vsub.f32 %v9535_v15, %v702_v46 }
 0x10c   :  { %v705_v51 = vmul.f32 2.0, %v8864_v49  ;;  %v425_v52 = vpop.f32.mrb[11].mxu0  ;;  %v856_v63 = vsel %vm828_vm2, %v773_v56, inf }
 0x10d   :  { %v704_v53 = vmul.f32 2.0, %v425_v52  ;;  %v853_v55 = vsel %vm828_vm2, %v772_v50, inf }
 0x10e   :  { %851 = vmin.index.xlane.f32.xlu1 %v850_v54  ;;  %854 = vmin.index.xlane.f32.xlu0 %v853_v55  ;;  %v775_v60 = vsub.f32 %v9535_v15, %v705_v51 }
 0x10f   :  { %v8867_v57 = vpop.f32.mrb[12].mxu0  ;;  %v774_v58 = vsub.f32 %v9535_v15, %v704_v53 }
 0x110   :  { %v435_v59 = vpop.f32.mrb[13].mxu0  ;;  %v707_v61 = vmul.f32 2.0, %v8867_v57  ;;  %v862_v4 = vsel %vm828_vm2, %v775_v60, inf }
 0x111   :  { %v706_v62 = vmul.f32 2.0, %v435_v59  ;;  %v859_v0 = vsel %vm828_vm2, %v774_v58, inf }
 0x112   :  { %857 = vmin.index.xlane.f32.xlu1 %v856_v63  ;;  %860 = vmin.index.xlane.f32.xlu0 %v859_v0  ;;  %v777_v8 = vsub.f32 %v9535_v15, %v707_v61 }
 0x113   :  { %v8870_v1 = vpop.f32.mrb[14].mxu0  ;;  %v776_v2 = vsub.f32 %v9535_v15, %v706_v62 }
 0x114   :  { %v445_v3 = vpop.f32.mrb[15].mxu0  ;;  %v709_v5 = vmul.f32 2.0, %v8870_v1  ;;  %v868_v16 = vsel %vm828_vm2, %v777_v8, inf }
 0x115   :  { %v708_v6 = vmul.f32 2.0, %v445_v3  ;;  %v865_v7 = vsel %vm828_vm2, %v776_v2, inf }
 0x116   :  { %863 = vmin.index.xlane.f32.xlu1 %v862_v4  ;;  %866 = vmin.index.xlane.f32.xlu0 %v865_v7  ;;  %v779_v18 = vsub.f32 %v9535_v15, %v709_v5 }
 0x117   :  { %v8873_v9 = vpop.f32.mrb[16].mxu0  ;;  %v778_v10 = vsub.f32 %v9535_v15, %v708_v6 }
 0x118   :  { %v711_v12 = vmul.f32 2.0, %v8873_v9  ;;  %v455_v13 = vpop.f32.mrb[17].mxu0  ;;  %v874_v25 = vsel %vm828_vm2, %v779_v18, inf }
 0x119   :  { %v710_v14 = vmul.f32 2.0, %v455_v13  ;;  %v871_v17 = vsel %vm828_vm2, %v778_v10, inf }
 0x11a   :  { %869 = vmin.index.xlane.f32.xlu1 %v868_v16  ;;  %872 = vmin.index.xlane.f32.xlu0 %v871_v17  ;;  %v781_v22 = vsub.f32 %v9535_v15, %v711_v12 }
 0x11b   :  { %v8876_v19 = vpop.f32.mrb[18].mxu0  ;;  %v780_v20 = vsub.f32 %v9535_v15, %v710_v14 }
 0x11c   :  { %v465_v21 = vpop.f32.mrb[19].mxu0  ;;  %v713_v23 = vmul.f32 2.0, %v8876_v19  ;;  %v880_v30 = vsel %vm828_vm2, %v781_v22, inf }
 0x11d   :  { %v712_v24 = vmul.f32 2.0, %v465_v21  ;;  %v877_v26 = vsel %vm828_vm2, %v780_v20, inf }
 0x11e   :  { %875 = vmin.index.xlane.f32.xlu1 %v874_v25  ;;  %878 = vmin.index.xlane.f32.xlu0 %v877_v26  ;;  %v783_v34 = vsub.f32 %v9535_v15, %v713_v23 }
 0x11f   :  { %v8879_v27 = vpop.f32.mrb[20].mxu0  ;;  %v782_v28 = vsub.f32 %v9535_v15, %v712_v24 }
 0x120   :  { %v475_v29 = vpop.f32.mrb[21].mxu0  ;;  %v715_v31 = vmul.f32 2.0, %v8879_v27  ;;  %v886_v40 = vsel %vm828_vm2, %v783_v34, inf }
 0x121   :  { %v714_v32 = vmul.f32 2.0, %v475_v29  ;;  %v883_v33 = vsel %vm828_vm2, %v782_v28, inf }
 0x122   :  { %881 = vmin.index.xlane.f32.xlu1 %v880_v30  ;;  %884 = vmin.index.xlane.f32.xlu0 %v883_v33  ;;  %v785_v42 = vsub.f32 %v9535_v15, %v715_v31 }
 0x123   :  { %v8882_v35 = vpop.f32.mrb[22].mxu0  ;;  %v784_v36 = vsub.f32 %v9535_v15, %v714_v32 }
 0x124   :  { %v717_v37 = vmul.f32 2.0, %v8882_v35  ;;  %v485_v38 = vpop.f32.mrb[23].mxu0  ;;  %v892_v49 = vsel %vm828_vm2, %v785_v42, inf }
 0x125   :  { %v716_v39 = vmul.f32 2.0, %v485_v38  ;;  %v889_v41 = vsel %vm828_vm2, %v784_v36, inf }
 0x126   :  { %887 = vmin.index.xlane.f32.xlu1 %v886_v40  ;;  %890 = vmin.index.xlane.f32.xlu0 %v889_v41  ;;  %v787_v46 = vsub.f32 %v9535_v15, %v717_v37 }
 0x127   :  { %v8885_v43 = vpop.f32.mrb[24].mxu0  ;;  %v786_v44 = vsub.f32 %v9535_v15, %v716_v39 }
 0x128   :  { %v495_v45 = vpop.f32.mrb[25].mxu0  ;;  %v719_v47 = vmul.f32 2.0, %v8885_v43  ;;  %v898_v54 = vsel %vm828_vm2, %v787_v46, inf }
 0x129   :  { %v718_v48 = vmul.f32 2.0, %v495_v45  ;;  %v895_v50 = vsel %vm828_vm2, %v786_v44, inf }
 0x12a   :  { %893 = vmin.index.xlane.f32.xlu1 %v892_v49  ;;  %896 = vmin.index.xlane.f32.xlu0 %v895_v50  ;;  %v789_v58 = vsub.f32 %v9535_v15, %v719_v47 }
 0x12b   :  { %v8888_v51 = vpop.f32.mrb[26].mxu0  ;;  %v788_v52 = vsub.f32 %v9535_v15, %v718_v48 }
 0x12c   :  { %v505_v53 = vpop.f32.mrb[27].mxu0  ;;  %v721_v55 = vmul.f32 2.0, %v8888_v51  ;;  %v904_v0 = vsel %vm828_vm2, %v789_v58, inf }
 0x12d   :  { %v720_v56 = vmul.f32 2.0, %v505_v53  ;;  %v901_v57 = vsel %vm828_vm2, %v788_v52, inf }
 0x12e   :  { %899 = vmin.index.xlane.f32.xlu1 %v898_v54  ;;  %902 = vmin.index.xlane.f32.xlu0 %v901_v57  ;;  %v791_v2 = vsub.f32 %v9535_v15, %v721_v55 }
 0x12f   :  { %v8891_v59 = vpop.f32.mrb[28].mxu0  ;;  %v790_v60 = vsub.f32 %v9535_v15, %v720_v56 }
 0x130   :  { %v723_v61 = vmul.f32 2.0, %v8891_v59  ;;  %v515_v62 = vpop.f32.mrb[29].mxu0  ;;  %v910_v9 = vsel %vm828_vm2, %v791_v2, inf }
 0x131   :  { %v722_v63 = vmul.f32 2.0, %v515_v62  ;;  %v907_v1 = vsel %vm828_vm2, %v790_v60, inf }
 0x132   :  { %905 = vmin.index.xlane.f32.xlu1 %v904_v0  ;;  %908 = vmin.index.xlane.f32.xlu0 %v907_v1  ;;  %v793_v6 = vsub.f32 %v9535_v15, %v723_v61 }
 0x133   :  { %v8894_v3 = vpop.f32.mrb[30].mxu0  ;;  %v792_v4 = vsub.f32 %v9535_v15, %v722_v63 }
 0x134   :  { %v525_v5 = vpop.f32.mrb[31].mxu0  ;;  %v725_v7 = vmul.f32 2.0, %v8894_v3  ;;  %v916_v14 = vsel %vm828_vm2, %v793_v6, inf }
 0x135   :  { %v724_v8 = vmul.f32 2.0, %v525_v5  ;;  %v913_v10 = vsel %vm828_vm2, %v792_v4, inf }
 0x136   :  { %911 = vmin.index.xlane.f32.xlu1 %v910_v9  ;;  %914 = vmin.index.xlane.f32.xlu0 %v913_v10  ;;  %v795_v19 = vsub.f32 %v9535_v15, %v725_v7 }
 0x137   :  { %v8897_v11 = vpop.f32.mrb[32].mxu0  ;;  %v794_v12 = vsub.f32 %v9535_v15, %v724_v8 }
 0x138   :  { %v535_v13 = vpop.f32.mrb[33].mxu0  ;;  %v727_v16 = vmul.f32 2.0, %v8897_v11  ;;  %v922_v24 = vsel %vm828_vm2, %v795_v19, inf }
 0x139   :  { %v726_v17 = vmul.f32 2.0, %v535_v13  ;;  %v919_v18 = vsel %vm828_vm2, %v794_v12, inf }
 0x13a   :  { %917 = vmin.index.xlane.f32.xlu1 %v916_v14  ;;  %920 = vmin.index.xlane.f32.xlu0 %v919_v18  ;;  %v797_v27 = vsub.f32 %v9535_v15, %v727_v16 }
 0x13b   :  { %v8900_v20 = vpop.f32.mrb[34].mxu0  ;;  %v796_v21 = vsub.f32 %v9535_v15, %v726_v17 }
 0x13c   :  { %v729_v22 = vmul.f32 2.0, %v8900_v20  ;;  %v545_v23 = vpop.f32.mrb[35].mxu0  ;;  %v928_v33 = vsel %vm828_vm2, %v797_v27, inf }
 0x13d   :  { %v925_v25 = vsel %vm828_vm2, %v796_v21, inf  ;;  %v728_v26 = vmul.f32 2.0, %v545_v23 }
 0x13e   :  { %923 = vmin.index.xlane.f32.xlu1 %v922_v24  ;;  %926 = vmin.index.xlane.f32.xlu0 %v925_v25  ;;  %v799_v31 = vsub.f32 %v9535_v15, %v729_v22 }
 0x13f   :  { %v8903_v28 = vpop.f32.mrb[36].mxu0  ;;  %v798_v29 = vsub.f32 %v9535_v15, %v728_v26 }
 0x140   :  { %v555_v30 = vpop.f32.mrb[37].mxu0  ;;  %v731_v32 = vmul.f32 2.0, %v8903_v28  ;;  %v934_v38 = vsel %vm828_vm2, %v799_v31, inf }
 0x141   :  { %v730_v34 = vmul.f32 2.0, %v555_v30  ;;  %v931_v35 = vsel %vm828_vm2, %v798_v29, inf }
 0x142   :  { %929 = vmin.index.xlane.f32.xlu1 %v928_v33  ;;  %932 = vmin.index.xlane.f32.xlu0 %v931_v35  ;;  %v801_v43 = vsub.f32 %v9535_v15, %v731_v32 }
 0x143   :  { %v8906_v36 = vpop.f32.mrb[38].mxu0  ;;  %v800_v37 = vsub.f32 %v9535_v15, %v730_v34 }
 0x144   :  { %v565_v39 = vpop.f32.mrb[39].mxu0  ;;  %v733_v40 = vmul.f32 2.0, %v8906_v36  ;;  %v940_v48 = vsel %vm828_vm2, %v801_v43, inf }
 0x145   :  { %v732_v41 = vmul.f32 2.0, %v565_v39  ;;  %v937_v42 = vsel %vm828_vm2, %v800_v37, inf }
 0x146   :  { %935 = vmin.index.xlane.f32.xlu1 %v934_v38  ;;  %938 = vmin.index.xlane.f32.xlu0 %v937_v42  ;;  %v803_v51 = vsub.f32 %v9535_v15, %v733_v40 }
 0x147   :  { %v8909_v44 = vpop.f32.mrb[40].mxu0  ;;  %v802_v45 = vsub.f32 %v9535_v15, %v732_v41 }
 0x148   :  { %v735_v46 = vmul.f32 2.0, %v8909_v44  ;;  %v575_v47 = vpop.f32.mrb[41].mxu0  ;;  %v946_v57 = vsel %vm828_vm2, %v803_v51, inf }
 0x149   :  { %v734_v49 = vmul.f32 2.0, %v575_v47  ;;  %v943_v50 = vsel %vm828_vm2, %v802_v45, inf }
 0x14a   :  { %941 = vmin.index.xlane.f32.xlu1 %v940_v48  ;;  %944 = vmin.index.xlane.f32.xlu0 %v943_v50  ;;  %v805_v55 = vsub.f32 %v9535_v15, %v735_v46 }
 0x14b   :  { %v8912_v52 = vpop.f32.mrb[42].mxu0  ;;  %v804_v53 = vsub.f32 %v9535_v15, %v734_v49 }
 0x14c   :  { %v585_v54 = vpop.f32.mrb[43].mxu0  ;;  %v737_v56 = vmul.f32 2.0, %v8912_v52  ;;  %v952_v62 = vsel %vm828_vm2, %v805_v55, inf }
 0x14d   :  { %v736_v58 = vmul.f32 2.0, %v585_v54  ;;  %v949_v59 = vsel %vm828_vm2, %v804_v53, inf }
 0x14e   :  { %947 = vmin.index.xlane.f32.xlu1 %v946_v57  ;;  %950 = vmin.index.xlane.f32.xlu0 %v949_v59  ;;  %v807_v3 = vsub.f32 %v9535_v15, %v737_v56 }
 0x14f   :  { %v8915_v60 = vpop.f32.mrb[44].mxu0  ;;  %v806_v61 = vsub.f32 %v9535_v15, %v736_v58 }
 0x150   :  { %v595_v63 = vpop.f32.mrb[45].mxu0  ;;  %v739_v0 = vmul.f32 2.0, %v8915_v60  ;;  %v958_v8 = vsel %vm828_vm2, %v807_v3, inf }
 0x151   :  { %v738_v1 = vmul.f32 2.0, %v595_v63  ;;  %v955_v2 = vsel %vm828_vm2, %v806_v61, inf }
 0x152   :  { %953 = vmin.index.xlane.f32.xlu1 %v952_v62  ;;  %956 = vmin.index.xlane.f32.xlu0 %v955_v2  ;;  %v809_v11 = vsub.f32 %v9535_v15, %v739_v0 }
 0x153   :  { %v8918_v4 = vpop.f32.mrb[46].mxu0  ;;  %v808_v5 = vsub.f32 %v9535_v15, %v738_v1 }
 0x154   :  { %v741_v6 = vmul.f32 2.0, %v8918_v4  ;;  %v605_v7 = vpop.f32.mrb[47].mxu0  ;;  %v964_v18 = vsel %vm828_vm2, %v809_v11, inf }
 0x155   :  { %v740_v9 = vmul.f32 2.0, %v605_v7  ;;  %v961_v10 = vsel %vm828_vm2, %v808_v5, inf }
 0x156   :  { %959 = vmin.index.xlane.f32.xlu1 %v958_v8  ;;  %962 = vmin.index.xlane.f32.xlu0 %v961_v10  ;;  %v811_v16 = vsub.f32 %v9535_v15, %v741_v6 }
 0x157   :  { %v8921_v12 = vpop.f32.mrb[48].mxu0  ;;  %v810_v13 = vsub.f32 %v9535_v15, %v740_v9 }
 0x158   :  { %v615_v14 = vpop.f32.mrb[49].mxu0  ;;  %v743_v17 = vmul.f32 2.0, %v8921_v12  ;;  %v970_v23 = vsel %vm828_vm2, %v811_v16, inf }
 0x159   :  { %v742_v19 = vmul.f32 2.0, %v615_v14  ;;  %v967_v20 = vsel %vm828_vm2, %v810_v13, inf }
 0x15a   :  { %965 = vmin.index.xlane.f32.xlu1 %v964_v18  ;;  %968 = vmin.index.xlane.f32.xlu0 %v967_v20  ;;  %v813_v28 = vsub.f32 %v9535_v15, %v743_v17  ;;  %v9192_v20 = vmov 1966171168  }
 0x15b   :  { %v8924_v21 = vpop.f32.mrb[50].mxu0  ;;  %v812_v22 = vsub.f32 %v9535_v15, %v742_v19  ;;  %v12614_v19 = vlaneseq }
 0x15c   :  { %v625_v24 = vpop.f32.mrb[51].mxu0  ;;  %v745_v25 = vmul.f32 2.0, %v8924_v21  ;;  %v976_v33 = vsel %vm828_vm2, %v813_v28, inf  ;;  %v3909_v21 = vunpack.c.l.s4 %v9192_v20 }
 0x15d   :  { %v744_v26 = vmul.f32 2.0, %v625_v24  ;;  %v973_v27 = vsel %vm828_vm2, %v812_v22, inf  ;;  %v9666_v22 = vshrl.u32 %v12614_v19, 7  ;;  %v9669_v24 = vand.u32 127, %v12614_v19 }
 0x15e   :  { %971 = vmin.index.xlane.f32.xlu1 %v970_v23  ;;  %974 = vmin.index.xlane.f32.xlu0 %v973_v27  ;;  %v815_v36 = vsub.f32 %v9535_v15, %v745_v25  ;;  %v3910_v23 = vunpack.c.0.s8 %v3909_v21 }
 0x15f   :  { %v8927_v29 = vpop.f32.mrb[52].mxu0  ;;  %v814_v30 = vsub.f32 %v9535_v15, %v744_v26  ;;  %v9672_v25 = vsub.s32 0, %v9666_v22  ;;  %v9678_v26 = vsub.s32 2, %v9666_v22  ;;  %v9681_v27 = vsub.s32 3, %v9666_v22 }
 0x160   :  { %v747_v31 = vmul.f32 2.0, %v8927_v29  ;;  %v635_v32 = vpop.f32.mrb[53].mxu0  ;;  %v982_v42 = vsel %vm828_vm2, %v815_v36, inf  ;;  %v9684_v28 = vsub.s32 4, %v9666_v22  ;;  %v9687_v29 = vsub.s32 5, %v9666_v22 }
 0x161   :  { %v746_v34 = vmul.f32 2.0, %v635_v32  ;;  %v979_v35 = vsel %vm828_vm2, %v814_v30, inf  ;;  %v9690_v30 = vsub.s32 6, %v9666_v22 }
 0x162   :  { %977 = vmin.index.xlane.f32.xlu1 %v976_v33  ;;  %980 = vmin.index.xlane.f32.xlu0 %v979_v35  ;;  %v817_v40 = vsub.f32 %v9535_v15, %v747_v31  ;;  %v9693_v31 = vsub.s32 7, %v9666_v22  ;;  %v9696_v33 = vsub.s32 %v3910_v23, %v9666_v22 }
 0x163   :  { %v8930_v37 = vpop.f32.mrb[54].mxu0  ;;  %v816_v38 = vsub.f32 %v9535_v15, %v746_v34  ;;  %12641 = vst [vmem:[#allocation5_spill] sm:$0xff] %v9690_v30 }
 0x164   :  { %v645_v39 = vpop.f32.mrb[55].mxu0  ;;  %v749_v41 = vmul.f32 2.0, %v8930_v37  ;;  %v988_v47 = vsel %vm828_vm2, %v817_v40, inf  ;;  %12642 = vst [vmem:[#allocation6_spill] sm:$0xff] %v9693_v31  ;;  %v12615_v37 = vmov 0.0  }
 0x165   :  { %v748_v43 = vmul.f32 2.0, %v645_v39  ;;  %v985_v44 = vsel %vm828_vm2, %v816_v38, inf }
 0x166   :  { %983 = vmin.index.xlane.f32.xlu1 %v982_v42  ;;  %986 = vmin.index.xlane.f32.xlu0 %v985_v44  ;;  %v819_v52 = vsub.f32 %v9535_v15, %v749_v41 }
 0x167   :  { %v8933_v45 = vpop.f32.mrb[56].mxu0  ;;  %v818_v46 = vsub.f32 %v9535_v15, %v748_v43 }
 0x168   :  { %v655_v48 = vpop.f32.mrb[57].mxu0  ;;  %v751_v49 = vmul.f32 2.0, %v8933_v45  ;;  %v994_v57 = vsel %vm828_vm2, %v819_v52, inf }
 0x169   :  { %v750_v50 = vmul.f32 2.0, %v655_v48  ;;  %v991_v51 = vsel %vm828_vm2, %v818_v46, inf }
 0x16a   :  { %989 = vmin.index.xlane.f32.xlu1 %v988_v47  ;;  %992 = vmin.index.xlane.f32.xlu0 %v991_v51  ;;  %v821_v60 = vsub.f32 %v9535_v15, %v751_v49 }
 0x16b   :  { %v8936_v53 = vpop.f32.mrb[58].mxu0  ;;  %v820_v54 = vsub.f32 %v9535_v15, %v750_v50 }
 0x16c   :  { %v753_v55 = vmul.f32 2.0, %v8936_v53  ;;  %v665_v56 = vpop.f32.mrb[59].mxu0  ;;  %v1000_v2 = vsel %vm828_vm2, %v821_v60, inf }
 0x16d   :  { %v752_v58 = vmul.f32 2.0, %v665_v56  ;;  %v997_v59 = vsel %vm828_vm2, %v820_v54, inf }
 0x16e   :  { %995 = vmin.index.xlane.f32.xlu1 %v994_v57  ;;  %998 = vmin.index.xlane.f32.xlu0 %v997_v59  ;;  %v823_v0 = vsub.f32 %v9535_v15, %v753_v55 }
 0x16f   :  { %v8939_v61 = vpop.f32.mrb[60].mxu0  ;;  %v822_v62 = vsub.f32 %v9535_v15, %v752_v58 }
 0x170   :  { %v675_v63 = vpop.f32.mrb[61].mxu0  ;;  %v755_v1 = vmul.f32 2.0, %v8939_v61  ;;  %v1006_v7 = vsel %vm828_vm2, %v823_v0, inf }
 0x171   :  { %v754_v3 = vmul.f32 2.0, %v675_v63  ;;  %v1003_v4 = vsel %vm828_vm2, %v822_v62, inf }
 0x172   :  { %1001 = vmin.index.xlane.f32.xlu1 %v1000_v2  ;;  %1004 = vmin.index.xlane.f32.xlu0 %v1003_v4  ;;  %v825_v12 = vsub.f32 %v9535_v15, %v755_v1 }
 0x173   :  { %v8942_v5 = vpop.f32.mrb[62].mxu0  ;;  %v824_v6 = vsub.f32 %v9535_v15, %v754_v3 }
 0x174   :  { %v685_v8 = vpop.f32.mrb[63].mxu0  ;;  %v757_v9 = vmul.f32 2.0, %v8942_v5  ;;  %v1012_v14 = vsel %vm828_vm2, %v825_v12, inf }
 0x175   :  { %v756_v10 = vmul.f32 2.0, %v685_v8  ;;  %v1009_v11 = vsel %vm828_vm2, %v824_v6, inf }
 0x176   :  { %1007 = vmin.index.xlane.f32.xlu1 %v1006_v7  ;;  %1010 = vmin.index.xlane.f32.xlu0 %v1009_v11  ;;  %v827_v17 = vsub.f32 %v9535_v15, %v757_v9 }
 0x177   :  { %v826_v13 = vsub.f32 %v9535_v15, %v756_v10  ;;  %v9675_v15 = vsub.s32 1, %v9666_v22 }
 0x178   :  { %v1018_v18 = vsel %vm828_vm2, %v827_v17, inf }
 0x179   :  { %v1015_v16 = vsel %vm828_vm2, %v826_v13, inf }
 0x17a   :  { %1013 = vmin.index.xlane.f32.xlu1 %v1012_v14  ;;  %1016 = vmin.index.xlane.f32.xlu0 %v1015_v16 }
 0x17e   :  { %1019 = vmin.index.xlane.f32.xlu1 %v1018_v18 }
 0x18b   :  { %v831_v32 = vpop.xlane.xlu0 %830 }
 0x18c   :  { %vm1023_vm3 = vcmp.eq.s32.totalorder %v831_v32, %v9669_v24  ;;  %v1859_v34 = vrot.slane %v831_v32, %v9672_v25  ;;  %v1863_v35 = vrot.slane %v831_v32, %v9675_v15  ;;  %v1867_v36 = vrot.slane %v831_v32, %v9678_v26 }
 0x18d   :  { %v8559_v38 = vsel %vm1023_vm3, 1.0, %v12615_v37  ;;  %v1871_v39 = vrot.slane %v831_v32, %v9681_v27  ;;  %v1875_v40 = vrot.slane %v831_v32, %v9684_v28  ;;  %v1879_v41 = vrot.slane %v831_v32, %v9687_v29 }
 0x18e   :  { %8959 = vmatprep.mubr.msk.f32.mxu1 %vm828_vm2, %v8559_v38  ;;  %v1883_v42 = vrot.slane %v831_v32, %v9690_v30  ;;  %v1887_v43 = vrot.slane %v831_v32, %v9693_v31  ;;  %v3904_v44 = vcombine.low %v1859_v34, %v1863_v35  ;;  %v8122_v45 = vsel %vm828_vm2, %v8559_v38, 0.0 }
 0x18f   :  { %v834_v46 = vpop.xlane.xlu0 %833  ;;  %v9710_v47 = vpop.xlane.xlu1 %836  ;;  %v3905_v48 = vcombine.low %v1867_v36, %v1871_v39  ;;  %v3906_v49 = vcombine.low %v1875_v40, %v1879_v41 }
 0x190   :  { %vm1024_vm4 = vcmp.eq.s32.totalorder %v834_v46, %v9669_v24  ;;  %vm1025_vm5 = vcmp.eq.s32.totalorder %v9710_v47, %v9669_v24  ;;  %v3907_v50 = vcombine.low %v1883_v42, %v1887_v43  ;;  %v3914_v51 = vrot.slane %v3904_v44, %v9696_v33 }
 0x191   :  { %v8560_v52 = vsel %vm1024_vm4, 1.0, %v12615_v37  ;;  %v8561_v53 = vsel %vm1025_vm5, 1.0, %v12615_v37  ;;  %v3921_v54 = vrot.slane %v3905_v48, %v9696_v33  ;;  %v3928_v55 = vrot.slane %v3906_v49, %v9696_v33 }
 0x192   :  { %8960 = vmatmul.mubr.msk.f32.vlgmr.msra.gmra.mrb[0].mxu1 %vm828_vm2, %v8560_v52  ;;  %v8123_v56 = vsel %vm828_vm2, %v8560_v52, 0.0  ;;  %v8125_v57 = vsel %vm828_vm2, %v8561_v53, 0.0  ;;  %v3935_v58 = vrot.slane %v3907_v50, %v9696_v33  ;;  %v1891_v59 = vrot.slane %v834_v46, %v9672_v25 }
 0x193   :  { %v8124_v60 = vadd.f32 %v8123_v56, %v8122_v45  ;;  %8962 = vmatprep.mubr.msk.f32.mxu1 %vm828_vm2, %v8561_v53  ;;  %v9726_v61 = vpop.xlane.xlu1 %839  ;;  %v9728_v62 = vpop.xlane.xlu0 %842  ;;  %v3936_v63 = vcombine.low %v3914_v51, %v3921_v54  ;;  %v1895_v0 = vrot.slane %v834_v46, %v9675_v15  ;;  %v1899_v1 = vrot.slane %v834_v46, %v9678_v26 }
 0x194   :  { %vm1026_vm6 = vcmp.eq.s32.totalorder %v9726_v61, %v9669_v24  ;;  %vm1027_vm7 = vcmp.eq.s32.totalorder %v9728_v62, %v9669_v24  ;;  %v3937_v2 = vcombine.low %v3928_v55, %v3935_v58  ;;  %v1903_v3 = vrot.slane %v834_v46, %v9681_v27 }
 0x195   :  { %v8126_v4 = vadd.f32 %v8125_v57, %v8124_v60  ;;  %v8562_v5 = vsel %vm1026_vm6, 1.0, %v12615_v37  ;;  %v8563_v6 = vsel %vm1027_vm7, 1.0, %v12615_v37  ;;  %v3944_v7 = vrot.slane %v3936_v63, %v9696_v33 }
 0x196   :  { %8963 = vmatmul.mubr.msk.f32.gmra.mrb[2].mxu1 %vm828_vm2, %v8562_v5  ;;  %v8127_v8 = vsel %vm828_vm2, %v8562_v5, 0.0  ;;  %v8129_v9 = vsel %vm828_vm2, %v8563_v6, 0.0  ;;  %v3951_v10 = vrot.slane %v3937_v2, %v9696_v33  ;;  %v1907_v11 = vrot.slane %v834_v46, %v9684_v28 }
 0x197   :  { %v8128_v12 = vadd.f32 %v8127_v8, %v8126_v4  ;;  %v9745_v13 = vpop.xlane.xlu1 %845  ;;  %v9747_v14 = vpop.xlane.xlu0 %848  ;;  %8965 = vmatprep.mubr.msk.f32.mxu1 %vm828_vm2, %v8563_v6  ;;  %v1911_v16 = vrot.slane %v834_v46, %v9687_v29  ;;  %v1915_v17 = vrot.slane %v834_v46, %v9690_v30  ;;  %v1919_v18 = vrot.slane %v834_v46, %v9693_v31 }
 0x198   :  { %v3952_v20 = vcombine.low %v3944_v7, %v3951_v10  ;;  %vm1028_vm8 = vcmp.eq.s32.totalorder %v9745_v13, %v9669_v24  ;;  %vm1029_vm9 = vcmp.eq.s32.totalorder %v9747_v14, %v9669_v24  ;;  %v3953_v21 = vcombine.low %v1891_v59, %v1895_v0 }
 0x199   :  { %v8130_v23 = vadd.f32 %v8129_v9, %v8128_v12  ;;  %v8564_v32 = vsel %vm1028_vm8, 1.0, %v12615_v37  ;;  %v8565_v34 = vsel %vm1029_vm9, 1.0, %v12615_v37  ;;  %v3954_v35 = vcombine.low %v1899_v1, %v1903_v3 }
 0x19a   :  { %7041 = vperm.xlu0 %9102, %v3952_v20   ;;  %8966 = vmatmul.mubr.msk.f32.gmra.mrb[4].mxu1 %vm828_vm2, %v8564_v32  ;;  %v8131_v36 = vsel %vm828_vm2, %v8564_v32, 0.0  ;;  %v8133_v38 = vsel %vm828_vm2, %v8565_v34, 0.0  ;;  %v3955_v39 = vcombine.low %v1907_v11, %v1911_v16  ;;  %v3956_v40 = vcombine.low %v1915_v17, %v1919_v18 }
 0x19b   :  { %v8132_v41 = vadd.f32 %v8131_v36, %v8130_v23  ;;  %v9762_v42 = vpop.xlane.xlu1 %851  ;;  %v9764_v43 = vpop.xlane.xlu0 %854  ;;  %8968 = vmatprep.mubr.msk.f32.mxu1 %vm828_vm2, %v8565_v34  ;;  %v3963_v44 = vrot.slane %v3953_v21, %v9696_v33  ;;  %v3970_v45 = vrot.slane %v3954_v35, %v9696_v33  ;;  %v1955_v46 = vrot.slane %v9726_v61, %v9672_v25 }
 0x19c   :  { %v3977_v48 = vrot.slane %v3955_v39, %v9696_v33  ;;  %v3984_v49 = vrot.slane %v3956_v40, %v9696_v33  ;;  %vm1030_vm10 = vcmp.eq.s32.totalorder %v9762_v42, %v9669_v24  ;;  %vm1031_vm11 = vcmp.eq.s32.totalorder %v9764_v43, %v9669_v24 }
 0x19d   :  { %v8134_v50 = vadd.f32 %v8133_v38, %v8132_v41  ;;  %v3985_v51 = vcombine.low %v3963_v44, %v3970_v45  ;;  %v8566_v52 = vsel %vm1030_vm10, 1.0, %v12615_v37  ;;  %v8567_v53 = vsel %vm1031_vm11, 1.0, %v12615_v37 }
 0x19e   :  { %v3986_v54 = vcombine.low %v3977_v48, %v3984_v49  ;;  %8969 = vmatmul.mubr.msk.f32.gmra.mrb[6].mxu1 %vm828_vm2, %v8566_v52  ;;  %v8135_v55 = vsel %vm828_vm2, %v8566_v52, 0.0  ;;  %v8137_v56 = vsel %vm828_vm2, %v8567_v53, 0.0  ;;  %v1959_v57 = vrot.slane %v9726_v61, %v9675_v15 }
 0x19f   :  { %v3993_v58 = vrot.slane %v3985_v51, %v9696_v33  ;;  %v8136_v59 = vadd.f32 %v8135_v55, %v8134_v50  ;;  %v9785_v60 = vpop.xlane.xlu1 %857  ;;  %8971 = vmatprep.mubr.msk.f32.mxu1 %vm828_vm2, %v8567_v53  ;;  %v1963_v63 = vrot.slane %v9726_v61, %v9678_v26  ;;  %v1967_v0 = vrot.slane %v9726_v61, %v9681_v27  ;;  %v9799_v5 = vpop.xlane.xlu0 %860 }
 0x1a0   :  { %v4000_v1 = vrot.slane %v3986_v54, %v9696_v33  ;;  %v1971_v2 = vrot.slane %v9726_v61, %v9684_v28  ;;  %v1975_v3 = vrot.slane %v9726_v61, %v9687_v29  ;;  %v1979_v4 = vrot.slane %v9726_v61, %v9690_v30 }
 0x1a1   :  { %v8138_v6 = vadd.f32 %v8137_v56, %v8136_v59  ;;  %v1983_v7 = vrot.slane %v9726_v61, %v9693_v31  ;;  %v4051_v8 = vcombine.low %v1955_v46, %v1959_v57  ;;  %v4052_v9 = vcombine.low %v1963_v63, %v1967_v0 }
 0x1a2   :  { %v4001_v10 = vcombine.low %v3993_v58, %v4000_v1  ;;  %v4053_v11 = vcombine.low %v1971_v2, %v1975_v3  ;;  %vm1032_vm12 = vcmp.eq.s32.totalorder %v9785_v60, %v9669_v24  ;;  %vm1033_vm13 = vcmp.eq.s32.totalorder %v9799_v5, %v9669_v24 }
 0x1a3   :  { %v4054_v12 = vcombine.low %v1979_v4, %v1983_v7  ;;  %v4061_v16 = vrot.slane %v4051_v8, %v9696_v33  ;;  %v4068_v17 = vrot.slane %v4052_v9, %v9696_v33  ;;  %v8568_v18 = vsel %vm1032_vm12, 1.0, %v12615_v37  ;;  %v9819_v38 = vpop.xlane.xlu1 %863  ;;  %v9832_v50 = vpop.xlane.xlu0 %866 }
 0x1a4   :  { %7044 = vperm.xlu1 %9101, %v4001_v10   ;;  %v4075_v61 = vrot.slane %v4053_v11, %v9696_v33  ;;  %8972 = vmatmul.mubr.msk.f32.gmra.mrb[8].mxu1 %vm828_vm2, %v8568_v18  ;;  %v8139_v20 = vsel %vm828_vm2, %v8568_v18, 0.0  ;;  %v8569_v21 = vsel %vm1033_vm13, 1.0, %v12615_v37  ;;  %v1923_v23 = vrot.slane %v9710_v47, %v9672_v25 }
 0x1a5   :  { %v4082_v32 = vrot.slane %v4054_v12, %v9696_v33  ;;  %v4083_v34 = vcombine.low %v4061_v16, %v4068_v17  ;;  %v8140_v35 = vadd.f32 %v8139_v20, %v8138_v6  ;;  %8974 = vmatprep.mubr.msk.f32.mxu1 %vm828_vm2, %v8569_v21  ;;  %v8141_v36 = vsel %vm828_vm2, %v8569_v21, 0.0 }
 0x1a6   :  { %v1927_v39 = vrot.slane %v9710_v47, %v9675_v15  ;;  %v1931_v40 = vrot.slane %v9710_v47, %v9678_v26  ;;  %v1935_v41 = vrot.slane %v9710_v47, %v9681_v27  ;;  %v1939_v44 = vrot.slane %v9710_v47, %v9684_v28 }
 0x1a7   :  { %v4084_v45 = vcombine.low %v4075_v61, %v4082_v32  ;;  %v4091_v46 = vrot.slane %v4083_v34, %v9696_v33  ;;  %v8142_v48 = vadd.f32 %v8141_v36, %v8140_v35  ;;  %v1943_v49 = vrot.slane %v9710_v47, %v9687_v29  ;;  %v9853_v8 = vpop.xlane.xlu1 %869  ;;  %v9866_v20 = vpop.xlane.xlu0 %872 }
 0x1a8   :  { %v1947_v51 = vrot.slane %v9710_v47, %v9690_v30  ;;  %v1951_v52 = vrot.slane %v9710_v47, %v9693_v31  ;;  %v4002_v53 = vcombine.low %v1923_v23, %v1927_v39  ;;  %v4003_v54 = vcombine.low %v1931_v40, %v1935_v41 }
 0x1a9   :  { %v4098_v55 = vrot.slane %v4084_v45, %v9696_v33  ;;  %v4004_v56 = vcombine.low %v1939_v44, %v1943_v49  ;;  %vm1034_vm14 = vcmp.eq.s32.totalorder %v9819_v38, %v9669_v24  ;;  %vm1035_vm15 = vcmp.eq.s32.totalorder %v9832_v50, %v9669_v24 }
 0x1aa   :  { %v4005_v57 = vcombine.low %v1947_v51, %v1951_v52  ;;  %v4012_v58 = vrot.slane %v4002_v53, %v9696_v33  ;;  %v4019_v59 = vrot.slane %v4003_v54, %v9696_v33  ;;  %v8570_v63 = vsel %vm1034_vm14, 1.0, %v12615_v37 }
 0x1ab   :  { %v4099_v0 = vcombine.low %v4091_v46, %v4098_v55  ;;  %v4026_v47 = vrot.slane %v4004_v56, %v9696_v33  ;;  %8975 = vmatmul.mubr.msk.f32.gmra.mrb[10].mxu1 %vm828_vm2, %v8570_v63  ;;  %v8143_v1 = vsel %vm828_vm2, %v8570_v63, 0.0  ;;  %v8571_v2 = vsel %vm1035_vm15, 1.0, %v12615_v37 }
 0x1ac   :  { %v4033_v3 = vrot.slane %v4005_v57, %v9696_v33  ;;  %v4034_v4 = vcombine.low %v4012_v58, %v4019_v59  ;;  %v8144_v6 = vadd.f32 %v8143_v1, %v8142_v48  ;;  %8977 = vmatprep.mubr.msk.f32.mxu1 %vm828_vm2, %v8571_v2  ;;  %v8145_v7 = vsel %vm828_vm2, %v8571_v2, 0.0 }
 0x1ad   :  { %7050 = vperm.xlu1 %9101, %v4099_v0   ;;  %v2019_v9 = vrot.slane %v9745_v13, %v9672_v25  ;;  %v2023_v10 = vrot.slane %v9745_v13, %v9675_v15  ;;  %v2027_v11 = vrot.slane %v9745_v13, %v9678_v26  ;;  %v2031_v12 = vrot.slane %v9745_v13, %v9681_v27 }
 0x1ae   :  { %v4035_v16 = vcombine.low %v4026_v47, %v4033_v3  ;;  %v4042_v17 = vrot.slane %v4034_v4, %v9696_v33  ;;  %v8146_v18 = vadd.f32 %v8145_v7, %v8144_v6  ;;  %v2035_v61 = vrot.slane %v9745_v13, %v9684_v28 }
 0x1af   :  { %v2039_v21 = vrot.slane %v9745_v13, %v9687_v29  ;;  %v2043_v23 = vrot.slane %v9745_v13, %v9690_v30  ;;  %v2047_v32 = vrot.slane %v9745_v13, %v9693_v31  ;;  %v4149_v34 = vcombine.low %v2019_v9, %v2023_v10 }
 0x1b0   :  { %v4049_v35 = vrot.slane %v4035_v16, %v9696_v33  ;;  %v4150_v36 = vcombine.low %v2027_v11, %v2031_v12  ;;  %vm1036_vm1 = vcmp.eq.s32.totalorder %v9853_v8, %v9669_v24  ;;  %vm1037_vm3 = vcmp.eq.s32.totalorder %v9866_v20, %v9669_v24 }
 0x1b1   :  { %v4151_v39 = vcombine.low %v2035_v61, %v2039_v21  ;;  %v4152_v40 = vcombine.low %v2043_v23, %v2047_v32  ;;  %v4159_v41 = vrot.slane %v4149_v34, %v9696_v33  ;;  %v8572_v44 = vsel %vm1036_vm1, 1.0, %v12615_v37 }
 0x1b2   :  { %v4050_v45 = vcombine.low %v4042_v17, %v4049_v35  ;;  %v4166_v46 = vrot.slane %v4150_v36, %v9696_v33  ;;  %8978 = vmatmul.mubr.msk.f32.gmra.mrb[12].mxu1 %vm828_vm2, %v8572_v44  ;;  %v8147_v13 = vsel %vm828_vm2, %v8572_v44, 0.0  ;;  %v8573_v48 = vsel %vm1037_vm3, 1.0, %v12615_v37 }
 0x1b3   :  { %v4173_v49 = vrot.slane %v4151_v39, %v9696_v33  ;;  %v4180_v51 = vrot.slane %v4152_v40, %v9696_v33  ;;  %v8148_v52 = vadd.f32 %v8147_v13, %v8146_v18  ;;  %8980 = vmatprep.mubr.msk.f32.mxu1 %vm828_vm2, %v8573_v48  ;;  %v8149_v53 = vsel %vm828_vm2, %v8573_v48, 0.0  ;;  %v9913_v18 = vpop.xlane.xlu1 %875 }
 0x1b4   :  { %7047 = vperm.xlu1 %9101, %v4050_v45   ;;  %v4181_v54 = vcombine.low %v4159_v41, %v4166_v46  ;;  %v1987_v55 = vrot.slane %v9728_v62, %v9672_v25  ;;  %v1991_v56 = vrot.slane %v9728_v62, %v9675_v15  ;;  %v1995_v57 = vrot.slane %v9728_v62, %v9678_v26 }
 0x1b5   :  { %v4182_v58 = vcombine.low %v4173_v49, %v4180_v51  ;;  %v8150_v59 = vadd.f32 %v8149_v53, %v8148_v52  ;;  %v1999_v63 = vrot.slane %v9728_v62, %v9681_v27  ;;  %v2003_v0 = vrot.slane %v9728_v62, %v9684_v28  ;;  %v9934_v52 = vpop.xlane.xlu0 %878 }
 0x1b6   :  { %v4189_v47 = vrot.slane %v4181_v54, %v9696_v33  ;;  %v2007_v1 = vrot.slane %v9728_v62, %v9687_v29  ;;  %v2011_v2 = vrot.slane %v9728_v62, %v9690_v30  ;;  %v2015_v3 = vrot.slane %v9728_v62, %v9693_v31 }
 0x1b7   :  { %v4196_v4 = vrot.slane %v4182_v58, %v9696_v33  ;;  %v4100_v6 = vcombine.low %v1987_v55, %v1991_v56  ;;  %v4101_v7 = vcombine.low %v1995_v57, %v1999_v63  ;;  %v2147_v9 = vrot.slane %v9785_v60, %v9672_v25 }
 0x1b8   :  { %v4102_v10 = vcombine.low %v2003_v0, %v2007_v1  ;;  %v4103_v11 = vcombine.low %v2011_v2, %v2015_v3  ;;  %v2151_v12 = vrot.slane %v9785_v60, %v9675_v15  ;;  %v2155_v16 = vrot.slane %v9785_v60, %v9678_v26 }
 0x1b9   :  { %v4197_v17 = vcombine.low %v4189_v47, %v4196_v4  ;;  %v4110_v62 = vrot.slane %v4100_v6, %v9696_v33  ;;  %v4117_v61 = vrot.slane %v4101_v7, %v9696_v33  ;;  %v2159_v21 = vrot.slane %v9785_v60, %v9681_v27 }
 0x1ba   :  { %v4124_v23 = vrot.slane %v4102_v10, %v9696_v33  ;;  %v4131_v32 = vrot.slane %v4103_v11, %v9696_v33  ;;  %v2163_v34 = vrot.slane %v9785_v60, %v9684_v28  ;;  %v2167_v35 = vrot.slane %v9785_v60, %v9687_v29 }
 0x1bb   :  { %7056 = vperm.xlu1 %9101, %v4197_v17   ;;  %v4132_v36 = vcombine.low %v4110_v62, %v4117_v61  ;;  %v2171_v39 = vrot.slane %v9785_v60, %v9690_v30  ;;  %v2175_v40 = vrot.slane %v9785_v60, %v9693_v31  ;;  %v4345_v41 = vcombine.low %v2147_v9, %v2151_v12 }
 0x1bc   :  { %v4133_v44 = vcombine.low %v4124_v23, %v4131_v32  ;;  %v4346_v45 = vcombine.low %v2155_v16, %v2159_v21  ;;  %v4347_v46 = vcombine.low %v2163_v34, %v2167_v35  ;;  %vm1038_vm4 = vcmp.eq.s32.totalorder %v9913_v18, %v9669_v24  ;;  %v9969_v34 = vpop.xlane.xlu1 %881 }
 0x1bd   :  { %v4140_v13 = vrot.slane %v4132_v36, %v9696_v33  ;;  %v4348_v48 = vcombine.low %v2171_v39, %v2175_v40  ;;  %v4355_v49 = vrot.slane %v4345_v41, %v9696_v33  ;;  %v8574_v51 = vsel %vm1038_vm4, 1.0, %v12615_v37 }
 0x1be   :  { %v4147_v53 = vrot.slane %v4133_v44, %v9696_v33  ;;  %v4362_v60 = vrot.slane %v4346_v45, %v9696_v33  ;;  %v4369_v54 = vrot.slane %v4347_v46, %v9696_v33  ;;  %8981 = vmatmul.mubr.msk.f32.gmra.mrb[14].mxu1 %vm828_vm2, %v8574_v51  ;;  %v8151_v55 = vsel %vm828_vm2, %v8574_v51, 0.0 }
 0x1bf   :  { %v4376_v56 = vrot.slane %v4348_v48, %v9696_v33  ;;  %v8152_v57 = vadd.f32 %v8151_v55, %v8150_v59  ;;  %vm1039_vm5 = vcmp.eq.s32.totalorder %v9934_v52, %v9669_v24  ;;  %v2083_v58 = vrot.slane %v9762_v42, %v9672_v25 }
 0x1c0   :  { %v4148_v63 = vcombine.low %v4140_v13, %v4147_v53  ;;  %v4377_v0 = vcombine.low %v4355_v49, %v4362_v60  ;;  %v8575_v47 = vsel %vm1039_vm5, 1.0, %v12615_v37  ;;  %v2087_v1 = vrot.slane %v9762_v42, %v9675_v15 }
 0x1c1   :  { %v4378_v2 = vcombine.low %v4369_v54, %v4376_v56  ;;  %8983 = vmatprep.mubr.msk.f32.mxu1 %vm828_vm2, %v8575_v47  ;;  %v8153_v3 = vsel %vm828_vm2, %v8575_v47, 0.0  ;;  %v2091_v59 = vrot.slane %v9762_v42, %v9678_v26  ;;  %v2095_v4 = vrot.slane %v9762_v42, %v9681_v27 }
 0x1c2   :  { %7053 = vperm.xlu1 %9101, %v4148_v63   ;;  %v4385_v6 = vrot.slane %v4377_v0, %v9696_v33  ;;  %v8154_v7 = vadd.f32 %v8153_v3, %v8152_v57  ;;  %v2099_v9 = vrot.slane %v9762_v42, %v9684_v28  ;;  %v2103_v10 = vrot.slane %v9762_v42, %v9687_v29  ;;  %v9995_v0 = vpop.xlane.xlu0 %884 }
 0x1c3   :  { %v4392_v11 = vrot.slane %v4378_v2, %v9696_v33  ;;  %v2107_v12 = vrot.slane %v9762_v42, %v9690_v30  ;;  %v2111_v16 = vrot.slane %v9762_v42, %v9693_v31  ;;  %v4247_v17 = vcombine.low %v2083_v58, %v2087_v1 }
 0x1c4   :  { %v4248_v62 = vcombine.low %v2091_v59, %v2095_v4  ;;  %v4249_v61 = vcombine.low %v2099_v9, %v2103_v10  ;;  %v2211_v21 = vrot.slane %v9819_v38, %v9672_v25  ;;  %v2215_v23 = vrot.slane %v9819_v38, %v9675_v15 }
 0x1c5   :  { %v4393_v32 = vcombine.low %v4385_v6, %v4392_v11  ;;  %v4250_v35 = vcombine.low %v2107_v12, %v2111_v16  ;;  %v4257_v36 = vrot.slane %v4247_v17, %v9696_v33  ;;  %v2219_v39 = vrot.slane %v9819_v38, %v9678_v26 }
 0x1c6   :  { %v4264_v42 = vrot.slane %v4248_v62, %v9696_v33  ;;  %v4271_v40 = vrot.slane %v4249_v61, %v9696_v33  ;;  %v2223_v41 = vrot.slane %v9819_v38, %v9681_v27  ;;  %v2227_v44 = vrot.slane %v9819_v38, %v9684_v28 }
 0x1c7   :  { %7068 = vperm.xlu0 %9102, %v4393_v32   ;;  %v4278_v45 = vrot.slane %v4250_v35, %v9696_v33  ;;  %v2231_v46 = vrot.slane %v9819_v38, %v9687_v29  ;;  %v2235_v13 = vrot.slane %v9819_v38, %v9690_v30  ;;  %v2239_v48 = vrot.slane %v9819_v38, %v9693_v31 }
 0x1c8   :  { %v4279_v49 = vcombine.low %v4257_v36, %v4264_v42  ;;  %v4443_v51 = vcombine.low %v2211_v21, %v2215_v23  ;;  %v4444_v53 = vcombine.low %v2219_v39, %v2223_v41  ;;  %vm1040_vm6 = vcmp.eq.s32.totalorder %v9969_v34, %v9669_v24 }
 0x1c9   :  { %v4280_v60 = vcombine.low %v4271_v40, %v4278_v45  ;;  %v4445_v54 = vcombine.low %v2227_v44, %v2231_v46  ;;  %v4446_v55 = vcombine.low %v2235_v13, %v2239_v48  ;;  %v8576_v56 = vsel %vm1040_vm6, 1.0, %v12615_v37  ;;  %v10029_v46 = vpop.xlane.xlu1 %887 }
 0x1ca   :  { %v4287_v57 = vrot.slane %v4279_v49, %v9696_v33  ;;  %v4453_v58 = vrot.slane %v4443_v51, %v9696_v33  ;;  %v4460_v63 = vrot.slane %v4444_v53, %v9696_v33  ;;  %8984 = vmatmul.mubr.msk.f32.gmra.mrb[16].mxu1 %vm828_vm2, %v8576_v56  ;;  %v8155_v38 = vsel %vm828_vm2, %v8576_v56, 0.0 }
 0x1cb   :  { %v4294_v47 = vrot.slane %v4280_v60, %v9696_v33  ;;  %v4467_v1 = vrot.slane %v4445_v54, %v9696_v33  ;;  %v4474_v2 = vrot.slane %v4446_v55, %v9696_v33  ;;  %v8156_v3 = vadd.f32 %v8155_v38, %v8154_v7  ;;  %v10042_v55 = vpop.xlane.xlu0 %890 }
 0x1cc   :  { %v4475_v59 = vcombine.low %v4453_v58, %v4460_v63  ;;  %vm1041_vm7 = vcmp.eq.s32.totalorder %v9995_v0, %v9669_v24  ;;  %v2051_v4 = vrot.slane %v9747_v14, %v9672_v25  ;;  %v2055_v6 = vrot.slane %v9747_v14, %v9675_v15 }
 0x1cd   :  { %v4295_v9 = vcombine.low %v4287_v57, %v4294_v47  ;;  %v4476_v10 = vcombine.low %v4467_v1, %v4474_v2  ;;  %v8577_v11 = vsel %vm1041_vm7, 1.0, %v12615_v37  ;;  %v2059_v12 = vrot.slane %v9747_v14, %v9678_v26 }
 0x1ce   :  { %v4483_v16 = vrot.slane %v4475_v59, %v9696_v33  ;;  %8986 = vmatprep.mubr.msk.f32.mxu1 %vm828_vm2, %v8577_v11  ;;  %v8157_v7 = vsel %vm828_vm2, %v8577_v11, 0.0  ;;  %v2063_v17 = vrot.slane %v9747_v14, %v9681_v27  ;;  %v2067_v62 = vrot.slane %v9747_v14, %v9684_v28 }
 0x1cf   :  { %7062 = vperm.xlu1 %9101, %v4295_v9   ;;  %v4490_v61 = vrot.slane %v4476_v10, %v9696_v33  ;;  %v8158_v21 = vadd.f32 %v8157_v7, %v8156_v3  ;;  %v2071_v23 = vrot.slane %v9747_v14, %v9687_v29  ;;  %v2075_v32 = vrot.slane %v9747_v14, %v9690_v30 }
 0x1d0   :  { %v2079_v35 = vrot.slane %v9747_v14, %v9693_v31  ;;  %v4198_v36 = vcombine.low %v2051_v4, %v2055_v6  ;;  %v4199_v39 = vcombine.low %v2059_v12, %v2063_v17  ;;  %v2275_v42 = vrot.slane %v9853_v8, %v9672_v25 }
 0x1d1   :  { %v4491_v40 = vcombine.low %v4483_v16, %v4490_v61  ;;  %v4200_v41 = vcombine.low %v2067_v62, %v2071_v23  ;;  %v2279_v44 = vrot.slane %v9853_v8, %v9675_v15  ;;  %v2283_v45 = vrot.slane %v9853_v8, %v9678_v26 }
 0x1d2   :  { %v4201_v13 = vcombine.low %v2075_v32, %v2079_v35  ;;  %v4208_v48 = vrot.slane %v4198_v36, %v9696_v33  ;;  %v4215_v14 = vrot.slane %v4199_v39, %v9696_v33  ;;  %v2287_v49 = vrot.slane %v9853_v8, %v9681_v27 }
 0x1d3   :  { %7074 = vperm.xlu0 %9102, %v4491_v40   ;;  %v4222_v51 = vrot.slane %v4200_v41, %v9696_v33  ;;  %v2291_v53 = vrot.slane %v9853_v8, %v9684_v28  ;;  %v2295_v60 = vrot.slane %v9853_v8, %v9687_v29  ;;  %v2299_v54 = vrot.slane %v9853_v8, %v9690_v30 }
 0x1d4   :  { %v4229_v56 = vrot.slane %v4201_v13, %v9696_v33  ;;  %v4230_v57 = vcombine.low %v4208_v48, %v4215_v14  ;;  %v2303_v58 = vrot.slane %v9853_v8, %v9693_v31  ;;  %v4541_v63 = vcombine.low %v2275_v42, %v2279_v44 }
 0x1d5   :  { %v4542_v38 = vcombine.low %v2283_v45, %v2287_v49  ;;  %v4543_v47 = vcombine.low %v2291_v53, %v2295_v60  ;;  %vm1042_vm8 = vcmp.eq.s32.totalorder %v10029_v46, %v9669_v24  ;;  %vm1043_vm9 = vcmp.eq.s32.totalorder %v10042_v55, %v9669_v24  ;;  %v10085_v60 = vpop.xlane.xlu1 %893 }
 0x1d6   :  { %v4231_v1 = vcombine.low %v4222_v51, %v4229_v56  ;;  %v4238_v2 = vrot.slane %v4230_v57, %v9696_v33  ;;  %v4544_v3 = vcombine.low %v2299_v54, %v2303_v58  ;;  %v4551_v59 = vrot.slane %v4541_v63, %v9696_v33 }
 0x1d7   :  { %v4558_v4 = vrot.slane %v4542_v38, %v9696_v33  ;;  %v4565_v6 = vrot.slane %v4543_v47, %v9696_v33  ;;  %v8578_v8 = vsel %vm1042_vm8, 1.0, %v12615_v37  ;;  %v8579_v9 = vsel %vm1043_vm9, 1.0, %v12615_v37 }
 0x1d8   :  { %v4245_v10 = vrot.slane %v4231_v1, %v9696_v33  ;;  %v4572_v11 = vrot.slane %v4544_v3, %v9696_v33  ;;  %8987 = vmatmul.mubr.msk.f32.gmra.mrb[18].mxu1 %vm828_vm2, %v8578_v8  ;;  %v8159_v12 = vsel %vm828_vm2, %v8578_v8, 0.0  ;;  %v8161_v16 = vsel %vm828_vm2, %v8579_v9, 0.0 }
 0x1d9   :  { %v4573_v7 = vcombine.low %v4551_v59, %v4558_v4  ;;  %v8160_v17 = vadd.f32 %v8159_v12, %v8158_v21  ;;  %8989 = vmatprep.mubr.msk.f32.mxu1 %vm828_vm2, %v8579_v9  ;;  %v2115_v62 = vrot.slane %v9764_v43, %v9672_v25  ;;  %v2119_v61 = vrot.slane %v9764_v43, %v9675_v15 }
 0x1da   :  { %v4246_v23 = vcombine.low %v4238_v2, %v4245_v10  ;;  %v4574_v32 = vcombine.low %v4565_v6, %v4572_v11  ;;  %v2123_v35 = vrot.slane %v9764_v43, %v9678_v26  ;;  %v2127_v36 = vrot.slane %v9764_v43, %v9681_v27 }
 0x1db   :  { %v4581_v39 = vrot.slane %v4573_v7, %v9696_v33  ;;  %v8162_v42 = vadd.f32 %v8161_v16, %v8160_v17  ;;  %v2131_v21 = vrot.slane %v9764_v43, %v9684_v28  ;;  %v2135_v40 = vrot.slane %v9764_v43, %v9687_v29  ;;  %v10111_v17 = vpop.xlane.xlu0 %896 }
 0x1dc   :  { %7059 = vperm.xlu1 %9101, %v4246_v23   ;;  %v4588_v41 = vrot.slane %v4574_v32, %v9696_v33  ;;  %v2139_v44 = vrot.slane %v9764_v43, %v9690_v30  ;;  %v2143_v45 = vrot.slane %v9764_v43, %v9693_v31  ;;  %v4296_v13 = vcombine.low %v2115_v62, %v2119_v61 }
 0x1dd   :  { %v4297_v48 = vcombine.low %v2123_v35, %v2127_v36  ;;  %v4298_v14 = vcombine.low %v2131_v21, %v2135_v40  ;;  %v2339_v49 = vrot.slane %v9913_v18, %v9672_v25  ;;  %v2343_v51 = vrot.slane %v9913_v18, %v9675_v15 }
 0x1de   :  { %v4589_v53 = vcombine.low %v4581_v39, %v4588_v41  ;;  %v4299_v54 = vcombine.low %v2139_v44, %v2143_v45  ;;  %v4306_v56 = vrot.slane %v4296_v13, %v9696_v33  ;;  %v2347_v57 = vrot.slane %v9913_v18, %v9678_v26 }
 0x1df   :  { %v4313_v43 = vrot.slane %v4297_v48, %v9696_v33  ;;  %v4320_v58 = vrot.slane %v4298_v14, %v9696_v33  ;;  %v2351_v63 = vrot.slane %v9913_v18, %v9681_v27  ;;  %v2355_v38 = vrot.slane %v9913_v18, %v9684_v28 }
 0x1e0   :  { %7080 = vperm.xlu0 %9102, %v4589_v53   ;;  %v4327_v47 = vrot.slane %v4299_v54, %v9696_v33  ;;  %v2359_v1 = vrot.slane %v9913_v18, %v9687_v29  ;;  %v2363_v2 = vrot.slane %v9913_v18, %v9690_v30  ;;  %v2367_v3 = vrot.slane %v9913_v18, %v9693_v31 }
 0x1e1   :  { %v4328_v59 = vcombine.low %v4306_v56, %v4313_v43  ;;  %v4639_v4 = vcombine.low %v2339_v49, %v2343_v51  ;;  %v4640_v6 = vcombine.low %v2347_v57, %v2351_v63  ;;  %vm1044_vm10 = vcmp.eq.s32.totalorder %v10085_v60, %v9669_v24 }
 0x1e2   :  { %v4329_v8 = vcombine.low %v4320_v58, %v4327_v47  ;;  %v4641_v9 = vcombine.low %v2355_v38, %v2359_v1  ;;  %v4642_v10 = vcombine.low %v2363_v2, %v2367_v3  ;;  %v8580_v11 = vsel %vm1044_vm10, 1.0, %v12615_v37  ;;  %v10145_v1 = vpop.xlane.xlu1 %899 }
 0x1e3   :  { %v4336_v12 = vrot.slane %v4328_v59, %v9696_v33  ;;  %v4649_v16 = vrot.slane %v4639_v4, %v9696_v33  ;;  %v4656_v7 = vrot.slane %v4640_v6, %v9696_v33  ;;  %8990 = vmatmul.mubr.msk.f32.gmra.mrb[20].mxu1 %vm828_vm2, %v8580_v11  ;;  %v8163_v18 = vsel %vm828_vm2, %v8580_v11, 0.0 }
 0x1e4   :  { %v4343_v62 = vrot.slane %v4329_v8, %v9696_v33  ;;  %v4663_v61 = vrot.slane %v4641_v9, %v9696_v33  ;;  %v4670_v23 = vrot.slane %v4642_v10, %v9696_v33  ;;  %v8164_v32 = vadd.f32 %v8163_v18, %v8162_v42  ;;  %v10158_v10 = vpop.xlane.xlu0 %902 }
 0x1e5   :  { %v4671_v35 = vcombine.low %v4649_v16, %v4656_v7  ;;  %vm1045_vm11 = vcmp.eq.s32.totalorder %v10111_v17, %v9669_v24  ;;  %v2179_v36 = vrot.slane %v9799_v5, %v9672_v25  ;;  %v2183_v39 = vrot.slane %v9799_v5, %v9675_v15 }
 0x1e6   :  { %v4344_v21 = vcombine.low %v4336_v12, %v4343_v62  ;;  %v4672_v40 = vcombine.low %v4663_v61, %v4670_v23  ;;  %v8581_v41 = vsel %vm1045_vm11, 1.0, %v12615_v37  ;;  %v2187_v44 = vrot.slane %v9799_v5, %v9678_v26 }
 0x1e7   :  { %v4679_v45 = vrot.slane %v4671_v35, %v9696_v33  ;;  %8992 = vmatprep.mubr.msk.f32.mxu1 %vm828_vm2, %v8581_v41  ;;  %v8165_v42 = vsel %vm828_vm2, %v8581_v41, 0.0  ;;  %v2191_v13 = vrot.slane %v9799_v5, %v9681_v27  ;;  %v2195_v48 = vrot.slane %v9799_v5, %v9684_v28 }
 0x1e8   :  { %7065 = vperm.xlu1 %9101, %v4344_v21   ;;  %v4686_v14 = vrot.slane %v4672_v40, %v9696_v33  ;;  %v8166_v49 = vadd.f32 %v8165_v42, %v8164_v32  ;;  %v2199_v51 = vrot.slane %v9799_v5, %v9687_v29  ;;  %v2203_v53 = vrot.slane %v9799_v5, %v9690_v30 }
 0x1e9   :  { %v2207_v54 = vrot.slane %v9799_v5, %v9693_v31  ;;  %v4394_v56 = vcombine.low %v2179_v36, %v2183_v39  ;;  %v4395_v57 = vcombine.low %v2187_v44, %v2191_v13  ;;  %v2403_v43 = vrot.slane %v9969_v34, %v9672_v25 }
 0x1ea   :  { %v4687_v58 = vcombine.low %v4679_v45, %v4686_v14  ;;  %v4396_v63 = vcombine.low %v2195_v48, %v2199_v51  ;;  %v2407_v38 = vrot.slane %v9969_v34, %v9675_v15  ;;  %v2411_v47 = vrot.slane %v9969_v34, %v9678_v26 }
 0x1eb   :  { %v4397_v2 = vcombine.low %v2203_v53, %v2207_v54  ;;  %v4404_v3 = vrot.slane %v4394_v56, %v9696_v33  ;;  %v4411_v5 = vrot.slane %v4395_v57, %v9696_v33  ;;  %v2415_v59 = vrot.slane %v9969_v34, %v9681_v27 }
 0x1ec   :  { %7086 = vperm.xlu0 %9102, %v4687_v58   ;;  %v4418_v4 = vrot.slane %v4396_v63, %v9696_v33  ;;  %v2419_v6 = vrot.slane %v9969_v34, %v9684_v28  ;;  %v2423_v8 = vrot.slane %v9969_v34, %v9687_v29  ;;  %v2427_v9 = vrot.slane %v9969_v34, %v9690_v30 }
 0x1ed   :  { %v4425_v11 = vrot.slane %v4397_v2, %v9696_v33  ;;  %v4426_v12 = vcombine.low %v4404_v3, %v4411_v5  ;;  %v2431_v16 = vrot.slane %v9969_v34, %v9693_v31  ;;  %v4737_v7 = vcombine.low %v2403_v43, %v2407_v38 }
 0x1ee   :  { %v4738_v18 = vcombine.low %v2411_v47, %v2415_v59  ;;  %v4739_v62 = vcombine.low %v2419_v6, %v2423_v8  ;;  %vm1046_vm12 = vcmp.eq.s32.totalorder %v10145_v1, %v9669_v24  ;;  %vm1047_vm13 = vcmp.eq.s32.totalorder %v10158_v10, %v9669_v24  ;;  %v10201_v8 = vpop.xlane.xlu1 %905 }
 0x1ef   :  { %v4427_v61 = vcombine.low %v4418_v4, %v4425_v11  ;;  %v4434_v23 = vrot.slane %v4426_v12, %v9696_v33  ;;  %v4740_v32 = vcombine.low %v2427_v9, %v2431_v16  ;;  %v4747_v35 = vrot.slane %v4737_v7, %v9696_v33 }
 0x1f0   :  { %v4754_v36 = vrot.slane %v4738_v18, %v9696_v33  ;;  %v4761_v39 = vrot.slane %v4739_v62, %v9696_v33  ;;  %v8582_v34 = vsel %vm1046_vm12, 1.0, %v12615_v37  ;;  %v8583_v21 = vsel %vm1047_vm13, 1.0, %v12615_v37 }
 0x1f1   :  { %v4441_v40 = vrot.slane %v4427_v61, %v9696_v33  ;;  %v4768_v41 = vrot.slane %v4740_v32, %v9696_v33  ;;  %8993 = vmatmul.mubr.msk.f32.gmra.mrb[22].mxu1 %vm828_vm2, %v8582_v34  ;;  %v8167_v44 = vsel %vm828_vm2, %v8582_v34, 0.0  ;;  %v8169_v45 = vsel %vm828_vm2, %v8583_v21, 0.0 }
 0x1f2   :  { %v4769_v42 = vcombine.low %v4747_v35, %v4754_v36  ;;  %v8168_v13 = vadd.f32 %v8167_v44, %v8166_v49  ;;  %8995 = vmatprep.mubr.msk.f32.mxu1 %vm828_vm2, %v8583_v21  ;;  %v2243_v48 = vrot.slane %v9832_v50, %v9672_v25  ;;  %v2247_v14 = vrot.slane %v9832_v50, %v9675_v15 }
 0x1f3   :  { %v4442_v51 = vcombine.low %v4434_v23, %v4441_v40  ;;  %v4770_v53 = vcombine.low %v4761_v39, %v4768_v41  ;;  %v2251_v54 = vrot.slane %v9832_v50, %v9678_v26  ;;  %v2255_v56 = vrot.slane %v9832_v50, %v9681_v27 }
 0x1f4   :  { %v4777_v57 = vrot.slane %v4769_v42, %v9696_v33  ;;  %v8170_v43 = vadd.f32 %v8169_v45, %v8168_v13  ;;  %v2259_v49 = vrot.slane %v9832_v50, %v9684_v28  ;;  %v2263_v58 = vrot.slane %v9832_v50, %v9687_v29  ;;  %v10227_v13 = vpop.xlane.xlu0 %908 }
 0x1f5   :  { %7071 = vperm.xlu1 %9101, %v4442_v51   ;;  %v4784_v63 = vrot.slane %v4770_v53, %v9696_v33  ;;  %v2267_v38 = vrot.slane %v9832_v50, %v9690_v30  ;;  %v2271_v47 = vrot.slane %v9832_v50, %v9693_v31  ;;  %v4492_v2 = vcombine.low %v2243_v48, %v2247_v14 }
 0x1f6   :  { %v4493_v3 = vcombine.low %v2251_v54, %v2255_v56  ;;  %v4494_v5 = vcombine.low %v2259_v49, %v2263_v58  ;;  %v2467_v59 = vrot.slane %v10029_v46, %v9672_v25  ;;  %v2471_v4 = vrot.slane %v10029_v46, %v9675_v15 }
 0x1f7   :  { %v4785_v6 = vcombine.low %v4777_v57, %v4784_v63  ;;  %v4495_v9 = vcombine.low %v2267_v38, %v2271_v47  ;;  %v4502_v11 = vrot.slane %v4492_v2, %v9696_v33  ;;  %v2475_v12 = vrot.slane %v10029_v46, %v9678_v26 }
 0x1f8   :  { %v4509_v50 = vrot.slane %v4493_v3, %v9696_v33  ;;  %v4516_v16 = vrot.slane %v4494_v5, %v9696_v33  ;;  %v2479_v7 = vrot.slane %v10029_v46, %v9681_v27  ;;  %v2483_v18 = vrot.slane %v10029_v46, %v9684_v28 }
 0x1f9   :  { %7092 = vperm.xlu0 %9102, %v4785_v6   ;;  %v4523_v62 = vrot.slane %v4495_v9, %v9696_v33  ;;  %v2487_v61 = vrot.slane %v10029_v46, %v9687_v29  ;;  %v2491_v23 = vrot.slane %v10029_v46, %v9690_v30  ;;  %v2495_v32 = vrot.slane %v10029_v46, %v9693_v31 }
 0x1fa   :  { %v4524_v35 = vcombine.low %v4502_v11, %v4509_v50  ;;  %v4835_v36 = vcombine.low %v2467_v59, %v2471_v4  ;;  %v4836_v39 = vcombine.low %v2475_v12, %v2479_v7  ;;  %vm1048_vm14 = vcmp.eq.s32.totalorder %v10201_v8, %v9669_v24 }
 0x1fb   :  { %v4525_v34 = vcombine.low %v4516_v16, %v4523_v62  ;;  %v4837_v21 = vcombine.low %v2483_v18, %v2487_v61  ;;  %v4838_v40 = vcombine.low %v2491_v23, %v2495_v32  ;;  %v8584_v41 = vsel %vm1048_vm14, 1.0, %v12615_v37  ;;  %v10261_v61 = vpop.xlane.xlu1 %911 }
 0x1fc   :  { %v4532_v44 = vrot.slane %v4524_v35, %v9696_v33  ;;  %v4845_v45 = vrot.slane %v4835_v36, %v9696_v33  ;;  %v4852_v42 = vrot.slane %v4836_v39, %v9696_v33  ;;  %8996 = vmatmul.mubr.msk.f32.gmra.mrb[24].mxu1 %vm828_vm2, %v8584_v41  ;;  %v8171_v46 = vsel %vm828_vm2, %v8584_v41, 0.0 }
 0x1fd   :  { %v4539_v48 = vrot.slane %v4525_v34, %v9696_v33  ;;  %v4859_v14 = vrot.slane %v4837_v21, %v9696_v33  ;;  %v4866_v51 = vrot.slane %v4838_v40, %v9696_v33  ;;  %v8172_v53 = vadd.f32 %v8171_v46, %v8170_v43  ;;  %v10274_v40 = vpop.xlane.xlu0 %914 }
 0x1fe   :  { %v4867_v54 = vcombine.low %v4845_v45, %v4852_v42  ;;  %vm1049_vm15 = vcmp.eq.s32.totalorder %v10227_v13, %v9669_v24  ;;  %v2307_v56 = vrot.slane %v9866_v20, %v9672_v25  ;;  %v2311_v57 = vrot.slane %v9866_v20, %v9675_v15 }
 0x1ff   :  { %v4540_v49 = vcombine.low %v4532_v44, %v4539_v48  ;;  %v4868_v58 = vcombine.low %v4859_v14, %v4866_v51  ;;  %v8585_v63 = vsel %vm1049_vm15, 1.0, %v12615_v37  ;;  %v2315_v38 = vrot.slane %v9866_v20, %v9678_v26 }
 0x200   :  { %v4875_v47 = vrot.slane %v4867_v54, %v9696_v33  ;;  %8998 = vmatprep.mubr.msk.f32.mxu1 %vm828_vm2, %v8585_v63  ;;  %v8173_v43 = vsel %vm828_vm2, %v8585_v63, 0.0  ;;  %v2319_v2 = vrot.slane %v9866_v20, %v9681_v27  ;;  %v2323_v3 = vrot.slane %v9866_v20, %v9684_v28 }
 0x201   :  { %7077 = vperm.xlu1 %9101, %v4540_v49   ;;  %v4882_v5 = vrot.slane %v4868_v58, %v9696_v33  ;;  %v8174_v59 = vadd.f32 %v8173_v43, %v8172_v53  ;;  %v2327_v4 = vrot.slane %v9866_v20, %v9687_v29  ;;  %v2331_v6 = vrot.slane %v9866_v20, %v9690_v30 }
 0x202   :  { %v2335_v9 = vrot.slane %v9866_v20, %v9693_v31  ;;  %v4590_v11 = vcombine.low %v2307_v56, %v2311_v57  ;;  %v4591_v12 = vcombine.low %v2315_v38, %v2319_v2  ;;  %v2531_v50 = vrot.slane %v10085_v60, %v9672_v25 }
 0x203   :  { %v4883_v16 = vcombine.low %v4875_v47, %v4882_v5  ;;  %v4592_v7 = vcombine.low %v2323_v3, %v2327_v4  ;;  %v2535_v18 = vrot.slane %v10085_v60, %v9675_v15  ;;  %v2539_v62 = vrot.slane %v10085_v60, %v9678_v26 }
 0x204   :  { %v4593_v23 = vcombine.low %v2331_v6, %v2335_v9  ;;  %v4600_v32 = vrot.slane %v4590_v11, %v9696_v33  ;;  %v4607_v20 = vrot.slane %v4591_v12, %v9696_v33  ;;  %v2543_v35 = vrot.slane %v10085_v60, %v9681_v27 }
 0x205   :  { %7098 = vperm.xlu0 %9102, %v4883_v16   ;;  %v4614_v36 = vrot.slane %v4592_v7, %v9696_v33  ;;  %v2547_v39 = vrot.slane %v10085_v60, %v9684_v28  ;;  %v2551_v34 = vrot.slane %v10085_v60, %v9687_v29  ;;  %v2555_v21 = vrot.slane %v10085_v60, %v9690_v30 }
 0x206   :  { %v4621_v41 = vrot.slane %v4593_v23, %v9696_v33  ;;  %v4622_v44 = vcombine.low %v4600_v32, %v4607_v20  ;;  %v2559_v45 = vrot.slane %v10085_v60, %v9693_v31  ;;  %v4933_v42 = vcombine.low %v2531_v50, %v2535_v18 }
 0x207   :  { %v4934_v46 = vcombine.low %v2539_v62, %v2543_v35  ;;  %v4935_v48 = vcombine.low %v2547_v39, %v2551_v34  ;;  %vm1050_vm1 = vcmp.eq.s32.totalorder %v10261_v61, %v9669_v24  ;;  %vm1051_vm3 = vcmp.eq.s32.totalorder %v10274_v40, %v9669_v24  ;;  %v10317_v34 = vpop.xlane.xlu1 %917 }
 0x208   :  { %v4623_v14 = vcombine.low %v4614_v36, %v4621_v41  ;;  %v4630_v51 = vrot.slane %v4622_v44, %v9696_v33  ;;  %v4936_v53 = vcombine.low %v2555_v21, %v2559_v45  ;;  %v4943_v54 = vrot.slane %v4933_v42, %v9696_v33 }
 0x209   :  { %v4950_v56 = vrot.slane %v4934_v46, %v9696_v33  ;;  %v4957_v57 = vrot.slane %v4935_v48, %v9696_v33  ;;  %v8586_v60 = vsel %vm1050_vm1, 1.0, %v12615_v37  ;;  %v8587_v49 = vsel %vm1051_vm3, 1.0, %v12615_v37 }
 0x20a   :  { %v4637_v58 = vrot.slane %v4623_v14, %v9696_v33  ;;  %v4964_v63 = vrot.slane %v4936_v53, %v9696_v33  ;;  %8999 = vmatmul.mubr.msk.f32.gmra.mrb[26].mxu1 %vm828_vm2, %v8586_v60  ;;  %v8175_v38 = vsel %vm828_vm2, %v8586_v60, 0.0  ;;  %v8177_v47 = vsel %vm828_vm2, %v8587_v49, 0.0 }
 0x20b   :  { %v4965_v43 = vcombine.low %v4943_v54, %v4950_v56  ;;  %v8176_v2 = vadd.f32 %v8175_v38, %v8174_v59  ;;  %9001 = vmatprep.mubr.msk.f32.mxu1 %vm828_vm2, %v8587_v49  ;;  %v2371_v3 = vrot.slane %v9934_v52, %v9672_v25  ;;  %v2375_v5 = vrot.slane %v9934_v52, %v9675_v15 }
 0x20c   :  { %v4638_v4 = vcombine.low %v4630_v51, %v4637_v58  ;;  %v4966_v6 = vcombine.low %v4957_v57, %v4964_v63  ;;  %v2379_v9 = vrot.slane %v9934_v52, %v9678_v26  ;;  %v2383_v11 = vrot.slane %v9934_v52, %v9681_v27 }
 0x20d   :  { %v4973_v12 = vrot.slane %v4965_v43, %v9696_v33  ;;  %v8178_v50 = vadd.f32 %v8177_v47, %v8176_v2  ;;  %v2387_v59 = vrot.slane %v9934_v52, %v9684_v28  ;;  %v2391_v16 = vrot.slane %v9934_v52, %v9687_v29  ;;  %v10343_v2 = vpop.xlane.xlu0 %920 }
 0x20e   :  { %7083 = vperm.xlu1 %9101, %v4638_v4   ;;  %v4980_v7 = vrot.slane %v4966_v6, %v9696_v33  ;;  %v2395_v18 = vrot.slane %v9934_v52, %v9690_v30  ;;  %v2399_v62 = vrot.slane %v9934_v52, %v9693_v31  ;;  %v4688_v23 = vcombine.low %v2371_v3, %v2375_v5 }
 0x20f   :  { %v4689_v32 = vcombine.low %v2379_v9, %v2383_v11  ;;  %v4690_v20 = vcombine.low %v2387_v59, %v2391_v16  ;;  %v2595_v35 = vrot.slane %v10145_v1, %v9672_v25  ;;  %v2599_v36 = vrot.slane %v10145_v1, %v9675_v15 }
 0x210   :  { %v4981_v39 = vcombine.low %v4973_v12, %v4980_v7  ;;  %v4691_v21 = vcombine.low %v2395_v18, %v2399_v62  ;;  %v4698_v41 = vrot.slane %v4688_v23, %v9696_v33  ;;  %v2603_v44 = vrot.slane %v10145_v1, %v9678_v26 }
 0x211   :  { %v4705_v52 = vrot.slane %v4689_v32, %v9696_v33  ;;  %v4712_v45 = vrot.slane %v4690_v20, %v9696_v33  ;;  %v2607_v42 = vrot.slane %v10145_v1, %v9681_v27  ;;  %v2611_v46 = vrot.slane %v10145_v1, %v9684_v28 }
 0x212   :  { %7104 = vperm.xlu0 %9102, %v4981_v39   ;;  %v4719_v48 = vrot.slane %v4691_v21, %v9696_v33  ;;  %v2615_v14 = vrot.slane %v10145_v1, %v9687_v29  ;;  %v2619_v51 = vrot.slane %v10145_v1, %v9690_v30  ;;  %v2623_v53 = vrot.slane %v10145_v1, %v9693_v31 }
 0x213   :  { %v4720_v54 = vcombine.low %v4698_v41, %v4705_v52  ;;  %v5031_v56 = vcombine.low %v2595_v35, %v2599_v36  ;;  %v5032_v57 = vcombine.low %v2603_v44, %v2607_v42  ;;  %vm1052_vm4 = vcmp.eq.s32.totalorder %v10317_v34, %v9669_v24 }
 0x214   :  { %v4721_v60 = vcombine.low %v4712_v45, %v4719_v48  ;;  %v5033_v49 = vcombine.low %v2611_v46, %v2615_v14  ;;  %v5034_v58 = vcombine.low %v2619_v51, %v2623_v53  ;;  %v8588_v63 = vsel %vm1052_vm4, 1.0, %v12615_v37  ;;  %v10377_v14 = vpop.xlane.xlu1 %923  ;;  %v10379_v51 = vpop.xlane.xlu0 %926 }
 0x215   :  { %v4728_v38 = vrot.slane %v4720_v54, %v9696_v33  ;;  %v5041_v47 = vrot.slane %v5031_v56, %v9696_v33  ;;  %v5048_v43 = vrot.slane %v5032_v57, %v9696_v33  ;;  %9002 = vmatmul.mubr.msk.f32.gmra.mrb[28].mxu1 %vm828_vm2, %v8588_v63  ;;  %v8179_v1 = vsel %vm828_vm2, %v8588_v63, 0.0 }
 0x216   :  { %v4735_v3 = vrot.slane %v4721_v60, %v9696_v33  ;;  %v5055_v5 = vrot.slane %v5033_v49, %v9696_v33  ;;  %v5062_v4 = vrot.slane %v5034_v58, %v9696_v33  ;;  %v8180_v6 = vadd.f32 %v8179_v1, %v8178_v50 }
 0x217   :  { %v5063_v9 = vcombine.low %v5041_v47, %v5048_v43  ;;  %vm1053_vm5 = vcmp.eq.s32.totalorder %v10343_v2, %v9669_v24  ;;  %v2435_v11 = vrot.slane %v9995_v0, %v9672_v25  ;;  %v2439_v12 = vrot.slane %v9995_v0, %v9675_v15 }
 0x218   :  { %v4736_v59 = vcombine.low %v4728_v38, %v4735_v3  ;;  %v5064_v16 = vcombine.low %v5055_v5, %v5062_v4  ;;  %v8589_v7 = vsel %vm1053_vm5, 1.0, %v12615_v37  ;;  %v2443_v18 = vrot.slane %v9995_v0, %v9678_v26 }
 0x219   :  { %v5071_v62 = vrot.slane %v5063_v9, %v9696_v33  ;;  %9004 = vmatprep.mubr.msk.f32.mxu1 %vm828_vm2, %v8589_v7  ;;  %v8181_v50 = vsel %vm828_vm2, %v8589_v7, 0.0  ;;  %v2447_v23 = vrot.slane %v9995_v0, %v9681_v27  ;;  %v2451_v32 = vrot.slane %v9995_v0, %v9684_v28 }
 0x21a   :  { %7089 = vperm.xlu1 %9101, %v4736_v59   ;;  %v5078_v20 = vrot.slane %v5064_v16, %v9696_v33  ;;  %v8182_v35 = vadd.f32 %v8181_v50, %v8180_v6  ;;  %v2455_v36 = vrot.slane %v9995_v0, %v9687_v29  ;;  %v2459_v39 = vrot.slane %v9995_v0, %v9690_v30 }
 0x21b   :  { %v2463_v21 = vrot.slane %v9995_v0, %v9693_v31  ;;  %v4786_v41 = vcombine.low %v2435_v11, %v2439_v12  ;;  %v4787_v44 = vcombine.low %v2443_v18, %v2447_v23  ;;  %v2659_v52 = vrot.slane %v10201_v8, %v9672_v25 }
 0x21c   :  { %v5079_v45 = vcombine.low %v5071_v62, %v5078_v20  ;;  %v4788_v42 = vcombine.low %v2451_v32, %v2455_v36  ;;  %v2663_v46 = vrot.slane %v10201_v8, %v9675_v15  ;;  %v2667_v48 = vrot.slane %v10201_v8, %v9678_v26 }
 0x21d   :  { %v4789_v53 = vcombine.low %v2459_v39, %v2463_v21  ;;  %v4796_v0 = vrot.slane %v4786_v41, %v9696_v33  ;;  %v4803_v54 = vrot.slane %v4787_v44, %v9696_v33  ;;  %v2671_v56 = vrot.slane %v10201_v8, %v9681_v27 }
 0x21e   :  { %7110 = vperm.xlu0 %9102, %v5079_v45   ;;  %v4810_v57 = vrot.slane %v4788_v42, %v9696_v33  ;;  %v2675_v60 = vrot.slane %v10201_v8, %v9684_v28  ;;  %v2679_v49 = vrot.slane %v10201_v8, %v9687_v29  ;;  %v2683_v58 = vrot.slane %v10201_v8, %v9690_v30 }
 0x21f   :  { %v4817_v63 = vrot.slane %v4789_v53, %v9696_v33  ;;  %v4818_v38 = vcombine.low %v4796_v0, %v4803_v54  ;;  %v2687_v47 = vrot.slane %v10201_v8, %v9693_v31  ;;  %v5129_v43 = vcombine.low %v2659_v52, %v2663_v46 }
 0x220   :  { %v5130_v1 = vcombine.low %v2667_v48, %v2671_v56  ;;  %v5131_v3 = vcombine.low %v2675_v60, %v2679_v49  ;;  %vm1054_vm6 = vcmp.eq.s32.totalorder %v10377_v14, %v9669_v24  ;;  %vm1055_vm7 = vcmp.eq.s32.totalorder %v10379_v51, %v9669_v24 }
 0x221   :  { %v4819_v5 = vcombine.low %v4810_v57, %v4817_v63  ;;  %v4826_v4 = vrot.slane %v4818_v38, %v9696_v33  ;;  %v5132_v6 = vcombine.low %v2683_v58, %v2687_v47  ;;  %v5139_v9 = vrot.slane %v5129_v43, %v9696_v33  ;;  %v10435_v38 = vpop.xlane.xlu1 %929 }
 0x222   :  { %v5146_v11 = vrot.slane %v5130_v1, %v9696_v33  ;;  %v5153_v12 = vrot.slane %v5131_v3, %v9696_v33  ;;  %v8590_v8 = vsel %vm1054_vm6, 1.0, %v12615_v37  ;;  %v8591_v59 = vsel %vm1055_vm7, 1.0, %v12615_v37  ;;  %v10443_v3 = vpop.xlane.xlu0 %932 }
 0x223   :  { %v4833_v16 = vrot.slane %v4819_v5, %v9696_v33  ;;  %v5160_v7 = vrot.slane %v5132_v6, %v9696_v33  ;;  %9005 = vmatmul.mubr.msk.f32.gmra.mrb[30].mxu1 %vm828_vm2, %v8590_v8  ;;  %v8183_v18 = vsel %vm828_vm2, %v8590_v8, 0.0  ;;  %v8090_v62 = vmul.f32 0.0, %v8591_v59 }
 0x224   :  { %v5161_v50 = vcombine.low %v5139_v9, %v5146_v11  ;;  %v8184_v23 = vadd.f32 %v8183_v18, %v8182_v35  ;;  %9007 = vmatprep.mubr.msk.f32.mxu1 %vm828_vm2, %v8591_v59  ;;  %v2499_v32 = vrot.slane %v10042_v55, %v9672_v25  ;;  %v2503_v20 = vrot.slane %v10042_v55, %v9675_v15 }
 0x225   :  { %v4834_v36 = vcombine.low %v4826_v4, %v4833_v16  ;;  %v5162_v39 = vcombine.low %v5153_v12, %v5160_v7  ;;  %v8185_v21 = vsel %vm828_vm2, %v8090_v62, 0.0  ;;  %v2507_v41 = vrot.slane %v10042_v55, %v9678_v26 }
 0x226   :  { %v5169_v44 = vrot.slane %v5161_v50, %v9696_v33  ;;  %v8186_v52 = vadd.f32 %v8185_v21, %v8184_v23  ;;  %v2511_v35 = vrot.slane %v10042_v55, %v9681_v27  ;;  %v2515_v45 = vrot.slane %v10042_v55, %v9684_v28 }
 0x227   :  { %7095 = vperm.xlu1 %9101, %v4834_v36   ;;  %v5176_v42 = vrot.slane %v5162_v39, %v9696_v33  ;;  %v2519_v46 = vrot.slane %v10042_v55, %v9687_v29  ;;  %v2523_v48 = vrot.slane %v10042_v55, %v9690_v30  ;;  %v2527_v53 = vrot.slane %v10042_v55, %v9693_v31 }
 0x228   :  { %v4884_v0 = vcombine.low %v2499_v32, %v2503_v20  ;;  %v4885_v54 = vcombine.low %v2507_v41, %v2511_v35  ;;  %v2723_v56 = vrot.slane %v10261_v61, %v9672_v25  ;;  %v2727_v57 = vrot.slane %v10261_v61, %v9675_v15 }
 0x229   :  { %v5177_v60 = vcombine.low %v5169_v44, %v5176_v42  ;;  %v4886_v49 = vcombine.low %v2515_v45, %v2519_v46  ;;  %v4887_v58 = vcombine.low %v2523_v48, %v2527_v53  ;;  %v2731_v63 = vrot.slane %v10261_v61, %v9678_v26 }
 0x22a   :  { %v4894_v47 = vrot.slane %v4884_v0, %v9696_v33  ;;  %v4901_v55 = vrot.slane %v4885_v54, %v9696_v33  ;;  %v2735_v43 = vrot.slane %v10261_v61, %v9681_v27  ;;  %v2739_v1 = vrot.slane %v10261_v61, %v9684_v28 }
 0x22b   :  { %7116 = vperm.xlu0 %9102, %v5177_v60   ;;  %v4908_v5 = vrot.slane %v4886_v49, %v9696_v33  ;;  %v4915_v4 = vrot.slane %v4887_v58, %v9696_v33  ;;  %v2743_v6 = vrot.slane %v10261_v61, %v9687_v29  ;;  %v2747_v9 = vrot.slane %v10261_v61, %v9690_v30 }
 0x22c   :  { %v4916_v11 = vcombine.low %v4894_v47, %v4901_v55  ;;  %v2751_v12 = vrot.slane %v10261_v61, %v9693_v31  ;;  %v5227_v8 = vcombine.low %v2723_v56, %v2727_v57  ;;  %v5228_v59 = vcombine.low %v2731_v63, %v2735_v43 }
 0x22d   :  { %v4917_v16 = vcombine.low %v4908_v5, %v4915_v4  ;;  %v5229_v7 = vcombine.low %v2739_v1, %v2743_v6  ;;  %vm1056_vm8 = vcmp.eq.s32.totalorder %v10435_v38, %v9669_v24  ;;  %vm1057_vm9 = vcmp.eq.s32.totalorder %v10443_v3, %v9669_v24 }
 0x22e   :  { %v4924_v18 = vrot.slane %v4916_v11, %v9696_v33  ;;  %v5230_v62 = vcombine.low %v2747_v9, %v2751_v12  ;;  %v5237_v50 = vrot.slane %v5227_v8, %v9696_v33  ;;  %v5244_v23 = vrot.slane %v5228_v59, %v9696_v33  ;;  %v10492_v12 = vpop.xlane.xlu1 %935 }
 0x22f   :  { %v4931_v32 = vrot.slane %v4917_v16, %v9696_v33  ;;  %v5251_v61 = vrot.slane %v5229_v7, %v9696_v33  ;;  %v8592_v20 = vsel %vm1056_vm8, 1.0, %v12615_v37  ;;  %v8593_v36 = vsel %vm1057_vm9, 1.0, %v12615_v37  ;;  %v10500_v7 = vpop.xlane.xlu0 %938 }
 0x230   :  { %v5258_v39 = vrot.slane %v5230_v62, %v9696_v33  ;;  %v5259_v21 = vcombine.low %v5237_v50, %v5244_v23  ;;  %9008 = vmatmul.mubr.msk.f32.gmra.mrb[32].mxu1 %vm828_vm2, %v8592_v20  ;;  %v8091_v41 = vmul.f32 0.0, %v8592_v20  ;;  %v8092_v44 = vmul.f32 0.0, %v8593_v36 }
 0x231   :  { %v4932_v35 = vcombine.low %v4924_v18, %v4931_v32  ;;  %9010 = vmatprep.mubr.msk.f32.mxu1 %vm828_vm2, %v8593_v36  ;;  %v2563_v45 = vrot.slane %v10111_v17, %v9672_v25  ;;  %v2567_v42 = vrot.slane %v10111_v17, %v9675_v15  ;;  %v2571_v46 = vrot.slane %v10111_v17, %v9678_v26 }
 0x232   :  { %v5260_v48 = vcombine.low %v5251_v61, %v5258_v39  ;;  %v5267_v53 = vrot.slane %v5259_v21, %v9696_v33  ;;  %v8187_v0 = vsel %vm828_vm2, %v8091_v41, 0.0  ;;  %v8189_v54 = vsel %vm828_vm2, %v8092_v44, 0.0 }
 0x233   :  { %7101 = vperm.xlu1 %9101, %v4932_v35   ;;  %v8188_v56 = vadd.f32 %v8187_v0, %v8186_v52  ;;  %v2575_v57 = vrot.slane %v10111_v17, %v9681_v27  ;;  %v2579_v60 = vrot.slane %v10111_v17, %v9684_v28  ;;  %v2583_v49 = vrot.slane %v10111_v17, %v9687_v29 }
 0x234   :  { %v5274_v58 = vrot.slane %v5260_v48, %v9696_v33  ;;  %v2587_v63 = vrot.slane %v10111_v17, %v9690_v30  ;;  %v2591_v47 = vrot.slane %v10111_v17, %v9693_v31  ;;  %v4982_v55 = vcombine.low %v2563_v45, %v2567_v42 }
 0x235   :  { %v8190_v43 = vadd.f32 %v8189_v54, %v8188_v56  ;;  %v4983_v52 = vcombine.low %v2571_v46, %v2575_v57  ;;  %v4984_v1 = vcombine.low %v2579_v60, %v2583_v49  ;;  %v2787_v5 = vrot.slane %v10317_v34, %v9672_v25 }
 0x236   :  { %v5275_v4 = vcombine.low %v5267_v53, %v5274_v58  ;;  %v4985_v6 = vcombine.low %v2587_v63, %v2591_v47  ;;  %v4992_v9 = vrot.slane %v4982_v55, %v9696_v33  ;;  %v2791_v11 = vrot.slane %v10317_v34, %v9675_v15 }
 0x237   :  { %v4999_v8 = vrot.slane %v4983_v52, %v9696_v33  ;;  %v5006_v17 = vrot.slane %v4984_v1, %v9696_v33  ;;  %v2795_v59 = vrot.slane %v10317_v34, %v9678_v26  ;;  %v2799_v16 = vrot.slane %v10317_v34, %v9681_v27 }
 0x238   :  { %7122 = vperm.xlu0 %9102, %v5275_v4   ;;  %v5013_v18 = vrot.slane %v4985_v6, %v9696_v33  ;;  %v2803_v62 = vrot.slane %v10317_v34, %v9684_v28  ;;  %v2807_v50 = vrot.slane %v10317_v34, %v9687_v29  ;;  %v2811_v23 = vrot.slane %v10317_v34, %v9690_v30 }
 0x239   :  { %v5014_v32 = vcombine.low %v4992_v9, %v4999_v8  ;;  %v2815_v61 = vrot.slane %v10317_v34, %v9693_v31  ;;  %v5325_v20 = vcombine.low %v2787_v5, %v2791_v11  ;;  %v5326_v36 = vcombine.low %v2795_v59, %v2799_v16 }
 0x23a   :  { %v5015_v39 = vcombine.low %v5006_v17, %v5013_v18  ;;  %v5327_v21 = vcombine.low %v2803_v62, %v2807_v50  ;;  %vm1058_vm10 = vcmp.eq.s32.totalorder %v10492_v12, %v9669_v24  ;;  %vm1059_vm11 = vcmp.eq.s32.totalorder %v10500_v7, %v9669_v24 }
 0x23b   :  { %v5022_v41 = vrot.slane %v5014_v32, %v9696_v33  ;;  %v5328_v44 = vcombine.low %v2811_v23, %v2815_v61  ;;  %v5335_v35 = vrot.slane %v5325_v20, %v9696_v33  ;;  %v5342_v45 = vrot.slane %v5326_v36, %v9696_v33  ;;  %v10550_v61 = vpop.xlane.xlu1 %941 }
 0x23c   :  { %v5029_v42 = vrot.slane %v5015_v39, %v9696_v33  ;;  %v5349_v34 = vrot.slane %v5327_v21, %v9696_v33  ;;  %v8594_v46 = vsel %vm1058_vm10, 1.0, %v12615_v37  ;;  %v8595_v48 = vsel %vm1059_vm11, 1.0, %v12615_v37  ;;  %v10558_v21 = vpop.xlane.xlu0 %944 }
 0x23d   :  { %v5356_v53 = vrot.slane %v5328_v44, %v9696_v33  ;;  %v5357_v0 = vcombine.low %v5335_v35, %v5342_v45  ;;  %9011 = vmatmul.mubr.msk.f32.gmra.mrb[34].mxu1 %vm828_vm2, %v8594_v46  ;;  %v8093_v54 = vmul.f32 0.0, %v8594_v46  ;;  %v8094_v56 = vmul.f32 0.0, %v8595_v48 }
 0x23e   :  { %v5030_v57 = vcombine.low %v5022_v41, %v5029_v42  ;;  %9013 = vmatprep.mubr.msk.f32.mxu1 %vm828_vm2, %v8595_v48  ;;  %v2627_v60 = vrot.slane %v10158_v10, %v9672_v25  ;;  %v2631_v49 = vrot.slane %v10158_v10, %v9675_v15  ;;  %v2635_v58 = vrot.slane %v10158_v10, %v9678_v26 }
 0x23f   :  { %v5358_v63 = vcombine.low %v5349_v34, %v5356_v53  ;;  %v5365_v47 = vrot.slane %v5357_v0, %v9696_v33  ;;  %v8191_v55 = vsel %vm828_vm2, %v8093_v54, 0.0  ;;  %v8193_v52 = vsel %vm828_vm2, %v8094_v56, 0.0 }
 0x240   :  { %7107 = vperm.xlu1 %9101, %v5030_v57   ;;  %v8192_v1 = vadd.f32 %v8191_v55, %v8190_v43  ;;  %v2639_v5 = vrot.slane %v10158_v10, %v9681_v27  ;;  %v2643_v4 = vrot.slane %v10158_v10, %v9684_v28  ;;  %v2647_v6 = vrot.slane %v10158_v10, %v9687_v29 }
 0x241   :  { %v5372_v9 = vrot.slane %v5358_v63, %v9696_v33  ;;  %v2651_v11 = vrot.slane %v10158_v10, %v9690_v30  ;;  %v2655_v8 = vrot.slane %v10158_v10, %v9693_v31  ;;  %v5080_v17 = vcombine.low %v2627_v60, %v2631_v49 }
 0x242   :  { %v8194_v59 = vadd.f32 %v8193_v52, %v8192_v1  ;;  %v5081_v43 = vcombine.low %v2635_v58, %v2639_v5  ;;  %v5082_v16 = vcombine.low %v2643_v4, %v2647_v6  ;;  %v2851_v18 = vrot.slane %v10377_v14, %v9672_v25 }
 0x243   :  { %v5373_v62 = vcombine.low %v5365_v47, %v5372_v9  ;;  %v5083_v50 = vcombine.low %v2651_v11, %v2655_v8  ;;  %v5090_v23 = vrot.slane %v5080_v17, %v9696_v33  ;;  %v2855_v32 = vrot.slane %v10377_v14, %v9675_v15 }
 0x244   :  { %v5097_v20 = vrot.slane %v5081_v43, %v9696_v33  ;;  %v5104_v10 = vrot.slane %v5082_v16, %v9696_v33  ;;  %v2859_v36 = vrot.slane %v10377_v14, %v9678_v26  ;;  %v2863_v39 = vrot.slane %v10377_v14, %v9681_v27 }
 0x245   :  { %7128 = vperm.xlu0 %9102, %v5373_v62   ;;  %v5111_v41 = vrot.slane %v5083_v50, %v9696_v33  ;;  %v2867_v44 = vrot.slane %v10377_v14, %v9684_v28  ;;  %v2871_v35 = vrot.slane %v10377_v14, %v9687_v29  ;;  %v2875_v45 = vrot.slane %v10377_v14, %v9690_v30 }
 0x246   :  { %v5112_v42 = vcombine.low %v5090_v23, %v5097_v20  ;;  %v2879_v34 = vrot.slane %v10377_v14, %v9693_v31  ;;  %v5423_v46 = vcombine.low %v2851_v18, %v2855_v32  ;;  %v5424_v48 = vcombine.low %v2859_v36, %v2863_v39 }
 0x247   :  { %v5113_v53 = vcombine.low %v5104_v10, %v5111_v41  ;;  %v5425_v0 = vcombine.low %v2867_v44, %v2871_v35  ;;  %vm1060_vm12 = vcmp.eq.s32.totalorder %v10550_v61, %v9669_v24  ;;  %vm1061_vm13 = vcmp.eq.s32.totalorder %v10558_v21, %v9669_v24 }
 0x248   :  { %v5120_v54 = vrot.slane %v5112_v42, %v9696_v33  ;;  %v5426_v56 = vcombine.low %v2875_v45, %v2879_v34  ;;  %v5433_v57 = vrot.slane %v5423_v46, %v9696_v33  ;;  %v5440_v60 = vrot.slane %v5424_v48, %v9696_v33  ;;  %v10608_v34 = vpop.xlane.xlu1 %947 }
 0x249   :  { %v5127_v49 = vrot.slane %v5113_v53, %v9696_v33  ;;  %v5447_v14 = vrot.slane %v5425_v0, %v9696_v33  ;;  %v8596_v58 = vsel %vm1060_vm12, 1.0, %v12615_v37  ;;  %v8597_v63 = vsel %vm1061_vm13, 1.0, %v12615_v37  ;;  %v10616_v0 = vpop.xlane.xlu0 %950 }
 0x24a   :  { %v5454_v47 = vrot.slane %v5426_v56, %v9696_v33  ;;  %v5455_v55 = vcombine.low %v5433_v57, %v5440_v60  ;;  %9014 = vmatmul.mubr.msk.f32.gmra.mrb[36].mxu1 %vm828_vm2, %v8596_v58  ;;  %v8095_v52 = vmul.f32 0.0, %v8596_v58  ;;  %v8096_v1 = vmul.f32 0.0, %v8597_v63 }
 0x24b   :  { %v5128_v5 = vcombine.low %v5120_v54, %v5127_v49  ;;  %9016 = vmatprep.mubr.msk.f32.mxu1 %vm828_vm2, %v8597_v63  ;;  %v2691_v4 = vrot.slane %v10227_v13, %v9672_v25  ;;  %v2695_v6 = vrot.slane %v10227_v13, %v9675_v15  ;;  %v2699_v9 = vrot.slane %v10227_v13, %v9678_v26 }
 0x24c   :  { %v5456_v11 = vcombine.low %v5447_v14, %v5454_v47  ;;  %v5463_v8 = vrot.slane %v5455_v55, %v9696_v33  ;;  %v8195_v17 = vsel %vm828_vm2, %v8095_v52, 0.0  ;;  %v8197_v43 = vsel %vm828_vm2, %v8096_v1, 0.0 }
 0x24d   :  { %7113 = vperm.xlu1 %9101, %v5128_v5   ;;  %v8196_v16 = vadd.f32 %v8195_v17, %v8194_v59  ;;  %v2703_v18 = vrot.slane %v10227_v13, %v9681_v27  ;;  %v2707_v62 = vrot.slane %v10227_v13, %v9684_v28  ;;  %v2711_v50 = vrot.slane %v10227_v13, %v9687_v29 }
 0x24e   :  { %v5470_v23 = vrot.slane %v5456_v11, %v9696_v33  ;;  %v2715_v32 = vrot.slane %v10227_v13, %v9690_v30  ;;  %v2719_v20 = vrot.slane %v10227_v13, %v9693_v31  ;;  %v5178_v10 = vcombine.low %v2691_v4, %v2695_v6 }
 0x24f   :  { %v8198_v36 = vadd.f32 %v8197_v43, %v8196_v16  ;;  %v5179_v59 = vcombine.low %v2699_v9, %v2703_v18  ;;  %v5180_v39 = vcombine.low %v2707_v62, %v2711_v50  ;;  %v2915_v41 = vrot.slane %v10435_v38, %v9672_v25 }
 0x250   :  { %v5471_v44 = vcombine.low %v5463_v8, %v5470_v23  ;;  %v5181_v35 = vcombine.low %v2715_v32, %v2719_v20  ;;  %v5188_v45 = vrot.slane %v5178_v10, %v9696_v33  ;;  %v2919_v42 = vrot.slane %v10435_v38, %v9675_v15 }
 0x251   :  { %v5195_v46 = vrot.slane %v5179_v59, %v9696_v33  ;;  %v5202_v13 = vrot.slane %v5180_v39, %v9696_v33  ;;  %v2923_v48 = vrot.slane %v10435_v38, %v9678_v26  ;;  %v2927_v53 = vrot.slane %v10435_v38, %v9681_v27 }
 0x252   :  { %7134 = vperm.xlu0 %9102, %v5471_v44   ;;  %v5209_v54 = vrot.slane %v5181_v35, %v9696_v33  ;;  %v2931_v56 = vrot.slane %v10435_v38, %v9684_v28  ;;  %v2935_v57 = vrot.slane %v10435_v38, %v9687_v29  ;;  %v2939_v60 = vrot.slane %v10435_v38, %v9690_v30 }
 0x253   :  { %v5210_v49 = vcombine.low %v5188_v45, %v5195_v46  ;;  %v2943_v14 = vrot.slane %v10435_v38, %v9693_v31  ;;  %v5521_v58 = vcombine.low %v2915_v41, %v2919_v42  ;;  %v5522_v63 = vcombine.low %v2923_v48, %v2927_v53 }
 0x254   :  { %v5211_v47 = vcombine.low %v5202_v13, %v5209_v54  ;;  %v5523_v55 = vcombine.low %v2931_v56, %v2935_v57  ;;  %vm1062_vm14 = vcmp.eq.s32.totalorder %v10608_v34, %v9669_v24  ;;  %vm1063_vm15 = vcmp.eq.s32.totalorder %v10616_v0, %v9669_v24 }
 0x255   :  { %v5218_v52 = vrot.slane %v5210_v49, %v9696_v33  ;;  %v5524_v1 = vcombine.low %v2939_v60, %v2943_v14  ;;  %v5531_v5 = vrot.slane %v5521_v58, %v9696_v33  ;;  %v5538_v4 = vrot.slane %v5522_v63, %v9696_v33  ;;  %v10666_v14 = vpop.xlane.xlu1 %953 }
 0x256   :  { %v5225_v6 = vrot.slane %v5211_v47, %v9696_v33  ;;  %v5545_v38 = vrot.slane %v5523_v55, %v9696_v33  ;;  %v8598_v9 = vsel %vm1062_vm14, 1.0, %v12615_v37  ;;  %v8599_v11 = vsel %vm1063_vm15, 1.0, %v12615_v37  ;;  %12643 = vst [vmem:[#allocation7_spill] sm:$0xff] %v10666_v14  ;;  %v10674_v55 = vpop.xlane.xlu0 %956 }
 0x257   :  { %v5552_v8 = vrot.slane %v5524_v1, %v9696_v33  ;;  %v5553_v17 = vcombine.low %v5531_v5, %v5538_v4  ;;  %9017 = vmatmul.mubr.msk.f32.gmra.mrb[38].mxu1 %vm828_vm2, %v8598_v9  ;;  %v8097_v43 = vmul.f32 0.0, %v8598_v9  ;;  %v8098_v16 = vmul.f32 0.0, %v8599_v11  ;;  %12644 = vst [vmem:[#allocation8_spill] sm:$0xff] %v10674_v55 }
 0x258   :  { %v5226_v18 = vcombine.low %v5218_v52, %v5225_v6  ;;  %9019 = vmatprep.mubr.msk.f32.mxu1 %vm828_vm2, %v8599_v11  ;;  %v2755_v62 = vrot.slane %v10274_v40, %v9672_v25  ;;  %v2759_v50 = vrot.slane %v10274_v40, %v9675_v15  ;;  %v2763_v23 = vrot.slane %v10274_v40, %v9678_v26 }
 0x259   :  { %v5554_v32 = vcombine.low %v5545_v38, %v5552_v8  ;;  %v5561_v20 = vrot.slane %v5553_v17, %v9696_v33  ;;  %v8199_v10 = vsel %vm828_vm2, %v8097_v43, 0.0  ;;  %v8201_v59 = vsel %vm828_vm2, %v8098_v16, 0.0 }
 0x25a   :  { %7119 = vperm.xlu1 %9101, %v5226_v18   ;;  %v8200_v39 = vadd.f32 %v8199_v10, %v8198_v36  ;;  %v2767_v41 = vrot.slane %v10274_v40, %v9681_v27  ;;  %v2771_v44 = vrot.slane %v10274_v40, %v9684_v28  ;;  %v2775_v35 = vrot.slane %v10274_v40, %v9687_v29 }
 0x25b   :  { %v5568_v45 = vrot.slane %v5554_v32, %v9696_v33  ;;  %v2779_v42 = vrot.slane %v10274_v40, %v9690_v30  ;;  %v2783_v46 = vrot.slane %v10274_v40, %v9693_v31  ;;  %v5276_v13 = vcombine.low %v2755_v62, %v2759_v50 }
 0x25c   :  { %v8202_v48 = vadd.f32 %v8201_v59, %v8200_v39  ;;  %v5277_v36 = vcombine.low %v2763_v23, %v2767_v41  ;;  %v5278_v53 = vcombine.low %v2771_v44, %v2775_v35  ;;  %v2979_v54 = vrot.slane %v10492_v12, %v9672_v25 }
 0x25d   :  { %v5569_v56 = vcombine.low %v5561_v20, %v5568_v45  ;;  %v5279_v57 = vcombine.low %v2779_v42, %v2783_v46  ;;  %v5286_v60 = vrot.slane %v5276_v13, %v9696_v33  ;;  %v2983_v49 = vrot.slane %v10492_v12, %v9675_v15 }
 0x25e   :  { %v5293_v58 = vrot.slane %v5277_v36, %v9696_v33  ;;  %v5300_v40 = vrot.slane %v5278_v53, %v9696_v33  ;;  %v2987_v63 = vrot.slane %v10492_v12, %v9678_v26  ;;  %v2991_v47 = vrot.slane %v10492_v12, %v9681_v27  ;;  %v10707_v36 = vpop.xlane.xlu1 %959 }
 0x25f   :  { %7140 = vperm.xlu0 %9102, %v5569_v56   ;;  %v5307_v52 = vrot.slane %v5279_v57, %v9696_v33  ;;  %v2995_v1 = vrot.slane %v10492_v12, %v9684_v28  ;;  %v2999_v5 = vrot.slane %v10492_v12, %v9687_v29  ;;  %v3003_v4 = vrot.slane %v10492_v12, %v9690_v30 }
 0x260   :  { %v5308_v6 = vcombine.low %v5286_v60, %v5293_v58  ;;  %v3007_v38 = vrot.slane %v10492_v12, %v9693_v31  ;;  %v5619_v9 = vcombine.low %v2979_v54, %v2983_v49  ;;  %v5620_v11 = vcombine.low %v2987_v63, %v2991_v47  ;;  %12645 = vst [vmem:[#allocation9_spill] sm:$0xff] %v10707_v36 }
 0x261   :  { %v5309_v8 = vcombine.low %v5300_v40, %v5307_v52  ;;  %v5621_v17 = vcombine.low %v2995_v1, %v2999_v5  ;;  %vm1064_vm1 = vcmp.eq.s32.totalorder %v10666_v14, %v9669_v24  ;;  %vm1065_vm3 = vcmp.eq.s32.totalorder %v10674_v55, %v9669_v24 }
 0x262   :  { %v5316_v43 = vrot.slane %v5308_v6, %v9696_v33  ;;  %v5622_v16 = vcombine.low %v3003_v4, %v3007_v38  ;;  %v5629_v18 = vrot.slane %v5619_v9, %v9696_v33  ;;  %v5636_v62 = vrot.slane %v5620_v11, %v9696_v33 }
 0x263   :  { %v5323_v50 = vrot.slane %v5309_v8, %v9696_v33  ;;  %v5643_v12 = vrot.slane %v5621_v17, %v9696_v33  ;;  %v8600_v23 = vsel %vm1064_vm1, 1.0, %v12615_v37  ;;  %v8601_v32 = vsel %vm1065_vm3, 1.0, %v12615_v37  ;;  %v10732_v17 = vpop.xlane.xlu0 %962 }
 0x264   :  { %v5650_v20 = vrot.slane %v5622_v16, %v9696_v33  ;;  %v5651_v10 = vcombine.low %v5629_v18, %v5636_v62  ;;  %9020 = vmatmul.mubr.msk.f32.gmra.mrb[40].mxu1 %vm828_vm2, %v8600_v23  ;;  %v8099_v59 = vmul.f32 0.0, %v8600_v23  ;;  %v8100_v39 = vmul.f32 0.0, %v8601_v32  ;;  %12646 = vst [vmem:[#allocation10_spill] sm:$0xff] %v10732_v17 }
 0x265   :  { %v5324_v41 = vcombine.low %v5316_v43, %v5323_v50  ;;  %9022 = vmatprep.mubr.msk.f32.mxu1 %vm828_vm2, %v8601_v32  ;;  %v2819_v44 = vrot.slane %v10343_v2, %v9672_v25  ;;  %v2823_v35 = vrot.slane %v10343_v2, %v9675_v15  ;;  %v2827_v45 = vrot.slane %v10343_v2, %v9678_v26  ;;  %v10741_v50 = vpop.xlane.xlu1 %965 }
 0x266   :  { %v5652_v42 = vcombine.low %v5643_v12, %v5650_v20  ;;  %v5659_v46 = vrot.slane %v5651_v10, %v9696_v33  ;;  %v8203_v13 = vsel %vm828_vm2, %v8099_v59, 0.0  ;;  %v8205_v53 = vsel %vm828_vm2, %v8100_v39, 0.0  ;;  %12647 = vst [vmem:[#allocation11_spill] sm:$0xff] %v10741_v50 }
 0x267   :  { %7125 = vperm.xlu1 %9101, %v5324_v41   ;;  %v8204_v54 = vadd.f32 %v8203_v13, %v8202_v48  ;;  %v2831_v56 = vrot.slane %v10343_v2, %v9681_v27  ;;  %v2835_v57 = vrot.slane %v10343_v2, %v9684_v28  ;;  %v2839_v60 = vrot.slane %v10343_v2, %v9687_v29 }
 0x268   :  { %v5666_v49 = vrot.slane %v5652_v42, %v9696_v33  ;;  %v2843_v58 = vrot.slane %v10343_v2, %v9690_v30  ;;  %v2847_v40 = vrot.slane %v10343_v2, %v9693_v31  ;;  %v5374_v63 = vcombine.low %v2819_v44, %v2823_v35 }
 0x269   :  { %v8206_v47 = vadd.f32 %v8205_v53, %v8204_v54  ;;  %v5375_v48 = vcombine.low %v2827_v45, %v2831_v56  ;;  %v5376_v52 = vcombine.low %v2835_v57, %v2839_v60  ;;  %v2947_v1 = vrot.slane %v10443_v3, %v9672_v25 }
 0x26a   :  { %v5667_v5 = vcombine.low %v5659_v46, %v5666_v49  ;;  %v5377_v4 = vcombine.low %v2843_v58, %v2847_v40  ;;  %v5384_v6 = vrot.slane %v5374_v63, %v9696_v33  ;;  %v2951_v38 = vrot.slane %v10443_v3, %v9675_v15  ;;  %v10765_v40 = vpop.xlane.xlu1 %971 }
 0x26b   :  { %v5391_v9 = vrot.slane %v5375_v48, %v9696_v33  ;;  %v5398_v11 = vrot.slane %v5376_v52, %v9696_v33  ;;  %v2955_v2 = vrot.slane %v10443_v3, %v9678_v26  ;;  %v2959_v8 = vrot.slane %v10443_v3, %v9681_v27  ;;  %12648 = vst [vmem:[#allocation12_spill] sm:$0xff] %v10765_v40 }
 0x26c   :  { %7146 = vperm.xlu0 %9102, %v5667_v5   ;;  %v5405_v43 = vrot.slane %v5377_v4, %v9696_v33  ;;  %v2963_v16 = vrot.slane %v10443_v3, %v9684_v28  ;;  %v2967_v18 = vrot.slane %v10443_v3, %v9687_v29  ;;  %v2971_v62 = vrot.slane %v10443_v3, %v9690_v30 }
 0x26d   :  { %v5406_v12 = vcombine.low %v5384_v6, %v5391_v9  ;;  %v2975_v23 = vrot.slane %v10443_v3, %v9693_v31  ;;  %v5570_v32 = vcombine.low %v2947_v1, %v2951_v38  ;;  %v5571_v20 = vcombine.low %v2955_v2, %v2959_v8 }
 0x26e   :  { %v5407_v10 = vcombine.low %v5398_v11, %v5405_v43  ;;  %v5572_v59 = vcombine.low %v2963_v16, %v2967_v18  ;;  %vm1066_vm4 = vcmp.eq.s32.totalorder %v10707_v36, %v9669_v24  ;;  %vm1067_vm5 = vcmp.eq.s32.totalorder %v10732_v17, %v9669_v24 }
 0x26f   :  { %v5414_v39 = vrot.slane %v5406_v12, %v9696_v33  ;;  %v5573_v41 = vcombine.low %v2971_v62, %v2975_v23  ;;  %v5580_v44 = vrot.slane %v5570_v32, %v9696_v33  ;;  %v5587_v35 = vrot.slane %v5571_v20, %v9696_v33 }
 0x270   :  { %v5421_v45 = vrot.slane %v5407_v10, %v9696_v33  ;;  %v5594_v3 = vrot.slane %v5572_v59, %v9696_v33  ;;  %v8602_v42 = vsel %vm1066_vm4, 1.0, %v12615_v37  ;;  %v8603_v46 = vsel %vm1067_vm5, 1.0, %v12615_v37 }
 0x271   :  { %v5601_v13 = vrot.slane %v5573_v41, %v9696_v33  ;;  %v5602_v53 = vcombine.low %v5580_v44, %v5587_v35  ;;  %9023 = vmatmul.mubr.msk.f32.gmra.mrb[42].mxu1 %vm828_vm2, %v8602_v42  ;;  %v8101_v54 = vmul.f32 0.0, %v8602_v42  ;;  %v8102_v56 = vmul.f32 0.0, %v8603_v46  ;;  %v10794_v41 = vpop.xlane.xlu1 %977 }
 0x272   :  { %v5422_v57 = vcombine.low %v5414_v39, %v5421_v45  ;;  %9025 = vmatprep.mubr.msk.f32.mxu1 %vm828_vm2, %v8603_v46  ;;  %v2883_v60 = vrot.slane %v10379_v51, %v9672_v25  ;;  %v2887_v49 = vrot.slane %v10379_v51, %v9675_v15  ;;  %v2891_v58 = vrot.slane %v10379_v51, %v9678_v26  ;;  %v10792_v39 = vpop.xlane.xlu0 %968 }
 0x273   :  { %v5603_v63 = vcombine.low %v5594_v3, %v5601_v13  ;;  %v5610_v48 = vrot.slane %v5602_v53, %v9696_v33  ;;  %v8207_v52 = vsel %vm828_vm2, %v8101_v54, 0.0  ;;  %v8209_v1 = vsel %vm828_vm2, %v8102_v56, 0.0  ;;  %12649 = vst [vmem:[#allocation13_spill] sm:$0xff] %v10792_v39 }
 0x274   :  { %7131 = vperm.xlu1 %9101, %v5422_v57   ;;  %v8208_v5 = vadd.f32 %v8207_v52, %v8206_v47  ;;  %v2895_v4 = vrot.slane %v10379_v51, %v9681_v27  ;;  %v2899_v6 = vrot.slane %v10379_v51, %v9684_v28  ;;  %v2903_v38 = vrot.slane %v10379_v51, %v9687_v29 }
 0x275   :  { %v5617_v9 = vrot.slane %v5603_v63, %v9696_v33  ;;  %v2907_v11 = vrot.slane %v10379_v51, %v9690_v30  ;;  %v2911_v2 = vrot.slane %v10379_v51, %v9693_v31  ;;  %v5472_v8 = vcombine.low %v2883_v60, %v2887_v49 }
 0x276   :  { %v8210_v43 = vadd.f32 %v8209_v1, %v8208_v5  ;;  %v5473_v47 = vcombine.low %v2891_v58, %v2895_v4  ;;  %v5474_v16 = vcombine.low %v2899_v6, %v2903_v38  ;;  %v3043_v18 = vrot.slane %v10550_v61, %v9672_v25  ;;  %v10818_v38 = vpop.xlane.xlu1 %983 }
 0x277   :  { %v5618_v62 = vcombine.low %v5610_v48, %v5617_v9  ;;  %v5475_v12 = vcombine.low %v2907_v11, %v2911_v2  ;;  %v5482_v23 = vrot.slane %v5472_v8, %v9696_v33  ;;  %v3047_v32 = vrot.slane %v10550_v61, %v9675_v15 }
 0x278   :  { %v5489_v20 = vrot.slane %v5473_v47, %v9696_v33  ;;  %v5496_v10 = vrot.slane %v5474_v16, %v9696_v33  ;;  %v3051_v51 = vrot.slane %v10550_v61, %v9678_v26  ;;  %v3055_v59 = vrot.slane %v10550_v61, %v9681_v27 }
 0x279   :  { %7143 = vperm.xlu0 %9102, %v5618_v62   ;;  %v5503_v44 = vrot.slane %v5475_v12, %v9696_v33  ;;  %v3059_v35 = vrot.slane %v10550_v61, %v9684_v28  ;;  %v3063_v45 = vrot.slane %v10550_v61, %v9687_v29  ;;  %v3067_v3 = vrot.slane %v10550_v61, %v9690_v30 }
 0x27a   :  { %v5504_v42 = vcombine.low %v5482_v23, %v5489_v20  ;;  %v3071_v46 = vrot.slane %v10550_v61, %v9693_v31  ;;  %v5717_v13 = vcombine.low %v3043_v18, %v3047_v32  ;;  %v5718_v53 = vcombine.low %v3051_v51, %v3055_v59 }
 0x27b   :  { %v5505_v54 = vcombine.low %v5496_v10, %v5503_v44  ;;  %v5719_v56 = vcombine.low %v3059_v35, %v3063_v45  ;;  %vm1068_vm6 = vcmp.eq.s32.totalorder %v10741_v50, %v9669_v24  ;;  %vm1069_vm7 = vcmp.eq.s32.totalorder %v10792_v39, %v9669_v24 }
 0x27c   :  { %v5512_v57 = vrot.slane %v5504_v42, %v9696_v33  ;;  %v5720_v60 = vcombine.low %v3067_v3, %v3071_v46  ;;  %v5727_v49 = vrot.slane %v5717_v13, %v9696_v33  ;;  %v5734_v58 = vrot.slane %v5718_v53, %v9696_v33 }
 0x27d   :  { %v5519_v63 = vrot.slane %v5505_v54, %v9696_v33  ;;  %v5741_v61 = vrot.slane %v5719_v56, %v9696_v33  ;;  %v8604_v48 = vsel %vm1068_vm6, 1.0, %v12615_v37  ;;  %v8605_v52 = vsel %vm1069_vm7, 1.0, %v12615_v37  ;;  %v10846_v54 = vpop.xlane.xlu1 %989 }
 0x27e   :  { %v5748_v1 = vrot.slane %v5720_v60, %v9696_v33  ;;  %v5749_v5 = vcombine.low %v5727_v49, %v5734_v58  ;;  %9026 = vmatmul.mubr.msk.f32.gmra.mrb[44].mxu1 %vm828_vm2, %v8604_v48  ;;  %v8103_v4 = vmul.f32 0.0, %v8604_v48  ;;  %v8104_v6 = vmul.f32 0.0, %v8605_v52  ;;  %v10854_v49 = vpop.xlane.xlu0 %974 }
 0x27f   :  { %v5520_v9 = vcombine.low %v5512_v57, %v5519_v63  ;;  %9028 = vmatprep.mubr.msk.f32.mxu1 %vm828_vm2, %v8605_v52  ;;  %v3139_v11 = vrot.slane %v10616_v0, %v9672_v25  ;;  %v3143_v2 = vrot.slane %v10616_v0, %v9675_v15  ;;  %v3147_v8 = vrot.slane %v10616_v0, %v9678_v26 }
 0x280   :  { %v5750_v47 = vcombine.low %v5741_v61, %v5748_v1  ;;  %v5757_v16 = vrot.slane %v5749_v5, %v9696_v33  ;;  %v8211_v18 = vsel %vm828_vm2, %v8103_v4, 0.0  ;;  %v8213_v62 = vsel %vm828_vm2, %v8104_v6, 0.0 }
 0x281   :  { %7137 = vperm.xlu1 %9101, %v5520_v9   ;;  %v8212_v12 = vadd.f32 %v8211_v18, %v8210_v43  ;;  %v3151_v23 = vrot.slane %v10616_v0, %v9681_v27  ;;  %v3155_v32 = vrot.slane %v10616_v0, %v9684_v28  ;;  %v3159_v20 = vrot.slane %v10616_v0, %v9687_v29 }
 0x282   :  { %v5764_v10 = vrot.slane %v5750_v47, %v9696_v33  ;;  %v3163_v51 = vrot.slane %v10616_v0, %v9690_v30  ;;  %v3167_v59 = vrot.slane %v10616_v0, %v9693_v31  ;;  %v5864_v44 = vcombine.low %v3139_v11, %v3143_v2 }
 0x283   :  { %v8214_v35 = vadd.f32 %v8213_v62, %v8212_v12  ;;  %v5865_v43 = vcombine.low %v3147_v8, %v3151_v23  ;;  %v5866_v45 = vcombine.low %v3155_v32, %v3159_v20  ;;  %v3011_v3 = vrot.slane %v10500_v7, %v9672_v25  ;;  %v10876_v12 = vpop.xlane.xlu1 %995 }
 0x284   :  { %v5765_v42 = vcombine.low %v5757_v16, %v5764_v10  ;;  %v5867_v46 = vcombine.low %v3163_v51, %v3167_v59  ;;  %v5874_v13 = vrot.slane %v5864_v44, %v9696_v33  ;;  %v3015_v53 = vrot.slane %v10500_v7, %v9675_v15 }
 0x285   :  { %v5881_v56 = vrot.slane %v5865_v43, %v9696_v33  ;;  %v5888_v0 = vrot.slane %v5866_v45, %v9696_v33  ;;  %v3019_v57 = vrot.slane %v10500_v7, %v9678_v26  ;;  %v3023_v60 = vrot.slane %v10500_v7, %v9681_v27  ;;  %v10887_v45 = vpop.xlane.xlu0 %980 }
 0x286   :  { %7152 = vperm.xlu0 %9102, %v5765_v42   ;;  %v5895_v58 = vrot.slane %v5867_v46, %v9696_v33  ;;  %v3027_v63 = vrot.slane %v10500_v7, %v9684_v28  ;;  %v3031_v61 = vrot.slane %v10500_v7, %v9687_v29  ;;  %v3035_v48 = vrot.slane %v10500_v7, %v9690_v30 }
 0x287   :  { %v5896_v52 = vcombine.low %v5874_v13, %v5881_v56  ;;  %v3039_v1 = vrot.slane %v10500_v7, %v9693_v31  ;;  %v5668_v5 = vcombine.low %v3011_v3, %v3015_v53  ;;  %v5669_v4 = vcombine.low %v3019_v57, %v3023_v60 }
 0x288   :  { %v5897_v6 = vcombine.low %v5888_v0, %v5895_v58  ;;  %v5670_v9 = vcombine.low %v3027_v63, %v3031_v61  ;;  %vm1070_vm8 = vcmp.eq.s32.totalorder %v10765_v40, %v9669_v24  ;;  %vm1071_vm9 = vcmp.eq.s32.totalorder %v10854_v49, %v9669_v24 }
 0x289   :  { %v5904_v11 = vrot.slane %v5896_v52, %v9696_v33  ;;  %v5671_v2 = vcombine.low %v3035_v48, %v3039_v1  ;;  %v5678_v8 = vrot.slane %v5668_v5, %v9696_v33  ;;  %v5685_v47 = vrot.slane %v5669_v4, %v9696_v33  ;;  %v10905_v1 = vpop.xlane.xlu1 %1001 }
 0x28a   :  { %v5911_v16 = vrot.slane %v5897_v6, %v9696_v33  ;;  %v5692_v7 = vrot.slane %v5670_v9, %v9696_v33  ;;  %v8606_v18 = vsel %vm1070_vm8, 1.0, %v12615_v37  ;;  %v8607_v62 = vsel %vm1071_vm9, 1.0, %v12615_v37 }
 0x28b   :  { %v5699_v23 = vrot.slane %v5671_v2, %v9696_v33  ;;  %v5700_v32 = vcombine.low %v5678_v8, %v5685_v47  ;;  %9029 = vmatmul.mubr.msk.f32.gmra.mrb[46].mxu1 %vm828_vm2, %v8606_v18  ;;  %v8105_v20 = vmul.f32 0.0, %v8606_v18  ;;  %v8106_v10 = vmul.f32 0.0, %v8607_v62  ;;  %v10914_v8 = vpop.xlane.xlu0 %986 }
 0x28c   :  { %v5912_v51 = vcombine.low %v5904_v11, %v5911_v16  ;;  %9031 = vmatprep.mubr.msk.f32.mxu1 %vm828_vm2, %v8607_v62  ;;  %v3107_v59 = vrot.slane %v10608_v34, %v9672_v25  ;;  %v3111_v44 = vrot.slane %v10608_v34, %v9675_v15  ;;  %v3115_v43 = vrot.slane %v10608_v34, %v9678_v26 }
 0x28d   :  { %v5701_v3 = vcombine.low %v5692_v7, %v5699_v23  ;;  %v5708_v42 = vrot.slane %v5700_v32, %v9696_v33  ;;  %v8215_v46 = vsel %vm828_vm2, %v8105_v20, 0.0  ;;  %v8217_v13 = vsel %vm828_vm2, %v8106_v10, 0.0 }
 0x28e   :  { %7161 = vperm.xlu1 %9101, %v5912_v51   ;;  %v8216_v53 = vadd.f32 %v8215_v46, %v8214_v35  ;;  %v3119_v56 = vrot.slane %v10608_v34, %v9681_v27  ;;  %v3123_v0 = vrot.slane %v10608_v34, %v9684_v28  ;;  %v3127_v57 = vrot.slane %v10608_v34, %v9687_v29 }
 0x28f   :  { %v5715_v60 = vrot.slane %v5701_v3, %v9696_v33  ;;  %v3131_v58 = vrot.slane %v10608_v34, %v9690_v30  ;;  %v3135_v63 = vrot.slane %v10608_v34, %v9693_v31  ;;  %v5815_v61 = vcombine.low %v3107_v59, %v3111_v44 }
 0x290   :  { %v8218_v48 = vadd.f32 %v8217_v13, %v8216_v53  ;;  %v5816_v35 = vcombine.low %v3115_v43, %v3119_v56  ;;  %v5817_v52 = vcombine.low %v3123_v0, %v3127_v57  ;;  %vm1072_vm10 = vcmp.eq.s32.totalorder %v10794_v41, %v9669_v24  ;;  %v10936_v13 = vpop.xlane.xlu1 %1007 }
 0x291   :  { %v5716_v5 = vcombine.low %v5708_v42, %v5715_v60  ;;  %v5818_v4 = vcombine.low %v3131_v58, %v3135_v63  ;;  %v5825_v6 = vrot.slane %v5815_v61, %v9696_v33  ;;  %v8608_v9 = vsel %vm1072_vm10, 1.0, %v12615_v37  ;;  %v10945_v63 = vpop.xlane.xlu0 %992 }
 0x292   :  { %v5832_v11 = vrot.slane %v5816_v35, %v9696_v33  ;;  %v5839_v2 = vrot.slane %v5817_v52, %v9696_v33  ;;  %9032 = vmatmul.mubr.msk.f32.gmra.mrb[48].mxu1 %vm828_vm2, %v8608_v9  ;;  %v8107_v34 = vmul.f32 0.0, %v8608_v9  ;;  %vm1073_vm11 = vcmp.eq.s32.totalorder %v10887_v45, %v9669_v24 }
 0x293   :  { %7149 = vperm.xlu0 %9102, %v5716_v5   ;;  %v5846_v47 = vrot.slane %v5818_v4, %v9696_v33  ;;  %v8609_v16 = vsel %vm1073_vm11, 1.0, %v12615_v37  ;;  %v3075_v7 = vrot.slane %v10558_v21, %v9672_v25  ;;  %v3079_v18 = vrot.slane %v10558_v21, %v9675_v15 }
 0x294   :  { %v5847_v62 = vcombine.low %v5825_v6, %v5832_v11  ;;  %v8219_v23 = vsel %vm828_vm2, %v8107_v34, 0.0  ;;  %9034 = vmatprep.mubr.msk.f32.mxu1 %vm828_vm2, %v8609_v16  ;;  %v8108_v32 = vmul.f32 0.0, %v8609_v16  ;;  %v3083_v20 = vrot.slane %v10558_v21, %v9678_v26 }
 0x295   :  { %v5848_v10 = vcombine.low %v5839_v2, %v5846_v47  ;;  %v8220_v51 = vadd.f32 %v8219_v23, %v8218_v48  ;;  %v3087_v59 = vrot.slane %v10558_v21, %v9681_v27  ;;  %v3091_v44 = vrot.slane %v10558_v21, %v9684_v28 }
 0x296   :  { %v5855_v43 = vrot.slane %v5847_v62, %v9696_v33  ;;  %v8221_v3 = vsel %vm828_vm2, %v8108_v32, 0.0  ;;  %v3095_v42 = vrot.slane %v10558_v21, %v9687_v29  ;;  %v3099_v46 = vrot.slane %v10558_v21, %v9690_v30 }
 0x297   :  { %v5862_v53 = vrot.slane %v5848_v10, %v9696_v33  ;;  %v8222_v56 = vadd.f32 %v8221_v3, %v8220_v51  ;;  %v3103_v0 = vrot.slane %v10558_v21, %v9693_v31  ;;  %v5766_v57 = vcombine.low %v3075_v7, %v3079_v18  ;;  %v10962_v7 = vpop.xlane.xlu1 %1013 }
 0x298   :  { %v5767_v60 = vcombine.low %v3083_v20, %v3087_v59  ;;  %v5768_v58 = vcombine.low %v3091_v44, %v3095_v42  ;;  %vm1074_vm12 = vcmp.eq.s32.totalorder %v10818_v38, %v9669_v24  ;;  %vm1075_vm13 = vcmp.eq.s32.totalorder %v10914_v8, %v9669_v24 }
 0x299   :  { %v5863_v61 = vcombine.low %v5855_v43, %v5862_v53  ;;  %v5769_v48 = vcombine.low %v3099_v46, %v3103_v0  ;;  %v5776_v35 = vrot.slane %v5766_v57, %v9696_v33  ;;  %v8610_v52 = vsel %vm1074_vm12, 1.0, %v12615_v37  ;;  %v10983_v57 = vpop.xlane.xlu0 %998 }
 0x29a   :  { %v5783_v5 = vrot.slane %v5767_v60, %v9696_v33  ;;  %v5790_v21 = vrot.slane %v5768_v58, %v9696_v33  ;;  %9035 = vmatmul.mubr.msk.f32.gmra.mrb[50].mxu1 %vm828_vm2, %v8610_v52  ;;  %v8109_v4 = vmul.f32 0.0, %v8610_v52  ;;  %v8611_v6 = vsel %vm1075_vm13, 1.0, %v12615_v37 }
 0x29b   :  { %7158 = vperm.xlu0 %9102, %v5863_v61   ;;  %v5797_v9 = vrot.slane %v5769_v48, %v9696_v33  ;;  %9037 = vmatprep.mubr.msk.f32.mxu1 %vm828_vm2, %v8611_v6  ;;  %v8110_v11 = vmul.f32 0.0, %v8611_v6  ;;  %vm1076_vm14 = vcmp.eq.s32.totalorder %v10846_v54, %v9669_v24  ;;  %vm1077_vm15 = vcmp.eq.s32.totalorder %v10945_v63, %v9669_v24 }
 0x29c   :  { %v5798_v2 = vcombine.low %v5776_v35, %v5783_v5  ;;  %v8223_v34 = vsel %vm828_vm2, %v8109_v4, 0.0  ;;  %v8612_v47 = vsel %vm1076_vm14, 1.0, %v12615_v37  ;;  %v8613_v16 = vsel %vm1077_vm15, 1.0, %v12615_v37 }
 0x29d   :  { %v5799_v18 = vcombine.low %v5790_v21, %v5797_v9  ;;  %v8224_v62 = vadd.f32 %v8223_v34, %v8222_v56  ;;  %v8225_v23 = vsel %vm828_vm2, %v8110_v11, 0.0  ;;  %v8111_v32 = vmul.f32 0.0, %v8612_v47  ;;  %v10991_v21 = vpop.xlane.xlu1 %1019 }
 0x29e   :  { %v5806_v20 = vrot.slane %v5798_v2, %v9696_v33  ;;  %9038 = vmatmul.mubr.msk.f32.gmra.mrb[52].mxu1 %vm828_vm2, %v8612_v47  ;;  %v8112_v10 = vmul.f32 0.0, %v8613_v16  ;;  %v3427_v51 = vrot.slane %v10794_v41, %v9672_v25  ;;  %v3431_v59 = vrot.slane %v10794_v41, %v9675_v15 }
 0x29f   :  { %v5813_v44 = vrot.slane %v5799_v18, %v9696_v33  ;;  %v8226_v43 = vadd.f32 %v8225_v23, %v8224_v62  ;;  %v8227_v3 = vsel %vm828_vm2, %v8111_v32, 0.0  ;;  %9040 = vmatprep.mubr.msk.f32.mxu1 %vm828_vm2, %v8613_v16  ;;  %v3435_v42 = vrot.slane %v10794_v41, %v9678_v26 }
 0x2a0   :  { %v8229_v46 = vsel %vm828_vm2, %v8112_v10, 0.0  ;;  %v3439_v53 = vrot.slane %v10794_v41, %v9681_v27  ;;  %v3443_v56 = vrot.slane %v10794_v41, %v9684_v28  ;;  %v3447_v0 = vrot.slane %v10794_v41, %v9687_v29 }
 0x2a1   :  { %v5814_v60 = vcombine.low %v5806_v20, %v5813_v44  ;;  %v8228_v58 = vadd.f32 %v8227_v3, %v8226_v43  ;;  %v3451_v61 = vrot.slane %v10794_v41, %v9690_v30  ;;  %v3455_v48 = vrot.slane %v10794_v41, %v9693_v31 }
 0x2a2   :  { %v6305_v35 = vcombine.low %v3427_v51, %v3431_v59  ;;  %v6306_v52 = vcombine.low %v3435_v42, %v3439_v53  ;;  %v6307_v5 = vcombine.low %v3443_v56, %v3447_v0  ;;  %vm1078_vm1 = vcmp.eq.s32.totalorder %v10876_v12, %v9669_v24  ;;  %v11010_v51 = vpop.permute.xlu1 %7044  ;;  %v11012_v59 = vpop.f32.mrb[0].mxu1 }
 0x2a3   :  { %7155 = vperm.xlu0 %9102, %v5814_v60   ;;  %v8230_v4 = vadd.f32 %v8229_v46, %v8228_v58  ;;  %v6308_v6 = vcombine.low %v3451_v61, %v3455_v48  ;;  %v8614_v9 = vsel %vm1078_vm1, 1.0, %v12615_v37  ;;  %vm1079_vm3 = vcmp.eq.s32.totalorder %v10983_v57, %v9669_v24  ;;  %12650 = vst [vmem:[#allocation14_spill] sm:$0xff] %v11010_v51  ;;  %v11018_v46 = vpop.xlane.xlu0 %1004  ;;  %v11025_v53 = vpop.f32.mrb[1].mxu1 }
 0x2a4   :  { %v6315_v11 = vrot.slane %v6305_v35, %v9696_v33  ;;  %v6322_v41 = vrot.slane %v6306_v52, %v9696_v33  ;;  %v6329_v2 = vrot.slane %v6307_v5, %v9696_v33  ;;  %9041 = vmatmul.mubr.msk.f32.gmra.mrb[54].mxu1 %vm828_vm2, %v8614_v9  ;;  %v8113_v34 = vmul.f32 0.0, %v8614_v9  ;;  %1793 = vst.msk [vmem:[%s12610_s3 + $0x8] sm:$0xff] %vm92_vm0, %v11012_v59  ;;  %v11038_v61 = vpop.f32.mrb[2].mxu1 }
 0x2a5   :  { %v6336_v47 = vrot.slane %v6308_v6, %v9696_v33  ;;  %v8615_v16 = vsel %vm1079_vm3, 1.0, %v12615_v37  ;;  %v3395_v18 = vrot.slane %v10854_v49, %v9672_v25  ;;  %v3399_v62 = vrot.slane %v10854_v49, %v9675_v15  ;;  %1792 = vst.msk [vmem:[%s12610_s3] sm:$0xff] %vm92_vm0, %v11025_v53  ;;  %1795 = vst.msk [vmem:[%s12610_s3 + $0x18] sm:$0xff] %vm92_vm0, %v11038_v61 }
 0x2a6   :  { %v6337_v23 = vcombine.low %v6315_v11, %v6322_v41  ;;  %v8231_v32 = vsel %vm828_vm2, %v8113_v34, 0.0  ;;  %9043 = vmatprep.mubr.msk.f32.mxu1 %vm828_vm2, %v8615_v16  ;;  %v8114_v20 = vmul.f32 0.0, %v8615_v16  ;;  %v3403_v10 = vrot.slane %v10854_v49, %v9678_v26 }
 0x2a7   :  { %v6338_v44 = vcombine.low %v6329_v2, %v6336_v47  ;;  %v8232_v43 = vadd.f32 %v8231_v32, %v8230_v4  ;;  %v3407_v3 = vrot.slane %v10854_v49, %v9681_v27  ;;  %v3411_v42 = vrot.slane %v10854_v49, %v9684_v28  ;;  %v11048_v4 = vpop.f32.mrb[3].mxu1  ;;  %v11074_v32 = vpop.permute.xlu1 %7050 }
 0x2a8   :  { %v6345_v56 = vrot.slane %v6337_v23, %v9696_v33  ;;  %v8233_v0 = vsel %vm828_vm2, %v8114_v20, 0.0  ;;  %v3415_v60 = vrot.slane %v10854_v49, %v9687_v29  ;;  %v3419_v58 = vrot.slane %v10854_v49, %v9690_v30  ;;  %1794 = vst.msk [vmem:[%s12610_s3 + $0x10] sm:$0xff] %vm92_vm0, %v11048_v4  ;;  %12651 = vst [vmem:[#allocation15_spill] sm:$0xff] %v11074_v32  ;;  %v11181_v32 = vpop.xlane.xlu0 %1010 }
 0x2a9   :  { %v6352_v48 = vrot.slane %v6338_v44, %v9696_v33  ;;  %v8234_v35 = vadd.f32 %v8233_v0, %v8232_v43  ;;  %v3423_v52 = vrot.slane %v10854_v49, %v9693_v31  ;;  %v6256_v5 = vcombine.low %v3395_v18, %v3399_v62  ;;  %v11059_v49 = vpop.f32.mrb[4].mxu1 }
 0x2aa   :  { %v6257_v6 = vcombine.low %v3403_v10, %v3407_v3  ;;  %v6258_v9 = vcombine.low %v3411_v42, %v3415_v60  ;;  %vm1080_vm4 = vcmp.eq.s32.totalorder %v10905_v1, %v9669_v24  ;;  %vm1081_vm5 = vcmp.eq.s32.totalorder %v11018_v46, %v9669_v24  ;;  %1797 = vst.msk [vmem:[%s12610_s3 + $0x28] sm:$0xff] %vm92_vm0, %v11059_v49  ;;  %v11068_v47 = vpop.f32.mrb[5].mxu1 }
 0x2ab   :  { %v6353_v11 = vcombine.low %v6345_v56, %v6352_v48  ;;  %v6259_v41 = vcombine.low %v3419_v58, %v3423_v52  ;;  %v6266_v2 = vrot.slane %v6256_v5, %v9696_v33  ;;  %v8616_v34 = vsel %vm1080_vm4, 1.0, %v12615_v37  ;;  %1796 = vst.msk [vmem:[%s12610_s3 + $0x20] sm:$0xff] %vm92_vm0, %v11068_v47  ;;  %v11081_v20 = vpop.f32.mrb[6].mxu1 }
 0x2ac   :  { %v6273_v16 = vrot.slane %v6257_v6, %v9696_v33  ;;  %v6280_v18 = vrot.slane %v6258_v9, %v9696_v33  ;;  %9044 = vmatmul.mubr.msk.f32.gmra.mrb[56].mxu1 %vm828_vm2, %v8616_v34  ;;  %v8115_v62 = vmul.f32 0.0, %v8616_v34  ;;  %v8617_v23 = vsel %vm1081_vm5, 1.0, %v12615_v37  ;;  %1799 = vst.msk [vmem:[%s12610_s3 + $0x38] sm:$0xff] %vm92_vm0, %v11081_v20  ;;  %v11094_v42 = vpop.f32.mrb[7].mxu1 }
 0x2ad   :  { %7188 = vperm.xlu0 %9102, %v6353_v11   ;;  %v6287_v10 = vrot.slane %v6259_v41, %v9696_v33  ;;  %9046 = vmatprep.mubr.msk.f32.mxu1 %vm828_vm2, %v8617_v23  ;;  %v8116_v44 = vmul.f32 0.0, %v8617_v23  ;;  %v3555_v43 = vrot.slane %v10846_v54, %v9672_v25  ;;  %v3559_v3 = vrot.slane %v10846_v54, %v9675_v15  ;;  %v11106_v48 = vpop.f32.mrb[8].mxu1 }
 0x2ae   :  { %v6288_v56 = vcombine.low %v6266_v2, %v6273_v16  ;;  %v8235_v0 = vsel %vm828_vm2, %v8115_v62, 0.0  ;;  %v3563_v60 = vrot.slane %v10846_v54, %v9678_v26  ;;  %v3567_v58 = vrot.slane %v10846_v54, %v9681_v27  ;;  %1798 = vst.msk [vmem:[%s12610_s3 + $0x30] sm:$0xff] %vm92_vm0, %v11094_v42  ;;  %1801 = vst.msk [vmem:[%s12610_s3 + $0x48] sm:$0xff] %vm92_vm0, %v11106_v48  ;;  %v11116_v11 = vpop.f32.mrb[9].mxu1 }
 0x2af   :  { %v6289_v52 = vcombine.low %v6280_v18, %v6287_v10  ;;  %v8236_v5 = vadd.f32 %v8235_v0, %v8234_v35  ;;  %v8237_v6 = vsel %vm828_vm2, %v8116_v44, 0.0  ;;  %v3571_v9 = vrot.slane %v10846_v54, %v9684_v28  ;;  %1800 = vst.msk [vmem:[%s12610_s3 + $0x40] sm:$0xff] %vm92_vm0, %v11116_v11  ;;  %v11130_v16 = vpop.f32.mrb[10].mxu1 }
 0x2b0   :  { %v6296_v41 = vrot.slane %v6288_v56, %v9696_v33  ;;  %v3575_v2 = vrot.slane %v10846_v54, %v9687_v29  ;;  %v3579_v35 = vrot.slane %v10846_v54, %v9690_v30  ;;  %v3583_v34 = vrot.slane %v10846_v54, %v9693_v31  ;;  %1803 = vst.msk [vmem:[%s12610_s3 + $0x58] sm:$0xff] %vm92_vm0, %v11130_v16  ;;  %v11138_v54 = vpop.f32.mrb[11].mxu1 }
 0x2b1   :  { %v6303_v18 = vrot.slane %v6289_v52, %v9696_v33  ;;  %v8238_v62 = vadd.f32 %v8237_v6, %v8236_v5  ;;  %v6501_v23 = vcombine.low %v3555_v43, %v3559_v3  ;;  %v6502_v10 = vcombine.low %v3563_v60, %v3567_v58  ;;  %v11144_v52 = vpop.permute.xlu1 %7047  ;;  %1802 = vst.msk [vmem:[%s12610_s3 + $0x50] sm:$0xff] %vm92_vm0, %v11138_v54  ;;  %v11151_v43 = vpop.f32.mrb[12].mxu1 }
 0x2b2   :  { %v6503_v44 = vcombine.low %v3571_v9, %v3575_v2  ;;  %v6504_v56 = vcombine.low %v3579_v35, %v3583_v34  ;;  %v3491_v0 = vrot.slane %v10818_v38, %v9672_v25  ;;  %v3495_v19 = vrot.slane %v10818_v38, %v9675_v15  ;;  %12652 = vst [vmem:[#allocation16_spill] sm:$0xff] %v11144_v52  ;;  %v11162_v6 = vpop.f32.mrb[13].mxu1 }
 0x2b3   :  { %v6304_v3 = vcombine.low %v6296_v41, %v6303_v18  ;;  %v6511_v60 = vrot.slane %v6501_v23, %v9696_v33  ;;  %v6518_v58 = vrot.slane %v6502_v10, %v9696_v33  ;;  %v3499_v5 = vrot.slane %v10818_v38, %v9678_v26  ;;  %1805 = vst.msk [vmem:[%s12610_s3 + $0x68] sm:$0xff] %vm92_vm0, %v11151_v43  ;;  %v11187_v40 = vpop.f32.mrb[14].mxu1 }
 0x2b4   :  { %v6525_v9 = vrot.slane %v6503_v44, %v9696_v33  ;;  %v6532_v2 = vrot.slane %v6504_v56, %v9696_v33  ;;  %v3503_v41 = vrot.slane %v10818_v38, %v9681_v27  ;;  %v3507_v35 = vrot.slane %v10818_v38, %v9684_v28  ;;  %1804 = vst.msk [vmem:[%s12610_s3 + $0x60] sm:$0xff] %vm92_vm0, %v11162_v6 }
 0x2b5   :  { %7185 = vperm.xlu0 %9102, %v6304_v3   ;;  %v6533_v34 = vcombine.low %v6511_v60, %v6518_v58  ;;  %v3511_v18 = vrot.slane %v10818_v38, %v9687_v29  ;;  %v3515_v23 = vrot.slane %v10818_v38, %v9690_v30  ;;  %v3519_v10 = vrot.slane %v10818_v38, %v9693_v31 }
 0x2b6   :  { %v6534_v44 = vcombine.low %v6525_v9, %v6532_v2  ;;  %v6403_v56 = vcombine.low %v3491_v0, %v3495_v19  ;;  %v6404_v37 = vcombine.low %v3499_v5, %v3503_v41  ;;  %vm1082_vm6 = vcmp.eq.s32.totalorder %v10936_v13, %v9669_v24  ;;  %v11193_v5 = vpop.permute.xlu1 %7056  ;;  %1807 = vst.msk [vmem:[%s12610_s3 + $0x78] sm:$0xff] %vm92_vm0, %v11187_v40  ;;  %v11200_v9 = vpop.f32.mrb[15].mxu1 }
 0x2b7   :  { %v6541_v3 = vrot.slane %v6533_v34, %v9696_v33  ;;  %v6405_v60 = vcombine.low %v3507_v35, %v3511_v18  ;;  %v6406_v58 = vcombine.low %v3515_v23, %v3519_v10  ;;  %v12653_v52 = vmov 0.0   ;;  %12654 = vst [vmem:[#allocation17_spill] sm:$0xff] %v11193_v5  ;;  %1806 = vst.msk [vmem:[%s12610_s3 + $0x70] sm:$0xff] %vm92_vm0, %v11200_v9 }
 0x2b8   :  { %v8618_v51 = vsel %vm1082_vm6, 1.0, %v12653_v52  ;;  %v6548_v39 = vrot.slane %v6534_v44, %v9696_v33  ;;  %v6413_v38 = vrot.slane %v6403_v56, %v9696_v33  ;;  %v6420_v19 = vrot.slane %v6404_v37, %v9696_v33 }
 0x2b9   :  { %9047 = vmatmul.mubr.msk.f32.gmra.mrb[58].mxu1 %vm828_vm2, %v8618_v51  ;;  %v8117_v0 = vmul.f32 0.0, %v8618_v51  ;;  %v6427_v2 = vrot.slane %v6405_v60, %v9696_v33  ;;  %v6434_v41 = vrot.slane %v6406_v58, %v9696_v33  ;;  %vm1083_vm7 = vcmp.eq.s32.totalorder %v11181_v32, %v9669_v24 }
 0x2ba   :  { %v3459_v37 = vrot.slane %v10887_v45, %v9672_v25  ;;  %v6549_v51 = vcombine.low %v6541_v3, %v6548_v39  ;;  %v6435_v35 = vcombine.low %v6413_v38, %v6420_v19  ;;  %v8619_v18 = vsel %vm1083_vm7, 1.0, %v12653_v52 }
 0x2bb   :  { %v8239_v34 = vsel %vm828_vm2, %v8117_v0, 0.0  ;;  %v6436_v23 = vcombine.low %v6427_v2, %v6434_v41  ;;  %9049 = vmatprep.mubr.msk.f32.mxu1 %vm828_vm2, %v8619_v18  ;;  %v8118_v44 = vmul.f32 0.0, %v8619_v18  ;;  %v3463_v56 = vrot.slane %v10887_v45, %v9675_v15  ;;  %v11231_v2 = vpop.xlane.xlu0 %1016  ;;  %v11235_v18 = vpop.permute.xlu1 %7053 }
 0x2bc   :  { %v8240_v10 = vadd.f32 %v8239_v34, %v8238_v62  ;;  %7200 = vperm.xlu1 %9101, %v6549_v51   ;;  %v6443_v60 = vrot.slane %v6435_v35, %v9696_v33  ;;  %v3467_v58 = vrot.slane %v10887_v45, %v9678_v26  ;;  %v3471_v39 = vrot.slane %v10887_v45, %v9681_v27 }
 0x2bd   :  { %v3475_v3 = vrot.slane %v10887_v45, %v9684_v28  ;;  %v6450_v62 = vrot.slane %v6436_v23, %v9696_v33  ;;  %v8241_v38 = vsel %vm828_vm2, %v8118_v44, 0.0  ;;  %v3479_v19 = vrot.slane %v10887_v45, %v9687_v29  ;;  %12655 = vst [vmem:[#allocation18_spill] sm:$0xff] %v11235_v18 }
 0x2be   :  { %v3483_v0 = vrot.slane %v10887_v45, %v9690_v30  ;;  %v8242_v41 = vadd.f32 %v8241_v38, %v8240_v10  ;;  %v3487_v51 = vrot.slane %v10887_v45, %v9693_v31  ;;  %v6354_v35 = vcombine.low %v3459_v37, %v3463_v56 }
 0x2bf   :  { %v6355_v34 = vcombine.low %v3467_v58, %v3471_v39  ;;  %v6451_v5 = vcombine.low %v6443_v60, %v6450_v62  ;;  %v6356_v23 = vcombine.low %v3475_v3, %v3479_v19  ;;  %vm1084_vm8 = vcmp.eq.s32.totalorder %v10962_v7, %v9669_v24  ;;  %v11250_v58 = vpop.permute.xlu0 %7041  ;;  %v11252_v39 = vpop.f32.mrb[16].mxu1 }
 0x2c0   :  { %v3523_v44 = vrot.slane %v10914_v8, %v9672_v25  ;;  %v6357_v50 = vcombine.low %v3483_v0, %v3487_v51  ;;  %v6364_v17 = vrot.slane %v6354_v35, %v9696_v33  ;;  %v8620_v38 = vsel %vm1084_vm8, 1.0, %v12653_v52  ;;  %12656 = vst [vmem:[#allocation19_spill] sm:$0xff] %v11250_v58  ;;  %1809 = vst.msk [vmem:[%s12610_s3 + $0x88] sm:$0xff] %vm92_vm0, %v11252_v39  ;;  %v11264_v0 = vpop.f32.mrb[17].mxu1 }
 0x2c1   :  { %v6371_v10 = vrot.slane %v6355_v34, %v9696_v33  ;;  %7194 = vperm.xlu0 %9102, %v6451_v5   ;;  %v6378_v45 = vrot.slane %v6356_v23, %v9696_v33  ;;  %9050 = vmatmul.mubr.msk.f32.gmra.mrb[60].mxu1 %vm828_vm2, %v8620_v38  ;;  %v8119_v37 = vmul.f32 0.0, %v8620_v38  ;;  %v3527_v56 = vrot.slane %v10914_v8, %v9675_v15 }
 0x2c2   :  { %v3531_v60 = vrot.slane %v10914_v8, %v9678_v26  ;;  %v6385_v3 = vrot.slane %v6357_v50, %v9696_v33  ;;  %v3535_v5 = vrot.slane %v10914_v8, %v9681_v27  ;;  %v3539_v19 = vrot.slane %v10914_v8, %v9684_v28  ;;  %1808 = vst.msk [vmem:[%s12610_s3 + $0x80] sm:$0xff] %vm92_vm0, %v11264_v0 }
 0x2c3   :  { %v6386_v62 = vcombine.low %v6364_v17, %v6371_v10  ;;  %v8243_v51 = vsel %vm828_vm2, %v8119_v37, 0.0  ;;  %v3543_v50 = vrot.slane %v10914_v8, %v9687_v29  ;;  %v3547_v17 = vrot.slane %v10914_v8, %v9690_v30  ;;  %v11279_v37 = vpop.permute.xlu1 %7062 }
 0x2c4   :  { %v3551_v35 = vrot.slane %v10914_v8, %v9693_v31  ;;  %v6387_v34 = vcombine.low %v6378_v45, %v6385_v3  ;;  %v8244_v10 = vadd.f32 %v8243_v51, %v8242_v41  ;;  %v6452_v38 = vcombine.low %v3523_v44, %v3527_v56  ;;  %12657 = vst [vmem:[#allocation20_spill] sm:$0xff] %v11279_v37  ;;  %v11283_v8 = vpop.permute.xlu0 %7068 }
 0x2c5   :  { %v6394_v23 = vrot.slane %v6386_v62, %v9696_v33  ;;  %v6453_v18 = vcombine.low %v3531_v60, %v3535_v5  ;;  %v6454_v58 = vcombine.low %v3539_v19, %v3543_v50  ;;  %vm1085_vm9 = vcmp.eq.s32.totalorder %v11231_v2, %v9669_v24  ;;  %12658 = vst [vmem:[#allocation21_spill] sm:$0xff] %v11283_v8 }
 0x2c6   :  { %v6455_v36 = vcombine.low %v3547_v17, %v3551_v35  ;;  %v6401_v55 = vrot.slane %v6387_v34, %v9696_v33  ;;  %v6462_v14 = vrot.slane %v6452_v38, %v9696_v33  ;;  %v8621_v45 = vsel %vm1085_vm9, 1.0, %v12653_v52 }
 0x2c7   :  { %vm1086_vm10 = vcmp.eq.s32.totalorder %v10991_v21, %v9669_v24  ;;  %v6469_v41 = vrot.slane %v6453_v18, %v9696_v33  ;;  %v6476_v44 = vrot.slane %v6454_v58, %v9696_v33  ;;  %9052 = vmatprep.mubr.msk.f32.mxu1 %vm828_vm2, %v8621_v45  ;;  %v8120_v60 = vmul.f32 0.0, %v8621_v45  ;;  %v11305_v17 = vpop.permute.xlu1 %7059 }
 0x2c8   :  { %v6483_v56 = vrot.slane %v6455_v36, %v9696_v33  ;;  %v6402_v3 = vcombine.low %v6394_v23, %v6401_v55  ;;  %v8622_v62 = vsel %vm1086_vm10, 1.0, %v12653_v52  ;;  %v3619_v5 = vrot.slane %v10876_v12, %v9672_v25  ;;  %12659 = vst [vmem:[#allocation22_spill] sm:$0xff] %v11305_v17 }
 0x2c9   :  { %v6484_v19 = vcombine.low %v6462_v14, %v6469_v41  ;;  %v8245_v50 = vsel %vm828_vm2, %v8120_v60, 0.0  ;;  %9053 = vmatmul.mubr.msk.f32.gmra.mrb[62].mxu1 %vm828_vm2, %v8622_v62  ;;  %v8121_v18 = vmul.f32 0.0, %v8622_v62  ;;  %v3623_v36 = vrot.slane %v10876_v12, %v9675_v15 }
 0x2ca   :  { %v6485_v51 = vcombine.low %v6476_v44, %v6483_v56  ;;  %7191 = vperm.xlu0 %9102, %v6402_v3   ;;  %v8246_v58 = vadd.f32 %v8245_v50, %v8244_v10  ;;  %v3627_v55 = vrot.slane %v10876_v12, %v9678_v26  ;;  %v3631_v52 = vrot.slane %v10876_v12, %v9681_v27  ;;  %v11312_v10 = vpop.permute.xlu0 %7074  ;;  %v11320_v56 = vpop.f32.mrb[18].mxu1 }
 0x2cb   :  { %v6492_v14 = vrot.slane %v6484_v19, %v9696_v33  ;;  %v8247_v34 = vsel %vm828_vm2, %v8121_v18, 0.0  ;;  %v3635_v23 = vrot.slane %v10876_v12, %v9684_v28  ;;  %12660 = vst [vmem:[#allocation23_spill] sm:$0xff] %v11312_v10  ;;  %v3639_v45 = vrot.slane %v10876_v12, %v9687_v29  ;;  %1811 = vst.msk [vmem:[%s12610_s3 + $0x98] sm:$0xff] %vm92_vm0, %v11320_v56 }
 0x2cc   :  { %v6499_v35 = vrot.slane %v6485_v51, %v9696_v33  ;;  %v8248_v38 = vadd.f32 %v8247_v34, %v8246_v58  ;;  %v3643_v41 = vrot.slane %v10876_v12, %v9690_v30  ;;  %v3647_v44 = vrot.slane %v10876_v12, %v9693_v31  ;;  %v11329_v51 = vpop.f32.mrb[19].mxu1 }
 0x2cd   :  { %v6599_v3 = vcombine.low %v3619_v5, %v3623_v36  ;;  %v6600_v62 = vcombine.low %v3627_v55, %v3631_v52  ;;  %v3587_v19 = vrot.slane %v10945_v63, %v9672_v25  ;;  %v6601_v18 = vcombine.low %v3635_v23, %v3639_v45  ;;  %1810 = vst.msk [vmem:[%s12610_s3 + $0x90] sm:$0xff] %vm92_vm0, %v11329_v51  ;;  %v11348_v45 = vpop.permute.xlu1 %7065 }
 0x2ce   :  { %v6500_v60 = vcombine.low %v6492_v14, %v6499_v35  ;;  %v8249_v50 = vrot.slane %v8248_v38, 4  ;;  %v6602_v58 = vcombine.low %v3643_v41, %v3647_v44  ;;  %v3591_v12 = vrot.slane %v10945_v63, %v9675_v15  ;;  %12661 = vst [vmem:[#allocation24_spill] sm:$0xff] %v11348_v45 }
 0x2cf   :  { %v6609_v5 = vrot.slane %v6599_v3, %v9696_v33  ;;  %v6616_v36 = vrot.slane %v6600_v62, %v9696_v33  ;;  %v3595_v55 = vrot.slane %v10945_v63, %v9678_v26  ;;  %v3599_v52 = vrot.slane %v10945_v63, %v9681_v27  ;;  %v11358_v62 = vpop.f32.mrb[20].mxu1 }
 0x2d0   :  { %7197 = vperm.xlu0 %9102, %v6500_v60   ;;  %v8250_v14 = vadd.f32 %v8249_v50, %v8248_v38  ;;  %v6623_v35 = vrot.slane %v6601_v18, %v9696_v33  ;;  %v6630_v34 = vrot.slane %v6602_v58, %v9696_v33  ;;  %v3603_v23 = vrot.slane %v10945_v63, %v9684_v28  ;;  %v11356_v38 = vpop.permute.xlu0 %7080 }
 0x2d1   :  { %v6631_v41 = vcombine.low %v6609_v5, %v6616_v36  ;;  %v3607_v44 = vrot.slane %v10945_v63, %v9687_v29  ;;  %v3611_v60 = vrot.slane %v10945_v63, %v9690_v30  ;;  %v3615_v3 = vrot.slane %v10945_v63, %v9693_v31  ;;  %12662 = vst [vmem:[#allocation25_spill] sm:$0xff] %v11356_v38  ;;  %v11365_v5 = vpop.f32.mrb[21].mxu1 }
 0x2d2   :  { %v8251_v50 = vrot.slane %v8250_v14, 2  ;;  %v6632_v18 = vcombine.low %v6623_v35, %v6630_v34  ;;  %v6550_v58 = vcombine.low %v3587_v19, %v3591_v12  ;;  %v6551_v10 = vcombine.low %v3595_v55, %v3599_v52  ;;  %1813 = vst.msk [vmem:[%s12610_s3 + $0xa8] sm:$0xff] %vm92_vm0, %v11358_v62  ;;  %1812 = vst.msk [vmem:[%s12610_s3 + $0xa0] sm:$0xff] %vm92_vm0, %v11365_v5 }
 0x2d3   :  { %v6639_v36 = vrot.slane %v6631_v41, %v9696_v33  ;;  %v6552_v45 = vcombine.low %v3603_v23, %v3607_v44  ;;  %v6553_v63 = vcombine.low %v3611_v60, %v3615_v3  ;;  %vm8255_vm2 = vcmask 516096   ;;  %v11382_v3 = vpop.permute.xlu1 %7071 }
 0x2d4   :  { %v8252_v19 = vadd.f32 %v8251_v50, %v8250_v14  ;;  %v6646_v12 = vrot.slane %v6632_v18, %v9696_v33  ;;  %v6560_v55 = vrot.slane %v6550_v58, %v9696_v33  ;;  %v6567_v52 = vrot.slane %v6551_v10, %v9696_v33  ;;  %12663 = vst [vmem:[#allocation26_spill] sm:$0xff] %v11382_v3  ;;  %v11390_v58 = vpop.permute.xlu0 %7086 }
 0x2d5   :  { %v6574_v35 = vrot.slane %v6552_v45, %v9696_v33  ;;  %v6581_v34 = vrot.slane %v6553_v63, %v9696_v33  ;;  %v3651_v23 = vrot.slane %v10983_v57, %v9672_v25  ;;  %v3655_v14 = vrot.slane %v10983_v57, %v9675_v15  ;;  %12664 = vst [vmem:[#allocation27_spill] sm:$0xff] %v11390_v58 }
 0x2d6   :  { %v8253_v41 = vrot.slane %v8252_v19, 1  ;;  %v6647_v44 = vcombine.low %v6639_v36, %v6646_v12  ;;  %v6582_v60 = vcombine.low %v6560_v55, %v6567_v52  ;;  %v3659_v10 = vrot.slane %v10983_v57, %v9678_v26  ;;  %v11397_v52 = vpop.f32.mrb[22].mxu1 }
 0x2d7   :  { %v6583_v50 = vcombine.low %v6574_v35, %v6581_v34  ;;  %v3663_v45 = vrot.slane %v10983_v57, %v9681_v27  ;;  %v3667_v18 = vrot.slane %v10983_v57, %v9684_v28  ;;  %v3671_v12 = vrot.slane %v10983_v57, %v9687_v29  ;;  %1815 = vst.msk [vmem:[%s12610_s3 + $0xb8] sm:$0xff] %vm92_vm0, %v11397_v52 }
 0x2d8   :  { %v8254_v63 = vadd.f32 %v8253_v41, %v8252_v19  ;;  %7206 = vperm.xlu0 %9102, %v6647_v44   ;;  %v6590_v36 = vrot.slane %v6582_v60, %v9696_v33  ;;  %v3675_v55 = vrot.slane %v10983_v57, %v9690_v30  ;;  %v3679_v34 = vrot.slane %v10983_v57, %v9693_v31  ;;  %v11407_v19 = vpop.f32.mrb[23].mxu1 }
 0x2d9   :  { %v6597_v35 = vrot.slane %v6583_v50, %v9696_v33  ;;  %v6648_v3 = vcombine.low %v3651_v23, %v3655_v14  ;;  %v6649_v38 = vcombine.low %v3659_v10, %v3663_v45  ;;  %v6650_v41 = vcombine.low %v3667_v18, %v3671_v12  ;;  %1814 = vst.msk [vmem:[%s12610_s3 + $0xb0] sm:$0xff] %vm92_vm0, %v11407_v19  ;;  %v11427_v18 = vpop.permute.xlu1 %7077 }
 0x2da   :  { %8256 = vst.msk [vmem:[%s12612_s5] sm:$0x1] %vm8255_vm2, %v8254_v63  ;;  %v3683_v44 = vrot.slane %v10905_v1, %v9672_v25  ;;  %v6651_v23 = vcombine.low %v3675_v55, %v3679_v34  ;;  %v3687_v10 = vrot.slane %v10905_v1, %v9675_v15  ;;  %v3691_v45 = vrot.slane %v10905_v1, %v9678_v26 }
 0x2db   :  { %v6598_v57 = vcombine.low %v6590_v36, %v6597_v35  ;;  %v6658_v60 = vrot.slane %v6648_v3, %v9696_v33  ;;  %v6665_v14 = vrot.slane %v6649_v38, %v9696_v33  ;;  %v6672_v50 = vrot.slane %v6650_v41, %v9696_v33  ;;  %12665 = vst [vmem:[#allocation28_spill] sm:$0xff] %v11427_v18  ;;  %v11434_v3 = vpop.permute.xlu0 %7092 }
 0x2dc   :  { %v6679_v63 = vrot.slane %v6651_v23, %v9696_v33  ;;  %v3695_v36 = vrot.slane %v10905_v1, %v9681_v27  ;;  %v3699_v38 = vrot.slane %v10905_v1, %v9684_v28  ;;  %12666 = vst [vmem:[#allocation29_spill] sm:$0xff] %v11434_v3  ;;  %v3703_v55 = vrot.slane %v10905_v1, %v9687_v29 }
 0x2dd   :  { %7203 = vperm.xlu0 %9102, %v6598_v57   ;;  %v6680_v12 = vcombine.low %v6658_v60, %v6665_v14  ;;  %v3707_v35 = vrot.slane %v10905_v1, %v9690_v30  ;;  %v3711_v34 = vrot.slane %v10905_v1, %v9693_v31  ;;  %v6697_v23 = vcombine.low %v3683_v44, %v3687_v10  ;;  %v11443_v14 = vpop.f32.mrb[24].mxu1 }
 0x2de   :  { %v6681_v41 = vcombine.low %v6672_v50, %v6679_v63  ;;  %v6698_v60 = vcombine.low %v3691_v45, %v3695_v36  ;;  %12667 = vst [vmem:[#allocation30_spill] sm:$0xff] %v11443_v14  ;;  %v6699_v58 = vcombine.low %v3699_v38, %v3703_v55  ;;  %1817 = vst.msk [vmem:[%s12610_s3 + $0xc8] sm:$0xff] %vm92_vm0, %v11443_v14  ;;  %v11450_v37 = vpop.f32.mrb[25].mxu1  ;;  %vm7241_vm11 = vcmask 130112  }
 0x2df   :  { %v6688_v57 = vrot.slane %v6680_v12, %v9696_v33  ;;  %v6700_v18 = vcombine.low %v3707_v35, %v3711_v34  ;;  %v6707_v1 = vrot.slane %v6697_v23, %v9696_v33  ;;  %v3715_v44 = vrot.slane %v11018_v46, %v9672_v25  ;;  %1816 = vst.msk [vmem:[%s12610_s3 + $0xc0] sm:$0xff] %vm92_vm0, %v11450_v37  ;;  %v11466_v12 = vpop.permute.xlu1 %7083  ;;  %v11472_v34 = vpop.permute.xlu0 %7098 }
 0x2e0   :  { %v6695_v8 = vrot.slane %v6681_v41, %v9696_v33  ;;  %v6714_v50 = vrot.slane %v6698_v60, %v9696_v33  ;;  %v6721_v10 = vrot.slane %v6699_v58, %v9696_v33  ;;  %v3719_v63 = vrot.slane %v11018_v46, %v9675_v15  ;;  %12668 = vst [vmem:[#allocation31_spill] sm:$0xff] %v11466_v12 }
 0x2e1   :  { %v6728_v45 = vrot.slane %v6700_v18, %v9696_v33  ;;  %v3723_v55 = vrot.slane %v11018_v46, %v9678_v26  ;;  %v3727_v35 = vrot.slane %v11018_v46, %v9681_v27  ;;  %12669 = vst [vmem:[#allocation32_spill] sm:$0xff] %v11472_v34  ;;  %v3731_v58 = vrot.slane %v11018_v46, %v9684_v28 }
 0x2e2   :  { %v6696_v36 = vcombine.low %v6688_v57, %v6695_v8  ;;  %v6729_v38 = vcombine.low %v6707_v1, %v6714_v50  ;;  %v3735_v18 = vrot.slane %v11018_v46, %v9687_v29  ;;  %v3739_v8 = vrot.slane %v11018_v46, %v9690_v30 }
 0x2e3   :  { %v6730_v41 = vcombine.low %v6721_v10, %v6728_v45  ;;  %v3743_v57 = vrot.slane %v11018_v46, %v9693_v31  ;;  %v6746_v60 = vcombine.low %v3715_v44, %v3719_v63  ;;  %v6747_v50 = vcombine.low %v3723_v55, %v3727_v35  ;;  %v11491_v14 = vpop.permute.xlu1 %7089 }
 0x2e4   :  { %7209 = vperm.xlu0 %9102, %v6696_v36   ;;  %v6737_v23 = vrot.slane %v6729_v38, %v9696_v33  ;;  %v6748_v10 = vcombine.low %v3731_v58, %v3735_v18  ;;  %v3747_v34 = vrot.slane %v10936_v13, %v9672_v25  ;;  %v11487_v36 = vpop.f32.mrb[26].mxu1  ;;  %12670 = vst [vmem:[#allocation33_spill] sm:$0xff] %v11491_v14  ;;  %vm7248_vm12 = vcmask 195712  }
 0x2e5   :  { %v6744_v1 = vrot.slane %v6730_v41, %v9696_v33  ;;  %v6749_v45 = vcombine.low %v3739_v8, %v3743_v57  ;;  %v6756_v12 = vrot.slane %v6746_v60, %v9696_v33  ;;  %v6763_v17 = vrot.slane %v6747_v50, %v9696_v33  ;;  %1819 = vst.msk [vmem:[%s12610_s3 + $0xd8] sm:$0xff] %vm92_vm0, %v11487_v36  ;;  %v11498_v46 = vpop.f32.mrb[27].mxu1  ;;  %v11507_v41 = vpop.permute.xlu0 %7104 }
 0x2e6   :  { %v6770_v3 = vrot.slane %v6748_v10, %v9696_v33  ;;  %v3751_v63 = vrot.slane %v10936_v13, %v9675_v15  ;;  %v3755_v55 = vrot.slane %v10936_v13, %v9678_v26  ;;  %v3759_v35 = vrot.slane %v10936_v13, %v9681_v27  ;;  %12671 = vst [vmem:[#allocation34_spill] sm:$0xff] %v11507_v41 }
 0x2e7   :  { %v6745_v38 = vcombine.low %v6737_v23, %v6744_v1  ;;  %v6777_v44 = vrot.slane %v6749_v45, %v9696_v33  ;;  %1818 = vst.msk [vmem:[%s12610_s3 + $0xd0] sm:$0xff] %vm92_vm0, %v11498_v46  ;;  %v6778_v58 = vcombine.low %v6756_v12, %v6763_v17  ;;  %v3763_v18 = vrot.slane %v10936_v13, %v9684_v28 }
 0x2e8   :  { %v3767_v23 = vrot.slane %v10936_v13, %v9687_v29  ;;  %v3771_v57 = vrot.slane %v10936_v13, %v9690_v30  ;;  %v3775_v60 = vrot.slane %v10936_v13, %v9693_v31  ;;  %v6795_v1 = vcombine.low %v3747_v34, %v3751_v63 }
 0x2e9   :  { %7212 = vperm.xlu0 %9102, %v6745_v38   ;;  %v6779_v8 = vcombine.low %v6770_v3, %v6777_v44  ;;  %v6786_v50 = vrot.slane %v6778_v58, %v9696_v33  ;;  %v6796_v10 = vcombine.low %v3755_v55, %v3759_v35  ;;  %v11523_v38 = vpop.f32.mrb[28].mxu1  ;;  %v3779_v44 = vrot.slane %v11181_v32, %v9672_v25  ;;  %v11540_v55 = vpop.permute.xlu1 %7095 }
 0x2ea   :  { %v6797_v45 = vcombine.low %v3763_v18, %v3767_v23  ;;  %12672 = vst [vmem:[#allocation35_spill] sm:$0xff] %v11523_v38  ;;  %v6798_v12 = vcombine.low %v3771_v57, %v3775_v60  ;;  %v6805_v41 = vrot.slane %v6795_v1, %v9696_v33  ;;  %1821 = vst.msk [vmem:[%s12610_s3 + $0xe8] sm:$0xff] %vm92_vm0, %v11523_v38  ;;  %v11532_v3 = vpop.f32.mrb[29].mxu1  ;;  %v11550_v23 = vpop.permute.xlu0 %7110  ;;  %vm7255_vm13 = vcmask 261312  }
 0x2eb   :  { %v6793_v17 = vrot.slane %v6779_v8, %v9696_v33  ;;  %12673 = vst [vmem:[#allocation36_spill] sm:$0xff] %v11532_v3  ;;  %v6812_v13 = vrot.slane %v6796_v10, %v9696_v33  ;;  %v3783_v63 = vrot.slane %v11181_v32, %v9675_v15  ;;  %12674 = vst [vmem:[#allocation37_spill] sm:$0xff] %v11540_v55  ;;  %vm7269_vm14 = vcmask 392512  }
 0x2ec   :  { %v6819_v34 = vrot.slane %v6797_v45, %v9696_v33  ;;  %1820 = vst.msk [vmem:[%s12610_s3 + $0xe0] sm:$0xff] %vm92_vm0, %v11532_v3  ;;  %v6826_v58 = vrot.slane %v6798_v12, %v9696_v33  ;;  %v3787_v18 = vrot.slane %v11181_v32, %v9678_v26  ;;  %12675 = vst [vmem:[#allocation38_spill] sm:$0xff] %v11550_v23  ;;  %vm7276_vm15 = vcmask 458112  }
 0x2ed   :  { %v6794_v35 = vcombine.low %v6786_v50, %v6793_v17  ;;  %v6827_v8 = vcombine.low %v6805_v41, %v6812_v13  ;;  %v3791_v57 = vrot.slane %v11181_v32, %v9681_v27  ;;  %v3795_v60 = vrot.slane %v11181_v32, %v9684_v28 }
 0x2ee   :  { %v3799_v1 = vrot.slane %v11181_v32, %v9687_v29  ;;  %v6828_v10 = vcombine.low %v6819_v34, %v6826_v58  ;;  %v3803_v50 = vrot.slane %v11181_v32, %v9690_v30  ;;  %v3807_v45 = vrot.slane %v11181_v32, %v9693_v31  ;;  %v11570_v32 = vpop.permute.xlu0 %7116 }
 0x2ef   :  { %7215 = vperm.xlu0 %9102, %v6794_v35   ;;  %v6835_v17 = vrot.slane %v6827_v8, %v9696_v33  ;;  %v6844_v41 = vcombine.low %v3779_v44, %v3783_v63  ;;  %v6845_v12 = vcombine.low %v3787_v18, %v3791_v57  ;;  %v11567_v35 = vpop.permute.xlu1 %7101  ;;  %12677 = vst [vmem:[#allocation40_spill] sm:$0xff] %v11570_v32  ;;  %vm7283_vm1 = vcmask 523712  }
 0x2f0   :  { %v6846_v13 = vcombine.low %v3795_v60, %v3799_v1  ;;  %v6842_v23 = vrot.slane %v6828_v10, %v9696_v33  ;;  %v6847_v55 = vcombine.low %v3803_v50, %v3807_v45  ;;  %12676 = vst [vmem:[#allocation39_spill] sm:$0xff] %v11567_v35  ;;  %v3811_v44 = vrot.slane %v10962_v7, %v9672_v25 }
 0x2f1   :  { %v6854_v14 = vrot.slane %v6844_v41, %v9696_v33  ;;  %v6861_v38 = vrot.slane %v6845_v12, %v9696_v33  ;;  %v3815_v63 = vrot.slane %v10962_v7, %v9675_v15  ;;  %v3819_v60 = vrot.slane %v10962_v7, %v9678_v26 }
 0x2f2   :  { %v6868_v34 = vrot.slane %v6846_v13, %v9696_v33  ;;  %v6843_v58 = vcombine.low %v6835_v17, %v6842_v23  ;;  %v6875_v3 = vrot.slane %v6847_v55, %v9696_v33  ;;  %v3823_v23 = vrot.slane %v10962_v7, %v9681_v27 }
 0x2f3   :  { %v6876_v8 = vcombine.low %v6854_v14, %v6861_v38  ;;  %v3827_v55 = vrot.slane %v10962_v7, %v9684_v28  ;;  %v3835_v10 = vrot.slane %v10962_v7, %v9690_v30  ;;  %v3839_v50 = vrot.slane %v10962_v7, %v9693_v31  ;;  %v11604_v12 = vpop.permute.xlu1 %7107 }
 0x2f4   :  { %7218 = vperm.xlu0 %9102, %v6843_v58   ;;  %v6877_v57 = vcombine.low %v6868_v34, %v6875_v3  ;;  %v3831_v3 = vrot.slane %v10962_v7, %v9687_v29  ;;  %v6893_v45 = vcombine.low %v3811_v44, %v3815_v63  ;;  %v6894_v17 = vcombine.low %v3819_v60, %v3823_v23  ;;  %v11606_v58 = vpop.permute.xlu0 %7122 }
 0x2f5   :  { %v6884_v38 = vrot.slane %v6876_v8, %v9696_v33  ;;  %12678 = vst [vmem:[#allocation41_spill] sm:$0xff] %v11604_v12  ;;  %v6896_v34 = vcombine.low %v3835_v10, %v3839_v50  ;;  %12679 = vst [vmem:[#allocation42_spill] sm:$0xff] %v11606_v58  ;;  %v3843_v35 = vrot.slane %v11231_v2, %v9672_v25  ;;  %vm7290_vm3 = vcmask 589312  }
 0x2f6   :  { %v11576_v18 = vpop.f32.mrb[30].mxu1  ;;  %v6891_v1 = vrot.slane %v6877_v57, %v9696_v33  ;;  %v6895_v41 = vcombine.low %v3827_v55, %v3831_v3  ;;  %v6903_v8 = vrot.slane %v6893_v45, %v9696_v33  ;;  %v6910_v32 = vrot.slane %v6894_v17, %v9696_v33 }
 0x2f7   :  { %1823 = vst.msk [vmem:[%s12610_s3 + $0xf8] sm:$0xff] %vm92_vm0, %v11576_v18  ;;  %v11587_v14 = vpop.f32.mrb[31].mxu1  ;;  %v6924_v7 = vrot.slane %v6896_v34, %v9696_v33  ;;  %v3847_v44 = vrot.slane %v11231_v2, %v9675_v15  ;;  %v3851_v60 = vrot.slane %v11231_v2, %v9678_v26  ;;  %v3855_v23 = vrot.slane %v11231_v2, %v9681_v27  ;;  %v11629_v45 = vpop.permute.xlu1 %7113 }
 0x2f8   :  { %1822 = vst.msk [vmem:[%s12610_s3 + $0xf0] sm:$0xff] %vm92_vm0, %v11587_v14  ;;  %v6892_v13 = vcombine.low %v6884_v38, %v6891_v1  ;;  %v6917_v57 = vrot.slane %v6895_v41, %v9696_v33  ;;  %v6925_v63 = vcombine.low %v6903_v8, %v6910_v32  ;;  %v3859_v38 = vrot.slane %v11231_v2, %v9684_v28  ;;  %v11632_v34 = vpop.permute.xlu0 %7128 }
 0x2f9   :  { %v3863_v3 = vrot.slane %v11231_v2, %v9687_v29  ;;  %v3867_v10 = vrot.slane %v11231_v2, %v9690_v30  ;;  %v3871_v32 = vrot.slane %v11231_v2, %v9693_v31  ;;  %v6942_v50 = vcombine.low %v3843_v35, %v3847_v44  ;;  %12680 = vst [vmem:[#allocation43_spill] sm:$0xff] %v11629_v45 }
 0x2fa   :  { %7221 = vperm.xlu0 %9102, %v6892_v13   ;;  %v6926_v55 = vcombine.low %v6917_v57, %v6924_v7  ;;  %v6933_v1 = vrot.slane %v6925_v63, %v9696_v33  ;;  %v6943_v41 = vcombine.low %v3851_v60, %v3855_v23  ;;  %12681 = vst [vmem:[#allocation44_spill] sm:$0xff] %v11632_v34  ;;  %vm7297_vm4 = vcmask 654912  }
 0x2fb   :  { %v6944_v13 = vcombine.low %v3859_v38, %v3863_v3  ;;  %v6945_v8 = vcombine.low %v3867_v10, %v3871_v32  ;;  %v6952_v57 = vrot.slane %v6942_v50, %v9696_v33  ;;  %v3875_v35 = vrot.slane %v10991_v21, %v9672_v25  ;;  %v11662_v10 = vpop.permute.xlu1 %7119 }
 0x2fc   :  { %v6940_v17 = vrot.slane %v6926_v55, %v9696_v33  ;;  %v6959_v63 = vrot.slane %v6943_v41, %v9696_v33  ;;  %v3879_v23 = vrot.slane %v10991_v21, %v9675_v15  ;;  %v3883_v38 = vrot.slane %v10991_v21, %v9678_v26  ;;  %12682 = vst [vmem:[#allocation45_spill] sm:$0xff] %v11662_v10 }
 0x2fd   :  { %v6966_v58 = vrot.slane %v6944_v13, %v9696_v33  ;;  %v6973_v2 = vrot.slane %v6945_v8, %v9696_v33  ;;  %v3887_v55 = vrot.slane %v10991_v21, %v9681_v27  ;;  %v3895_v50 = vrot.slane %v10991_v21, %v9687_v29  ;;  %v11671_v13 = vpop.permute.xlu0 %7134 }
 0x2fe   :  { %v6941_v7 = vcombine.low %v6933_v1, %v6940_v17  ;;  %v6974_v60 = vcombine.low %v6952_v57, %v6959_v63  ;;  %v3891_v1 = vrot.slane %v10991_v21, %v9684_v28  ;;  %v3899_v17 = vrot.slane %v10991_v21, %v9690_v30  ;;  %12683 = vst [vmem:[#allocation46_spill] sm:$0xff] %v11671_v13 }
 0x2ff   :  { %v6975_v3 = vcombine.low %v6966_v58, %v6973_v2  ;;  %v3903_v41 = vrot.slane %v10991_v21, %v9693_v31  ;;  %v6991_v8 = vcombine.low %v3875_v35, %v3879_v23  ;;  %v6992_v57 = vcombine.low %v3883_v38, %v3887_v55  ;;  %v11678_v30 = vpop.permute.xlu1 %7125 }
 0x300   :  { %7224 = vperm.xlu0 %9102, %v6941_v7   ;;  %v6982_v32 = vrot.slane %v6974_v60, %v9696_v33  ;;  %v6993_v7 = vcombine.low %v3891_v1, %v3895_v50  ;;  %vm7304_vm5 = vcmask 720512   ;;  %vm7311_vm6 = vcmask 786112  }
 0x301   :  { %v6989_v58 = vrot.slane %v6975_v3, %v9696_v33  ;;  %v6994_v63 = vcombine.low %v3899_v17, %v3903_v41  ;;  %v7001_v60 = vrot.slane %v6991_v8, %v9696_v33  ;;  %v7008_v34 = vrot.slane %v6992_v57, %v9696_v33  ;;  %v7141_v31 = vpop.permute.xlu0 %7140  ;;  %v9103_v8 = vld [vmem:[%s12607_s0 + $0x8] sm:$0xff] }
 0x302   :  { %v7015_v10 = vrot.slane %v6993_v7, %v9696_v33  ;;  %v11703_v17 = vsub.s32 %v9669_v24, %v9666_v22  ;;  %v7608_v57 = vsub.f32 %v11012_v59, %v9103_v8  ;;  %v9105_v59 = vld [vmem:[%s12607_s0 + $0x18] sm:$0xff]  ;;  %vm7318_vm7 = vcmask 851712  }
 0x303   :  { %v11637_v12 = vpop.f32.mrb[32].mxu1  ;;  %v6990_v2 = vcombine.low %v6982_v32, %v6989_v58  ;;  %v7022_v45 = vrot.slane %v6994_v63, %v9696_v33  ;;  %v7023_v21 = vcombine.low %v7001_v60, %v7008_v34  ;;  %v11691_v1 = vpop.permute.xlu1 %7131  ;;  %v7236_v34 = vadd.s32 4294967288, %v9669_v24 }
 0x304   :  { %1825 = vst.msk [vmem:[%s12610_s3 + $0x108] sm:$0xff] %vm92_vm0, %v11637_v12  ;;  %v11647_v44 = vpop.f32.mrb[33].mxu1  ;;  %v7250_v32 = vadd.s32 4294967272, %v9669_v24  ;;  %vm7325_vm8 = vcmask 917312   ;;  %vm7332_vm9 = vcmask 982912   ;;  %vm7339_vm10 = vcmask 1048512  }
 0x305   :  { %1824 = vst.msk [vmem:[%s12610_s3 + $0x100] sm:$0xff] %vm92_vm0, %v11647_v44  ;;  %7227 = vperm.xlu0 %9102, %v6990_v2   ;;  %v7024_v13 = vcombine.low %v7015_v10, %v7022_v45  ;;  %v7031_v35 = vrot.slane %v7023_v21, %v9696_v33  ;;  %v7147_v45 = vpop.permute.xlu0 %7146  ;;  %v7243_v10 = vadd.s32 4294967280, %v9669_v24  ;;  %v11706_v41 = vsub.s32 %v7236_v34, %v9666_v22  ;;  %v9104_v2 = vld [vmem:[%s12607_s0] sm:$0xff] }
 0x306   :  { %v11716_v7 = vsub.s32 %v7250_v32, %v9666_v22  ;;  %v7607_v60 = vsub.f32 %v11025_v53, %v9104_v2 }
 0x307   :  { %v7038_v23 = vrot.slane %v7024_v13, %v9696_v33  ;;  %v7138_v50 = vpop.permute.xlu1 %7137  ;;  %v11709_v58 = vsub.s32 %v7243_v10, %v9666_v22  ;;  %v7427_v63 = vrot.slane %v7141_v31, %v11706_v41  ;;  %v9106_v31 = vld [vmem:[%s12607_s0 + $0x10] sm:$0xff] }
 0x308   :  { %v7423_v21 = vrot.slane %v7138_v50, %v11703_v17  ;;  %v7609_v34 = vsub.f32 %v11048_v4, %v9106_v31  ;;  %v7437_v53 = vrot.slane %v7147_v45, %v11716_v7  ;;  %v7671_v10 = vmul.f32 %v7607_v60, %v7607_v60 }
 0x309   :  { %v7039_v55 = vcombine.low %v7031_v35, %v7038_v23  ;;  %v7144_v13 = vpop.permute.xlu0 %7143  ;;  %v7672_v23 = vmul.f32 %v7608_v57, %v7608_v57 }
 0x30a   :  { %v7432_v35 = vrot.slane %v7144_v13, %v11709_v58  ;;  %v7428_v32 = vsel %vm7241_vm11, %v7427_v63, %v7423_v21  ;;  %v8321_v4 = vsel %vm92_vm0, %v7671_v10, 0.0  ;;  %v7673_v57 = vmul.f32 %v7609_v34, %v7609_v34  ;;  %v9107_v21 = vld [vmem:[%s12607_s0 + $0x28] sm:$0xff]  ;;  %v9109_v10 = vld [vmem:[%s12607_s0 + $0x38] sm:$0xff] }
 0x30b   :  { %7230 = vperm.xlu0 %9102, %v7039_v55   ;;  %v7610_v55 = vsub.f32 %v11038_v61, %v9105_v59  ;;  %v8322_v13 = vsel %vm92_vm0, %v7672_v23, 0.0  ;;  %v9108_v23 = vld [vmem:[%s12607_s0 + $0x20] sm:$0xff] }
 0x30c   :  { %v7433_v8 = vsel %vm7248_vm12, %v7432_v35, %v7428_v32  ;;  %v8323_v2 = vadd.f32 %v8322_v13, %v8321_v4  ;;  %v8324_v60 = vsel %vm92_vm0, %v7673_v57, 0.0  ;;  %v7612_v35 = vsub.f32 %v11059_v49, %v9107_v21  ;;  %v9110_v49 = vld [vmem:[%s12607_s0 + $0x30] sm:$0xff]  ;;  %v9112_v21 = vld [vmem:[%s12607_s0 + $0x40] sm:$0xff] }
 0x30d   :  { %v7674_v45 = vmul.f32 %v7610_v55, %v7610_v55  ;;  %v11748_v63 = vsel %vm7255_vm13, %v7437_v53, %v7433_v8  ;;  %v7611_v59 = vsub.f32 %v11068_v47, %v9108_v23  ;;  %v7614_v32 = vsub.f32 %v11081_v20, %v9109_v10 }
 0x30e   :  { %v8325_v55 = vadd.f32 %v8324_v60, %v8323_v2  ;;  %v7676_v34 = vmul.f32 %v7612_v35, %v7612_v35  ;;  %v7613_v8 = vsub.f32 %v11094_v42, %v9110_v49  ;;  %v9111_v60 = vld [vmem:[%s12607_s0 + $0x48] sm:$0xff]  ;;  %v7615_v35 = vsub.f32 %v11116_v11, %v9112_v21  ;;  %v9117_v21 = vld [vmem:[%s12607_s0 + $0x70] sm:$0xff] }
 0x30f   :  { %v8326_v31 = vsel %vm92_vm0, %v7674_v45, 0.0  ;;  %v7675_v53 = vmul.f32 %v7611_v59, %v7611_v59  ;;  %v7678_v57 = vmul.f32 %v7614_v32, %v7614_v32  ;;  %v7616_v20 = vsub.f32 %v11106_v48, %v9111_v60  ;;  %v9114_v48 = vld [vmem:[%s12607_s0 + $0x58] sm:$0xff] }
 0x310   :  { %v11682_v38 = vpop.f32.mrb[34].mxu1  ;;  %v8327_v13 = vadd.f32 %v8326_v31, %v8325_v55  ;;  %v7677_v45 = vmul.f32 %v7613_v8, %v7613_v8  ;;  %v8330_v2 = vsel %vm92_vm0, %v7676_v34, 0.0  ;;  %v7679_v59 = vmul.f32 %v7615_v35, %v7615_v35  ;;  %v9113_v55 = vld [vmem:[%s12607_s0 + $0x50] sm:$0xff]  ;;  %v9115_v8 = vld [vmem:[%s12607_s0 + $0x60] sm:$0xff] }
 0x311   :  { %1827 = vst.msk [vmem:[%s12610_s3 + $0x118] sm:$0xff] %vm92_vm0, %v11682_v38  ;;  %v11689_v3 = vpop.f32.mrb[35].mxu1  ;;  %v8328_v47 = vsel %vm92_vm0, %v7675_v53, 0.0  ;;  %v7617_v31 = vsub.f32 %v11138_v54, %v9113_v55  ;;  %v8334_v34 = vsel %vm92_vm0, %v7678_v57, 0.0  ;;  %v7618_v10 = vsub.f32 %v11130_v16, %v9114_v48  ;;  %v9118_v55 = vld [vmem:[%s12607_s0 + $0x78] sm:$0xff]  ;;  %v9119_v48 = vld [vmem:[%s12607_s0 + $0x80] sm:$0xff] }
 0x312   :  { %1826 = vst.msk [vmem:[%s12610_s3 + $0x110] sm:$0xff] %vm92_vm0, %v11689_v3  ;;  %v8329_v4 = vadd.f32 %v8328_v47, %v8327_v13  ;;  %v8332_v23 = vsel %vm92_vm0, %v7677_v45, 0.0  ;;  %v7680_v32 = vmul.f32 %v7616_v20, %v7616_v20  ;;  %v8336_v13 = vsel %vm92_vm0, %v7679_v59, 0.0 }
 0x313   :  { %v7681_v49 = vmul.f32 %v7617_v31, %v7617_v31  ;;  %v7619_v54 = vsub.f32 %v11162_v6, %v9115_v8  ;;  %v7682_v57 = vmul.f32 %v7618_v10, %v7618_v10  ;;  %v9116_v6 = vld [vmem:[%s12607_s0 + $0x68] sm:$0xff]  ;;  %v7621_v35 = vsub.f32 %v11200_v9, %v9117_v21 }
 0x314   :  { %v8331_v42 = vadd.f32 %v8330_v2, %v8329_v4  ;;  %v7620_v45 = vsub.f32 %v11151_v43, %v9116_v6  ;;  %v8338_v2 = vsel %vm92_vm0, %v7680_v32, 0.0  ;;  %v7622_v43 = vsub.f32 %v11187_v40, %v9118_v55 }
 0x315   :  { %v8340_v60 = vsel %vm92_vm0, %v7681_v49, 0.0  ;;  %v7683_v20 = vmul.f32 %v7619_v54, %v7619_v54  ;;  %v7623_v9 = vsub.f32 %v11264_v0, %v9119_v48  ;;  %v9120_v49 = vld [vmem:[%s12607_s0 + $0x88] sm:$0xff] }
 0x316   :  { %v8333_v53 = vadd.f32 %v8332_v23, %v8331_v42  ;;  %v8342_v23 = vsel %vm92_vm0, %v7682_v57, 0.0  ;;  %v7684_v31 = vmul.f32 %v7620_v45, %v7620_v45  ;;  %v7624_v8 = vsub.f32 %v11252_v39, %v9120_v49  ;;  %v9126_v49 = vld [vmem:[%s12607_s0 + $0xb8] sm:$0xff] }
 0x318   :  { %v8335_v16 = vadd.f32 %v8334_v34, %v8333_v53  ;;  %v8344_v34 = vsel %vm92_vm0, %v7683_v20, 0.0  ;;  %v7685_v53 = vmul.f32 %v7621_v35, %v7621_v35  ;;  %v8346_v40 = vsel %vm92_vm0, %v7684_v31, 0.0  ;;  %v9122_v20 = vld [vmem:[%s12607_s0 + $0x98] sm:$0xff]  ;;  %v9124_v31 = vld [vmem:[%s12607_s0 + $0xa8] sm:$0xff] }
 0x319   :  { %v7626_v21 = vsub.f32 %v11320_v56, %v9122_v20 }
 0x31a   :  { %v8337_v4 = vadd.f32 %v8336_v13, %v8335_v16  ;;  %v7686_v13 = vmul.f32 %v7622_v43, %v7622_v43  ;;  %v8348_v54 = vsel %vm92_vm0, %v7685_v53, 0.0  ;;  %v7687_v16 = vmul.f32 %v7623_v9, %v7623_v9  ;;  %v9125_v9 = vld [vmem:[%s12607_s0 + $0xb0] sm:$0xff] }
 0x31b   :  { %v7690_v53 = vmul.f32 %v7626_v21, %v7626_v21 }
 0x31c   :  { %v8339_v42 = vadd.f32 %v8338_v2, %v8337_v4  ;;  %v9121_v4 = vld [vmem:[%s12607_s0 + $0x90] sm:$0xff]  ;;  %v8350_v45 = vsel %vm92_vm0, %v7686_v13, 0.0  ;;  %v7688_v2 = vmul.f32 %v7624_v8, %v7624_v8  ;;  %v7630_v8 = vsub.f32 %v11397_v52, %v9126_v49 }
 0x31d   :  { %v11735_v50 = vpop.f32.mrb[36].mxu1  ;;  %v7625_v0 = vsub.f32 %v11329_v51, %v9121_v4  ;;  %v12686_v49 = vld [vmem:[#allocation35_spill] sm:$0xff] }
 0x31e   :  { %1829 = vst.msk [vmem:[%s12610_s3 + $0x128] sm:$0xff] %vm92_vm0, %v11735_v50  ;;  %v11744_v61 = vpop.f32.mrb[37].mxu1  ;;  %v8341_v59 = vadd.f32 %v8340_v60, %v8339_v42  ;;  %v8352_v60 = vsel %vm92_vm0, %v7687_v16, 0.0  ;;  %v9123_v42 = vld [vmem:[%s12607_s0 + $0xa0] sm:$0xff]  ;;  %v8354_v55 = vsel %vm92_vm0, %v7688_v2, 0.0  ;;  %v12684_v2 = vld [vmem:[#allocation30_spill] sm:$0xff] }
 0x31f   :  { %1828 = vst.msk [vmem:[%s12610_s3 + $0x120] sm:$0xff] %vm92_vm0, %v11744_v61  ;;  %v7689_v35 = vmul.f32 %v7625_v0, %v7625_v0  ;;  %v9127_v16 = vld [vmem:[%s12607_s0 + $0xc0] sm:$0xff] }
 0x320   :  { %v8343_v10 = vadd.f32 %v8342_v23, %v8341_v59  ;;  %v7627_v23 = vsub.f32 %v11365_v5, %v9123_v42  ;;  %v7629_v5 = vsub.f32 %v11407_v19, %v9125_v9  ;;  %v7631_v19 = vsub.f32 %v11450_v37, %v9127_v16  ;;  %v12685_v9 = vld [vmem:[#allocation36_spill] sm:$0xff] }
 0x321   :  { %v8356_v56 = vsel %vm92_vm0, %v7689_v35, 0.0  ;;  %v9129_v35 = vld [vmem:[%s12607_s0 + $0xd0] sm:$0xff] }
 0x322   :  { %v8345_v32 = vadd.f32 %v8344_v34, %v8343_v10  ;;  %v7628_v34 = vsub.f32 %v11358_v62, %v9124_v31  ;;  %v7691_v48 = vmul.f32 %v7627_v23, %v7627_v23  ;;  %v8358_v62 = vsel %vm92_vm0, %v7690_v53, 0.0 }
 0x323   :  { %v7695_v21 = vmul.f32 %v7631_v19, %v7631_v19  ;;  %v7633_v42 = vsub.f32 %v11498_v46, %v9129_v35  ;;  %v9134_v19 = vld [vmem:[%s12607_s0 + $0x100] sm:$0xff] }
 0x324   :  { %v8347_v6 = vadd.f32 %v8346_v40, %v8345_v32  ;;  %v7692_v13 = vmul.f32 %v7628_v34, %v7628_v34  ;;  %v8360_v40 = vsel %vm92_vm0, %v7691_v48, 0.0  ;;  %v9131_v48 = vld [vmem:[%s12607_s0 + $0xe0] sm:$0xff] }
 0x325   :  { %v8368_v53 = vsel %vm92_vm0, %v7695_v21, 0.0  ;;  %v7635_v46 = vsub.f32 %v12685_v9, %v9131_v48 }
 0x326   :  { %v8349_v51 = vadd.f32 %v8348_v54, %v8347_v6  ;;  %v7693_v54 = vmul.f32 %v7629_v5, %v7629_v5  ;;  %v8362_v6 = vsel %vm92_vm0, %v7692_v13, 0.0 }
 0x328   :  { %v8351_v59 = vadd.f32 %v8350_v45, %v8349_v51  ;;  %v9128_v51 = vld [vmem:[%s12607_s0 + $0xc8] sm:$0xff]  ;;  %v8364_v20 = vsel %vm92_vm0, %v7693_v54, 0.0  ;;  %v9133_v54 = vld [vmem:[%s12607_s0 + $0xf0] sm:$0xff] }
 0x329   :  { %v7632_v37 = vsub.f32 %v12684_v2, %v9128_v51  ;;  %v7637_v16 = vsub.f32 %v11587_v14, %v9133_v54  ;;  %v9136_v14 = vld [vmem:[%s12607_s0 + $0xf8] sm:$0xff]  ;;  %v9141_v54 = vld [vmem:[%s12607_s0 + $0x130] sm:$0xff] }
 0x32a   :  { %v11793_v11 = vpop.f32.mrb[38].mxu1  ;;  %v8353_v43 = vadd.f32 %v8352_v60, %v8351_v59  ;;  %v7694_v60 = vmul.f32 %v7630_v8, %v7630_v8  ;;  %v7638_v21 = vsub.f32 %v11576_v18, %v9136_v14 }
 0x32b   :  { %1831 = vst.msk [vmem:[%s12610_s3 + $0x138] sm:$0xff] %vm92_vm0, %v11793_v11  ;;  %v11805_v47 = vpop.f32.mrb[39].mxu1  ;;  %v7701_v35 = vmul.f32 %v7637_v16, %v7637_v16 }
 0x32c   :  { %1830 = vst.msk [vmem:[%s12610_s3 + $0x130] sm:$0xff] %vm92_vm0, %v11805_v47  ;;  %v8355_v10 = vadd.f32 %v8354_v55, %v8353_v43  ;;  %v7696_v55 = vmul.f32 %v7632_v37, %v7632_v37  ;;  %v9130_v43 = vld [vmem:[%s12607_s0 + $0xd8] sm:$0xff]  ;;  %v8366_v34 = vsel %vm92_vm0, %v7694_v60, 0.0  ;;  %v7645_v16 = vsub.f32 %v11805_v47, %v9141_v54  ;;  %v9143_v47 = vld [vmem:[%s12607_s0 + $0x140] sm:$0xff] }
 0x32d   :  { %v7634_v31 = vsub.f32 %v11487_v36, %v9130_v43  ;;  %v9132_v36 = vld [vmem:[%s12607_s0 + $0xe8] sm:$0xff]  ;;  %v8380_v9 = vsel %vm92_vm0, %v7701_v35, 0.0 }
 0x32e   :  { %v8357_v32 = vadd.f32 %v8356_v56, %v8355_v10  ;;  %v7697_v56 = vmul.f32 %v7633_v42, %v7633_v42  ;;  %v8370_v10 = vsel %vm92_vm0, %v7696_v55, 0.0  ;;  %v7636_v8 = vsub.f32 %v12686_v49, %v9132_v36 }
 0x32f   :  { %v7698_v13 = vmul.f32 %v7634_v31, %v7634_v31  ;;  %v7702_v31 = vmul.f32 %v7638_v21, %v7638_v21  ;;  %v7709_v21 = vmul.f32 %v7645_v16, %v7645_v16 }
 0x330   :  { %v8359_v4 = vadd.f32 %v8358_v62, %v8357_v32  ;;  %v8372_v62 = vsel %vm92_vm0, %v7697_v56, 0.0 }
 0x331   :  { %v8374_v37 = vsel %vm92_vm0, %v7698_v13, 0.0 }
 0x332   :  { %v8361_v45 = vadd.f32 %v8360_v40, %v8359_v4  ;;  %v7699_v40 = vmul.f32 %v7635_v46, %v7635_v46  ;;  %v7639_v4 = vsub.f32 %v11647_v44, %v9134_v19 }
 0x334   :  { %v8363_v23 = vadd.f32 %v8362_v6, %v8361_v45  ;;  %v9135_v45 = vld [vmem:[%s12607_s0 + $0x108] sm:$0xff]  ;;  %v7703_v42 = vmul.f32 %v7639_v4, %v7639_v4 }
 0x335   :  { %v7640_v51 = vsub.f32 %v11637_v12, %v9135_v45  ;;  %v8376_v12 = vsel %vm92_vm0, %v7699_v40, 0.0 }
 0x336   :  { %v8365_v59 = vadd.f32 %v8364_v20, %v8363_v23  ;;  %v7700_v20 = vmul.f32 %v7636_v8, %v7636_v8  ;;  %v9137_v23 = vld [vmem:[%s12607_s0 + $0x110] sm:$0xff]  ;;  %v8289_v46 = vmul.f32 0.0, %v7703_v42 }
 0x337   :  { %v11842_v57 = vpop.f32.mrb[40].mxu1  ;;  %v7704_v55 = vmul.f32 %v7640_v51, %v7640_v51 }
 0x338   :  { %1833 = vst.msk [vmem:[%s12610_s3 + $0x148] sm:$0xff] %vm92_vm0, %v11842_v57  ;;  %v11849_v39 = vpop.f32.mrb[41].mxu1  ;;  %v8367_v5 = vadd.f32 %v8366_v34, %v8365_v59  ;;  %v7641_v59 = vsub.f32 %v11689_v3, %v9137_v23  ;;  %v9138_v34 = vld [vmem:[%s12607_s0 + $0x118] sm:$0xff]  ;;  %v9139_v3 = vld [vmem:[%s12607_s0 + $0x120] sm:$0xff]  ;;  %v8378_v48 = vsel %vm92_vm0, %v7700_v20, 0.0 }
 0x339   :  { %1832 = vst.msk [vmem:[%s12610_s3 + $0x140] sm:$0xff] %vm92_vm0, %v11849_v39  ;;  %v7643_v56 = vsub.f32 %v11744_v61, %v9139_v3  ;;  %v8384_v61 = vsel %vm92_vm0, %v8289_v46, 0.0  ;;  %v9142_v20 = vld [vmem:[%s12607_s0 + $0x138] sm:$0xff] }
 0x33a   :  { %v8369_v32 = vadd.f32 %v8368_v53, %v8367_v5  ;;  %v7642_v53 = vsub.f32 %v11682_v38, %v9138_v34  ;;  %v7705_v5 = vmul.f32 %v7641_v59, %v7641_v59  ;;  %v9140_v38 = vld [vmem:[%s12607_s0 + $0x128] sm:$0xff]  ;;  %v7646_v14 = vsub.f32 %v11793_v11, %v9142_v20 }
 0x33b   :  { %v7644_v49 = vsub.f32 %v11735_v50, %v9140_v38  ;;  %v7707_v8 = vmul.f32 %v7643_v56, %v7643_v56  ;;  %v9144_v11 = vld [vmem:[%s12607_s0 + $0x148] sm:$0xff] }
 0x33c   :  { %v8371_v6 = vadd.f32 %v8370_v10, %v8369_v32  ;;  %v8290_v32 = vmul.f32 0.0, %v7704_v55  ;;  %v7706_v36 = vmul.f32 %v7642_v53, %v7642_v53  ;;  %v8291_v40 = vmul.f32 0.0, %v7705_v5  ;;  %v9145_v53 = vld [vmem:[%s12607_s0 + $0x150] sm:$0xff]  ;;  %v9146_v5 = vld [vmem:[%s12607_s0 + $0x158] sm:$0xff] }
 0x33d   :  { %v7708_v51 = vmul.f32 %v7644_v49, %v7644_v49  ;;  %v7648_v23 = vsub.f32 %v11842_v57, %v9144_v11 }
 0x33e   :  { %v8373_v60 = vadd.f32 %v8372_v62, %v8371_v6  ;;  %v8382_v62 = vsel %vm92_vm0, %v7702_v31, 0.0  ;;  %v8386_v4 = vsel %vm92_vm0, %v8290_v32, 0.0  ;;  %v8292_v45 = vmul.f32 0.0, %v7706_v36  ;;  %v9147_v32 = vld [vmem:[%s12607_s0 + $0x160] sm:$0xff] }
 0x33f   :  { %v8295_v31 = vmul.f32 0.0, %v7709_v21 }
 0x340   :  { %v8375_v18 = vadd.f32 %v8374_v37, %v8373_v60  ;;  %v8293_v37 = vmul.f32 0.0, %v7707_v8  ;;  %v8388_v60 = vsel %vm92_vm0, %v8291_v40, 0.0  ;;  %v9148_v40 = vld [vmem:[%s12607_s0 + $0x168] sm:$0xff] }
 0x341   :  { %v8396_v38 = vsel %vm92_vm0, %v8295_v31, 0.0 }
 0x342   :  { %v8377_v43 = vadd.f32 %v8376_v12, %v8375_v18  ;;  %v7647_v12 = vsub.f32 %v11849_v39, %v9143_v47  ;;  %v8390_v39 = vsel %vm92_vm0, %v8292_v45, 0.0  ;;  %v8294_v18 = vmul.f32 0.0, %v7708_v51  ;;  %v9149_v45 = vld [vmem:[%s12607_s0 + $0x170] sm:$0xff] }
 0x343   :  { %v8392_v55 = vsel %vm92_vm0, %v8293_v37, 0.0 }
 0x344   :  { %v11886_v0 = vpop.f32.mrb[42].mxu1  ;;  %v8379_v10 = vadd.f32 %v8378_v48, %v8377_v43  ;;  %v7710_v43 = vmul.f32 %v7646_v14, %v7646_v14  ;;  %v7711_v34 = vmul.f32 %v7647_v12, %v7647_v12  ;;  %v7712_v48 = vmul.f32 %v7648_v23, %v7648_v23 }
 0x345   :  { %1835 = vst.msk [vmem:[%s12610_s3 + $0x158] sm:$0xff] %vm92_vm0, %v11886_v0  ;;  %v11893_v52 = vpop.f32.mrb[43].mxu1  ;;  %v8394_v57 = vsel %vm92_vm0, %v8294_v18, 0.0 }
 0x346   :  { %1834 = vst.msk [vmem:[%s12610_s3 + $0x150] sm:$0xff] %vm92_vm0, %v11893_v52  ;;  %v8381_v13 = vadd.f32 %v8380_v9, %v8379_v10  ;;  %v7649_v3 = vsub.f32 %v11893_v52, %v9145_v53  ;;  %v7650_v10 = vsub.f32 %v11886_v0, %v9146_v5  ;;  %v8296_v36 = vmul.f32 0.0, %v7710_v43  ;;  %v9153_v5 = vld [vmem:[%s12607_s0 + $0x190] sm:$0xff] }
 0x347   :  { %v8297_v49 = vmul.f32 0.0, %v7711_v34 }
 0x348   :  { %v8383_v19 = vadd.f32 %v8382_v62, %v8381_v13  ;;  %v7713_v8 = vmul.f32 %v7649_v3, %v7649_v3  ;;  %v8298_v62 = vmul.f32 0.0, %v7712_v48  ;;  %v9152_v48 = vld [vmem:[%s12607_s0 + $0x188] sm:$0xff] }
 0x34a   :  { %v8385_v6 = vadd.f32 %v8384_v61, %v8383_v19  ;;  %v8398_v19 = vsel %vm92_vm0, %v8296_v36, 0.0  ;;  %v8402_v11 = vsel %vm92_vm0, %v8298_v62, 0.0 }
 0x34c   :  { %v8387_v42 = vadd.f32 %v8386_v4, %v8385_v6  ;;  %v8400_v4 = vsel %vm92_vm0, %v8297_v49, 0.0  ;;  %v8299_v6 = vmul.f32 0.0, %v7713_v8  ;;  %v9155_v49 = vld [vmem:[%s12607_s0 + $0x1a0] sm:$0xff] }
 0x34e   :  { %v8389_v59 = vadd.f32 %v8388_v60, %v8387_v42  ;;  %v9150_v60 = vld [vmem:[%s12607_s0 + $0x178] sm:$0xff] }
 0x350   :  { %v8391_v56 = vadd.f32 %v8390_v39, %v8389_v59 }
 0x351   :  { %v11938_v2 = vpop.f32.mrb[44].mxu1 }
 0x352   :  { %1837 = vst.msk [vmem:[%s12610_s3 + $0x168] sm:$0xff] %vm92_vm0, %v11938_v2  ;;  %v11950_v44 = vpop.f32.mrb[45].mxu1  ;;  %v8393_v46 = vadd.f32 %v8392_v55, %v8391_v56  ;;  %v7652_v54 = vsub.f32 %v11938_v2, %v9148_v40 }
 0x353   :  { %1836 = vst.msk [vmem:[%s12610_s3 + $0x160] sm:$0xff] %vm92_vm0, %v11950_v44  ;;  %v7651_v13 = vsub.f32 %v11950_v44, %v9147_v32  ;;  %v7714_v44 = vmul.f32 %v7650_v10, %v7650_v10 }
 0x354   :  { %v8395_v0 = vadd.f32 %v8394_v57, %v8393_v46  ;;  %v7716_v47 = vmul.f32 %v7652_v54, %v7652_v54 }
 0x355   :  { %v7715_v16 = vmul.f32 %v7651_v13, %v7651_v13  ;;  %v8300_v2 = vmul.f32 0.0, %v7714_v44 }
 0x356   :  { %v8397_v61 = vadd.f32 %v8396_v38, %v8395_v0  ;;  %v8302_v34 = vmul.f32 0.0, %v7716_v47 }
 0x357   :  { %v8301_v12 = vmul.f32 0.0, %v7715_v16  ;;  %v8406_v43 = vsel %vm92_vm0, %v8300_v2, 0.0 }
 0x358   :  { %v8399_v37 = vadd.f32 %v8398_v19, %v8397_v61 }
 0x359   :  { %v8408_v53 = vsel %vm92_vm0, %v8301_v12, 0.0 }
 0x35a   :  { %v8401_v21 = vadd.f32 %v8400_v4, %v8399_v37 }
 0x35c   :  { %v8403_v59 = vadd.f32 %v8402_v11, %v8401_v21  ;;  %v9157_v21 = vld [vmem:[%s12607_s0 + $0x1b0] sm:$0xff] }
 0x35e   :  { %v9030_v50 = vpop.f32.mrb[46].mxu1 }
 0x35f   :  { %1839 = vst.msk [vmem:[%s12610_s3 + $0x178] sm:$0xff] %vm92_vm0, %v9030_v50  ;;  %v1703_v35 = vpop.f32.mrb[47].mxu1  ;;  %v7654_v20 = vsub.f32 %v9030_v50, %v9150_v60  ;;  %v9151_v50 = vld [vmem:[%s12607_s0 + $0x180] sm:$0xff] }
 0x360   :  { %1838 = vst.msk [vmem:[%s12610_s3 + $0x170] sm:$0xff] %vm92_vm0, %v1703_v35  ;;  %v7653_v51 = vsub.f32 %v1703_v35, %v9149_v45  ;;  %v8404_v35 = vsel %vm92_vm0, %v8299_v6, 0.0  ;;  %v9156_v45 = vld [vmem:[%s12607_s0 + $0x1a8] sm:$0xff] }
 0x361   :  { %v7718_v18 = vmul.f32 %v7654_v20, %v7654_v20  ;;  %v8405_v31 = vadd.f32 %v8404_v35, %v8403_v59 }
 0x362   :  { %v7717_v23 = vmul.f32 %v7653_v51, %v7653_v51 }
 0x363   :  { %v8407_v32 = vadd.f32 %v8406_v43, %v8405_v31  ;;  %v8304_v13 = vmul.f32 0.0, %v7718_v18 }
 0x364   :  { %v8303_v56 = vmul.f32 0.0, %v7717_v23 }
 0x365   :  { %v9033_v9 = vpop.f32.mrb[48].mxu1  ;;  %v8409_v36 = vadd.f32 %v8408_v53, %v8407_v32  ;;  %v8414_v19 = vsel %vm92_vm0, %v8304_v13, 0.0 }
 0x366   :  { %1841 = vst.msk [vmem:[%s12610_s3 + $0x188] sm:$0xff] %vm92_vm0, %v9033_v9  ;;  %v1713_v52 = vpop.f32.mrb[49].mxu1  ;;  %v7656_v57 = vsub.f32 %v9033_v9, %v9152_v48  ;;  %v9154_v9 = vld [vmem:[%s12607_s0 + $0x198] sm:$0xff]  ;;  %v8412_v0 = vsel %vm92_vm0, %v8303_v56, 0.0 }
 0x367   :  { %1840 = vst.msk [vmem:[%s12610_s3 + $0x180] sm:$0xff] %vm92_vm0, %v1713_v52  ;;  %v7655_v39 = vsub.f32 %v1713_v52, %v9151_v50  ;;  %v8410_v52 = vsel %vm92_vm0, %v8302_v34, 0.0  ;;  %v9159_v34 = vld [vmem:[%s12607_s0 + $0x1c0] sm:$0xff] }
 0x368   :  { %v7720_v62 = vmul.f32 %v7656_v57, %v7656_v57  ;;  %v8411_v54 = vadd.f32 %v8410_v52, %v8409_v36 }
 0x369   :  { %v7719_v46 = vmul.f32 %v7655_v39, %v7655_v39  ;;  %v9158_v39 = vld [vmem:[%s12607_s0 + $0x1b8] sm:$0xff] }
 0x36a   :  { %v8413_v4 = vadd.f32 %v8412_v0, %v8411_v54  ;;  %v8306_v60 = vmul.f32 0.0, %v7720_v62 }
 0x36b   :  { %v8305_v61 = vmul.f32 0.0, %v7719_v46 }
 0x36c   :  { %v8415_v47 = vadd.f32 %v8414_v19, %v8413_v4  ;;  %v8418_v23 = vsel %vm92_vm0, %v8306_v60, 0.0  ;;  %v9161_v4 = vld [vmem:[%s12607_s0 + $0x1d8] sm:$0xff] }
 0x36d   :  { %v9036_v14 = vpop.f32.mrb[50].mxu1  ;;  %v8416_v20 = vsel %vm92_vm0, %v8305_v61, 0.0 }
 0x36e   :  { %1843 = vst.msk [vmem:[%s12610_s3 + $0x198] sm:$0xff] %vm92_vm0, %v9036_v14  ;;  %v1723_v42 = vpop.f32.mrb[51].mxu1  ;;  %v7658_v38 = vsub.f32 %v9036_v14, %v9154_v9  ;;  %v8417_v12 = vadd.f32 %v8416_v20, %v8415_v47 }
 0x36f   :  { %1842 = vst.msk [vmem:[%s12610_s3 + $0x190] sm:$0xff] %vm92_vm0, %v1723_v42  ;;  %v7657_v10 = vsub.f32 %v1723_v42, %v9153_v5 }
 0x370   :  { %v7722_v6 = vmul.f32 %v7658_v38, %v7658_v38  ;;  %v8419_v43 = vadd.f32 %v8418_v23, %v8417_v12 }
 0x371   :  { %v9039_v55 = vpop.f32.mrb[52].mxu1  ;;  %v7721_v44 = vmul.f32 %v7657_v10, %v7657_v10  ;;  %v9160_v10 = vld [vmem:[%s12607_s0 + $0x1c8] sm:$0xff] }
 0x372   :  { %1845 = vst.msk [vmem:[%s12610_s3 + $0x1a8] sm:$0xff] %vm92_vm0, %v9039_v55  ;;  %v1733_v3 = vpop.f32.mrb[53].mxu1  ;;  %v7660_v51 = vsub.f32 %v9039_v55, %v9156_v45  ;;  %v8308_v42 = vmul.f32 0.0, %v7722_v6 }
 0x373   :  { %1844 = vst.msk [vmem:[%s12610_s3 + $0x1a0] sm:$0xff] %vm92_vm0, %v1733_v3  ;;  %v7659_v8 = vsub.f32 %v1733_v3, %v9155_v49  ;;  %v8307_v14 = vmul.f32 0.0, %v7721_v44 }
 0x374   :  { %v7724_v11 = vmul.f32 %v7660_v51, %v7660_v51  ;;  %v8422_v3 = vsel %vm92_vm0, %v8308_v42, 0.0  ;;  %v9162_v51 = vld [vmem:[%s12607_s0 + $0x1d0] sm:$0xff] }
 0x375   :  { %v7723_v37 = vmul.f32 %v7659_v8, %v7659_v8  ;;  %v8420_v50 = vsel %vm92_vm0, %v8307_v14, 0.0 }
 0x376   :  { %v8421_v56 = vadd.f32 %v8420_v50, %v8419_v43  ;;  %v8310_v48 = vmul.f32 0.0, %v7724_v11  ;;  %v9163_v50 = vld [vmem:[%s12607_s0 + $0x1e8] sm:$0xff] }
 0x377   :  { %v9042_v40 = vpop.f32.mrb[54].mxu1  ;;  %v8309_v35 = vmul.f32 0.0, %v7723_v37 }
 0x378   :  { %1847 = vst.msk [vmem:[%s12610_s3 + $0x1b8] sm:$0xff] %vm92_vm0, %v9042_v40  ;;  %v1743_v16 = vpop.f32.mrb[55].mxu1  ;;  %v7662_v59 = vsub.f32 %v9042_v40, %v9158_v39  ;;  %v8423_v52 = vadd.f32 %v8422_v3, %v8421_v56  ;;  %v8426_v36 = vsel %vm92_vm0, %v8310_v48, 0.0 }
 0x379   :  { %1846 = vst.msk [vmem:[%s12610_s3 + $0x1b0] sm:$0xff] %vm92_vm0, %v1743_v16  ;;  %v7661_v2 = vsub.f32 %v1743_v16, %v9157_v21  ;;  %v8424_v57 = vsel %vm92_vm0, %v8309_v35, 0.0 }
 0x37a   :  { %v7726_v46 = vmul.f32 %v7662_v59, %v7662_v59  ;;  %v8425_v9 = vadd.f32 %v8424_v57, %v8423_v52 }
 0x37b   :  { %v7725_v18 = vmul.f32 %v7661_v2, %v7661_v2 }
 0x37c   :  { %v8312_v38 = vmul.f32 0.0, %v7726_v46  ;;  %v8427_v62 = vadd.f32 %v8426_v36, %v8425_v9 }
 0x37d   :  { %v8311_v5 = vmul.f32 0.0, %v7725_v18  ;;  %v9164_v18 = vld [vmem:[%s12607_s0 + $0x1e0] sm:$0xff] }
 0x37e   :  { %v8430_v44 = vsel %vm92_vm0, %v8312_v38, 0.0  ;;  %v12689_v38 = vld [vmem:[#allocation6_spill] sm:$0xff] }
 0x37f   :  { %v9045_v55 = vpop.f32.mrb[56].mxu1  ;;  %v8428_v49 = vsel %vm92_vm0, %v8311_v5, 0.0 }
 0x380   :  { %1849 = vst.msk [vmem:[%s12610_s3 + $0x1c8] sm:$0xff] %vm92_vm0, %v9045_v55  ;;  %v1753_v31 = vpop.f32.mrb[57].mxu1  ;;  %v7664_v32 = vsub.f32 %v9045_v55, %v9160_v10  ;;  %v8429_v61 = vadd.f32 %v8428_v49, %v8427_v62 }
 0x381   :  { %1848 = vst.msk [vmem:[%s12610_s3 + $0x1c0] sm:$0xff] %vm92_vm0, %v1753_v31  ;;  %v7663_v53 = vsub.f32 %v1753_v31, %v9159_v34 }
 0x382   :  { %v7728_v8 = vmul.f32 %v7664_v32, %v7664_v32  ;;  %v8431_v19 = vadd.f32 %v8430_v44, %v8429_v61  ;;  %v9165_v44 = vld [vmem:[%s12607_s0 + $0x1f8] sm:$0xff] }
 0x383   :  { %v7727_v13 = vmul.f32 %v7663_v53, %v7663_v53  ;;  %v12687_v53 = vld [vmem:[#allocation7_spill] sm:$0xff] }
 0x384   :  { %v8314_v40 = vmul.f32 0.0, %v7728_v8  ;;  %v3171_v3 = vrot.slane %v12687_v53, %v9672_v25  ;;  %v3175_v57 = vrot.slane %v12687_v53, %v9675_v15  ;;  %v3179_v46 = vrot.slane %v12687_v53, %v9678_v26  ;;  %v12690_v8 = vld [vmem:[#allocation8_spill] sm:$0xff] }
 0x385   :  { %v8313_v0 = vmul.f32 0.0, %v7727_v13  ;;  %v3183_v5 = vrot.slane %v12687_v53, %v9681_v27  ;;  %v3187_v10 = vrot.slane %v12687_v53, %v9684_v28  ;;  %v3191_v32 = vrot.slane %v12687_v53, %v9687_v29  ;;  %v12688_v13 = vld [vmem:[#allocation5_spill] sm:$0xff] }
 0x386   :  { %v8434_v14 = vsel %vm92_vm0, %v8314_v40, 0.0  ;;  %v3195_v52 = vrot.slane %v12687_v53, %v12688_v13  ;;  %v3199_v49 = vrot.slane %v12687_v53, %v12689_v38  ;;  %v3207_v62 = vrot.slane %v12690_v8, %v9675_v15 }
 0x387   :  { %v8432_v54 = vsel %vm92_vm0, %v8313_v0, 0.0  ;;  %v3203_v0 = vrot.slane %v12690_v8, %v9672_v25 }
 0x388   :  { %v8433_v60 = vadd.f32 %v8432_v54, %v8431_v19  ;;  %v3215_v19 = vrot.slane %v12690_v8, %v9681_v27 }
 0x38a   :  { %v8435_v2 = vadd.f32 %v8434_v14, %v8433_v60  ;;  %v3227_v14 = vrot.slane %v12690_v8, %v12688_v13 }
 0x38c   :  { %v9048_v16 = vpop.f32.mrb[58].mxu1 }
 0x38d   :  { %1851 = vst.msk [vmem:[%s12610_s3 + $0x1d8] sm:$0xff] %vm92_vm0, %v9048_v16  ;;  %v7666_v6 = vsub.f32 %v9048_v16, %v9161_v4  ;;  %v1763_v45 = vpop.f32.mrb[59].mxu1  ;;  %v3211_v16 = vrot.slane %v12690_v8, %v9678_v26 }
 0x38e   :  { %1850 = vst.msk [vmem:[%s12610_s3 + $0x1d0] sm:$0xff] %vm92_vm0, %v1763_v45  ;;  %v7665_v37 = vsub.f32 %v1763_v45, %v9162_v51  ;;  %v3219_v51 = vrot.slane %v12690_v8, %v9684_v28 }
 0x38f   :  { %v7730_v20 = vmul.f32 %v7666_v6, %v7666_v6  ;;  %v9166_v6 = vld [vmem:[%s12607_s0 + $0x1f0] sm:$0xff] }
 0x390   :  { %v7729_v21 = vmul.f32 %v7665_v37, %v7665_v37  ;;  %v3223_v37 = vrot.slane %v12690_v8, %v9687_v29 }
 0x391   :  { %v8316_v47 = vmul.f32 0.0, %v7730_v20 }
 0x392   :  { %v8315_v12 = vmul.f32 0.0, %v7729_v21  ;;  %v3231_v21 = vrot.slane %v12690_v8, %v12689_v38 }
 0x393   :  { %v8438_v23 = vsel %vm92_vm0, %v8316_v47, 0.0  ;;  %v5913_v47 = vcombine.low %v3171_v3, %v3175_v57 }
 0x394   :  { %v8436_v42 = vsel %vm92_vm0, %v8315_v12, 0.0  ;;  %v9051_v35 = vpop.f32.mrb[60].mxu1  ;;  %v5914_v12 = vcombine.low %v3179_v46, %v3183_v5 }
 0x395   :  { %v8437_v11 = vadd.f32 %v8436_v42, %v8435_v2  ;;  %1853 = vst.msk [vmem:[%s12610_s3 + $0x1e8] sm:$0xff] %vm92_vm0, %v9051_v35  ;;  %v7668_v39 = vsub.f32 %v9051_v35, %v9163_v50  ;;  %v1773_v59 = vpop.f32.mrb[61].mxu1  ;;  %v5915_v42 = vcombine.low %v3187_v10, %v3191_v32  ;;  %v5962_v50 = vcombine.low %v3203_v0, %v3207_v62 }
 0x396   :  { %1852 = vst.msk [vmem:[%s12610_s3 + $0x1e0] sm:$0xff] %vm92_vm0, %v1773_v59  ;;  %v7667_v55 = vsub.f32 %v1773_v59, %v9164_v18  ;;  %v5964_v59 = vcombine.low %v3219_v51, %v3223_v37  ;;  %v5965_v18 = vcombine.low %v3227_v14, %v3231_v21  ;;  %v5923_v32 = vrot.slane %v5913_v47, %v9696_v33 }
 0x397   :  { %v8439_v43 = vadd.f32 %v8438_v23, %v8437_v11  ;;  %v7732_v31 = vmul.f32 %v7668_v39, %v7668_v39  ;;  %v5916_v11 = vcombine.low %v3195_v52, %v3199_v49  ;;  %v5963_v39 = vcombine.low %v3211_v16, %v3215_v19  ;;  %v12692_v19 = vld [vmem:[#allocation10_spill] sm:$0xff] }
 0x398   :  { %v7731_v34 = vmul.f32 %v7667_v55, %v7667_v55  ;;  %v12691_v55 = vld [vmem:[#allocation9_spill] sm:$0xff]  ;;  %v5930_v52 = vrot.slane %v5914_v12, %v9696_v33  ;;  %v5972_v8 = vrot.slane %v5962_v50, %v9696_v33  ;;  %v5986_v62 = vrot.slane %v5964_v59, %v9696_v33 }
 0x399   :  { %v8318_v56 = vmul.f32 0.0, %v7732_v31  ;;  %v3239_v31 = vrot.slane %v12691_v55, %v9675_v15  ;;  %v3243_v53 = vrot.slane %v12691_v55, %v9678_v26  ;;  %v3247_v3 = vrot.slane %v12691_v55, %v9681_v27 }
 0x39a   :  { %v8317_v48 = vmul.f32 0.0, %v7731_v34  ;;  %v3255_v57 = vrot.slane %v12691_v55, %v9687_v29  ;;  %v3259_v46 = vrot.slane %v12691_v55, %v12688_v13  ;;  %v3263_v5 = vrot.slane %v12691_v55, %v12689_v38 }
 0x39b   :  { %v8442_v4 = vsel %vm92_vm0, %v8318_v56, 0.0  ;;  %v3251_v56 = vrot.slane %v12691_v55, %v9684_v28  ;;  %v5944_v49 = vrot.slane %v5916_v11, %v9696_v33  ;;  %v5979_v0 = vrot.slane %v5963_v39, %v9696_v33 }
 0x39c   :  { %v8440_v36 = vsel %vm92_vm0, %v8317_v48, 0.0  ;;  %v9054_v9 = vpop.f32.mrb[62].mxu1  ;;  %v6014_v16 = vcombine.low %v3259_v46, %v3263_v5  ;;  %v3279_v51 = vrot.slane %v12692_v19, %v9681_v27  ;;  %v3283_v37 = vrot.slane %v12692_v19, %v9684_v28 }
 0x39d   :  { %v8441_v61 = vadd.f32 %v8440_v36, %v8439_v43  ;;  %1855 = vst.msk [vmem:[%s12610_s3 + $0x1f8] sm:$0xff] %vm92_vm0, %v9054_v9  ;;  %v7670_v40 = vsub.f32 %v9054_v9, %v9165_v44  ;;  %v1783_v54 = vpop.f32.mrb[63].mxu1  ;;  %v3235_v43 = vrot.slane %v12691_v55, %v9672_v25  ;;  %v5937_v36 = vrot.slane %v5915_v42, %v9696_v33 }
 0x39e   :  { %1854 = vst.msk [vmem:[%s12610_s3 + $0x1f0] sm:$0xff] %vm92_vm0, %v1783_v54  ;;  %v7669_v45 = vsub.f32 %v1783_v54, %v9166_v6  ;;  %v6013_v54 = vcombine.low %v3251_v56, %v3255_v57  ;;  %v3271_v6 = vrot.slane %v12692_v19, %v9675_v15  ;;  %v3295_v14 = vrot.slane %v12692_v19, %v12689_v38 }
 0x39f   :  { %v7734_v60 = vmul.f32 %v7670_v40, %v7670_v40  ;;  %v8443_v20 = vadd.f32 %v8442_v4, %v8441_v61  ;;  %v5993_v61 = vrot.slane %v5965_v18, %v9696_v33  ;;  %v6011_v44 = vcombine.low %v3235_v43, %v3239_v31  ;;  %v12693_v18 = vld [vmem:[#allocation11_spill] sm:$0xff] }
 0x3a0   :  { %v7733_v2 = vmul.f32 %v7669_v45, %v7669_v45  ;;  %v6012_v40 = vcombine.low %v3243_v53, %v3247_v3  ;;  %v3267_v4 = vrot.slane %v12692_v19, %v9672_v25  ;;  %v3275_v45 = vrot.slane %v12692_v19, %v9678_v26 }
 0x3a1   :  { %v8320_v35 = vmul.f32 0.0, %v7734_v60  ;;  %v3287_v60 = vrot.slane %v12692_v19, %v9687_v29  ;;  %v5945_v21 = vcombine.low %v5923_v32, %v5930_v52  ;;  %v5994_v47 = vcombine.low %v5972_v8, %v5979_v0 }
 0x3a2   :  { %v8319_v23 = vmul.f32 0.0, %v7733_v2  ;;  %v5946_v2 = vcombine.low %v5937_v36, %v5944_v49  ;;  %v5995_v12 = vcombine.low %v5986_v62, %v5993_v61  ;;  %v6021_v42 = vrot.slane %v6011_v44, %v9696_v33 }
 0x3a3   :  { %v8446_v10 = vsel %vm92_vm0, %v8320_v35, 0.0  ;;  %v6028_v11 = vrot.slane %v6012_v40, %v9696_v33  ;;  %v6035_v35 = vrot.slane %v6013_v54, %v9696_v33  ;;  %v6060_v50 = vcombine.low %v3267_v4, %v3271_v6  ;;  %v12694_v54 = vld [vmem:[#allocation13_spill] sm:$0xff] }
 0x3a4   :  { %v8444_v34 = vsel %vm92_vm0, %v8319_v23, 0.0  ;;  %v6042_v23 = vrot.slane %v6014_v16, %v9696_v33  ;;  %v6061_v39 = vcombine.low %v3275_v45, %v3279_v51  ;;  %v6062_v59 = vcombine.low %v3283_v37, %v3287_v60 }
 0x3a5   :  { %v8445_v48 = vadd.f32 %v8444_v34, %v8443_v20  ;;  %v3291_v20 = vrot.slane %v12692_v19, %v12688_v13  ;;  %v3299_v55 = vrot.slane %v12693_v18, %v9672_v25  ;;  %v3303_v31 = vrot.slane %v12693_v18, %v9675_v15 }
 0x3a6   :  { %v3307_v34 = vrot.slane %v12693_v18, %v9678_v26  ;;  %v3311_v53 = vrot.slane %v12693_v18, %v9681_v27  ;;  %v3315_v3 = vrot.slane %v12693_v18, %v9684_v28  ;;  %v3319_v56 = vrot.slane %v12693_v18, %v9687_v29 }
 0x3a7   :  { %v8447_v9 = vadd.f32 %v8446_v10, %v8445_v48  ;;  %v6063_v43 = vcombine.low %v3291_v20, %v3295_v14  ;;  %v3323_v48 = vrot.slane %v12693_v18, %v12688_v13  ;;  %v3327_v57 = vrot.slane %v12693_v18, %v12689_v38 }
 0x3a8   :  { %v5953_v46 = vrot.slane %v5945_v21, %v9696_v33  ;;  %v5960_v5 = vrot.slane %v5946_v2, %v9696_v33  ;;  %v6002_v10 = vrot.slane %v5994_v47, %v9696_v33  ;;  %v6009_v32 = vrot.slane %v5995_v12, %v9696_v33 }
 0x3a9   :  { %8448 = vadd.xlane.f32.xlu1 %v8447_v9  ;;  %v6043_v52 = vcombine.low %v6021_v42, %v6028_v11  ;;  %v6044_v36 = vcombine.low %v6035_v35, %v6042_v23  ;;  %v6070_v9 = vrot.slane %v6060_v50, %v9696_v33  ;;  %v6077_v49 = vrot.slane %v6061_v39, %v9696_v33 }
 0x3aa   :  { %v6084_v8 = vrot.slane %v6062_v59, %v9696_v33  ;;  %v6091_v0 = vrot.slane %v6063_v43, %v9696_v33  ;;  %v6109_v62 = vcombine.low %v3299_v55, %v3303_v31  ;;  %v6110_v61 = vcombine.low %v3307_v34, %v3311_v53  ;;  %v12695_v55 = vld [vmem:[#allocation12_spill] sm:$0xff] }
 0x3ab   :  { %v6111_v44 = vcombine.low %v3315_v3, %v3319_v56  ;;  %v6112_v40 = vcombine.low %v3323_v48, %v3327_v57  ;;  %v3331_v16 = vrot.slane %v12694_v54, %v9672_v25  ;;  %v3335_v19 = vrot.slane %v12694_v54, %v9675_v15 }
 0x3ac   :  { %v3339_v4 = vrot.slane %v12694_v54, %v9678_v26  ;;  %v3343_v6 = vrot.slane %v12694_v54, %v9681_v27  ;;  %v3347_v45 = vrot.slane %v12694_v54, %v9684_v28  ;;  %v3351_v51 = vrot.slane %v12694_v54, %v9687_v29 }
 0x3ad   :  { %v3355_v37 = vrot.slane %v12694_v54, %v12688_v13  ;;  %v3359_v60 = vrot.slane %v12694_v54, %v12689_v38  ;;  %v5961_v20 = vcombine.low %v5953_v46, %v5960_v5  ;;  %v6010_v14 = vcombine.low %v6002_v10, %v6009_v32 }
 0x3ae   :  { %v6051_v21 = vrot.slane %v6043_v52, %v9696_v33  ;;  %v6058_v2 = vrot.slane %v6044_v36, %v9696_v33  ;;  %v6092_v47 = vcombine.low %v6070_v9, %v6077_v49  ;;  %v6093_v12 = vcombine.low %v6084_v8, %v6091_v0 }
 0x3af   :  { %v6119_v42 = vrot.slane %v6109_v62, %v9696_v33  ;;  %v6126_v11 = vrot.slane %v6110_v61, %v9696_v33  ;;  %v6133_v35 = vrot.slane %v6111_v44, %v9696_v33  ;;  %v6140_v23 = vrot.slane %v6112_v40, %v9696_v33 }
 0x3b0   :  { %v6158_v50 = vcombine.low %v3331_v16, %v3335_v19  ;;  %v6159_v39 = vcombine.low %v3339_v4, %v3343_v6  ;;  %v6160_v59 = vcombine.low %v3347_v45, %v3351_v51  ;;  %v6161_v18 = vcombine.low %v3355_v37, %v3359_v60 }
 0x3b1   :  { %v3363_v43 = vrot.slane %v12695_v55, %v9672_v25  ;;  %v3367_v31 = vrot.slane %v12695_v55, %v9675_v15  ;;  %v3371_v34 = vrot.slane %v12695_v55, %v9678_v26  ;;  %v3375_v53 = vrot.slane %v12695_v55, %v9681_v27 }
 0x3b2   :  { %v3379_v3 = vrot.slane %v12695_v55, %v9684_v28  ;;  %v3383_v56 = vrot.slane %v12695_v55, %v9687_v29  ;;  %v3387_v48 = vrot.slane %v12695_v55, %v12688_v13  ;;  %v3391_v25 = vrot.slane %v12695_v55, %v12689_v38  ;;  %v12696_v55 = vld [vmem:[#allocation14_spill] sm:$0xff] }
 0x3b3   :  { %v6059_v57 = vcombine.low %v6051_v21, %v6058_v2  ;;  %v6100_v15 = vrot.slane %v6092_v47, %v9696_v33  ;;  %v6107_v26 = vrot.slane %v6093_v12, %v9696_v33  ;;  %v6141_v46 = vcombine.low %v6119_v42, %v6126_v11 }
 0x3b4   :  { %v6142_v27 = vcombine.low %v6133_v35, %v6140_v23  ;;  %v6168_v5 = vrot.slane %v6158_v50, %v9696_v33  ;;  %v6175_v28 = vrot.slane %v6159_v39, %v9696_v33  ;;  %v6182_v29 = vrot.slane %v6160_v59, %v9696_v33 }
 0x3b5   :  { %v6189_v10 = vrot.slane %v6161_v18, %v9696_v33  ;;  %v6207_v13 = vcombine.low %v3363_v43, %v3367_v31  ;;  %v6208_v32 = vcombine.low %v3371_v34, %v3375_v53  ;;  %v6209_v52 = vcombine.low %v3379_v3, %v3383_v56  ;;  %v12697_v34 = vld [vmem:[#allocation16_spill] sm:$0xff] }
 0x3b6   :  { %v6210_v38 = vcombine.low %v3387_v48, %v3391_v25  ;;  %v6108_v36 = vcombine.low %v6100_v15, %v6107_v26  ;;  %v6149_v9 = vrot.slane %v6141_v46, %v9696_v33  ;;  %v6156_v49 = vrot.slane %v6142_v27, %v9696_v33  ;;  %v12698_v48 = vld [vmem:[#allocation19_spill] sm:$0xff]  ;;  %v12364_v46 = vpop.permute.xlu1 %7161 }
 0x3b7   :  { %v6190_v8 = vcombine.low %v6168_v5, %v6175_v28  ;;  %v6191_v0 = vcombine.low %v6182_v29, %v6189_v10  ;;  %v6217_v62 = vrot.slane %v6207_v13, %v9696_v33  ;;  %v6224_v61 = vrot.slane %v6208_v32, %v9696_v33  ;;  %v12699_v5 = vld [vmem:[#allocation18_spill] sm:$0xff]  ;;  %v12700_v13 = vld [vmem:[#allocation15_spill] sm:$0xff] }
 0x3b8   :  { %v6231_v44 = vrot.slane %v6209_v52, %v9696_v33  ;;  %v6238_v40 = vrot.slane %v6210_v38, %v9696_v33  ;;  %v6157_v54 = vcombine.low %v6149_v9, %v6156_v49  ;;  %v7257_v59 = vadd.s32 4294967264, %v9669_v24  ;;  %v12701_v38 = vld [vmem:[#allocation33_spill] sm:$0xff] }
 0x3b9   :  { %v6198_v16 = vrot.slane %v6190_v8, %v9696_v33  ;;  %v6205_v19 = vrot.slane %v6191_v0, %v9696_v33  ;;  %v6239_v4 = vcombine.low %v6217_v62, %v6224_v61  ;;  %v7264_v18 = vadd.s32 4294967256, %v9669_v24  ;;  %v12702_v49 = vld [vmem:[#allocation17_spill] sm:$0xff] }
 0x3ba   :  { %7164 = vperm.xlu1 %9101, %v5961_v20   ;;  %v6240_v6 = vcombine.low %v6231_v44, %v6238_v40  ;;  %v12321_v20 = vpop.permute.xlu0 %7152  ;;  %v7240_v43 = vrot.slane %v12696_v55, %v11706_v41  ;;  %v7247_v53 = vrot.slane %v12697_v34, %v11709_v58  ;;  %v12354_v3 = vsub.s32 %v7257_v59, %v9666_v22  ;;  %v12703_v62 = vld [vmem:[#allocation37_spill] sm:$0xff] }
 0x3bb   :  { %v6206_v45 = vcombine.low %v6198_v16, %v6205_v19  ;;  %v6247_v51 = vrot.slane %v6239_v4, %v9696_v33  ;;  %v7271_v56 = vadd.s32 4294967248, %v9669_v24  ;;  %v7235_v25 = vrot.slane %v12698_v48, %v11703_v17  ;;  %v12704_v16 = vld [vmem:[#allocation29_spill] sm:$0xff]  ;;  %v12392_v4 = vpop.permute.xlu1 %7200 }
 0x3bc   :  { %v6254_v37 = vrot.slane %v6240_v6, %v9696_v33  ;;  %v7292_v15 = vadd.s32 4294967224, %v9669_v24  ;;  %v7261_v28 = vrot.slane %v12699_v5, %v12354_v3  ;;  %v7278_v29 = vadd.s32 4294967240, %v9669_v24  ;;  %v12706_v55 = vld [vmem:[#allocation21_spill] sm:$0xff] }
 0x3bd   :  { %v7242_v26 = vsel %vm7241_vm11, %v7240_v43, %v7235_v25  ;;  %v12371_v10 = vsub.s32 %v7271_v56, %v9666_v22  ;;  %v7254_v32 = vrot.slane %v12700_v13, %v11716_v7  ;;  %vm7262_vm0 = vcmask 326912  }
 0x3be   :  { %7167 = vperm.xlu1 %9101, %v6010_v14   ;;  %v6255_v60 = vcombine.low %v6247_v51, %v6254_v37  ;;  %v12323_v14 = vpop.permute.xlu0 %7149  ;;  %v7249_v27 = vsel %vm7248_vm12, %v7247_v53, %v7242_v26  ;;  %v7285_v52 = vadd.s32 4294967232, %v9669_v24  ;;  %v12383_v0 = vsub.s32 %v7292_v15, %v9666_v22  ;;  %v12705_v51 = vld [vmem:[#allocation22_spill] sm:$0xff]  ;;  %v12707_v53 = vld [vmem:[#allocation39_spill] sm:$0xff]  ;;  %v12708_v26 = vld [vmem:[#allocation32_spill] sm:$0xff] }
 0x3bf   :  { %v7353_v61 = vrot.slane %v12703_v62, %v11709_v58  ;;  %v7256_v44 = vsel %vm7255_vm13, %v7254_v32, %v7249_v27  ;;  %v7306_v40 = vadd.s32 4294967208, %v9669_v24  ;;  %v7348_v19 = vrot.slane %v12704_v16, %v11706_v41  ;;  %v12712_v16 = vld [vmem:[#allocation23_spill] sm:$0xff] }
 0x3c0   :  { %v7263_v6 = vsel %vm7262_vm0, %v7261_v28, %v7256_v44  ;;  %v7275_v37 = vrot.slane %v12705_v51, %v12371_v10  ;;  %v7299_v59 = vadd.s32 4294967216, %v9669_v24  ;;  %v7296_v43 = vrot.slane %v12706_v55, %v12383_v0  ;;  %v12711_v44 = vld [vmem:[#allocation41_spill] sm:$0xff] }
 0x3c1   :  { %v7363_v56 = vrot.slane %v12707_v53, %v12354_v3  ;;  %v12411_v48 = vsub.s32 %v7306_v40, %v9666_v22  ;;  %v7358_v27 = vrot.slane %v12708_v26, %v11716_v7  ;;  %v7373_v40 = vrot.slane %v12711_v44, %v12371_v10  ;;  %v12717_v44 = vld [vmem:[#allocation38_spill] sm:$0xff] }
 0x3c2   :  { %7170 = vperm.xlu1 %9101, %v6059_v57   ;;  %v12325_v21 = vpop.permute.xlu0 %7158  ;;  %v12360_v57 = vsub.s32 %v7264_v18, %v9666_v22 }
 0x3c4   :  { %v7268_v8 = vrot.slane %v12702_v49, %v12360_v57  ;;  %v12427_v49 = vsub.s32 %v7299_v59, %v9666_v22  ;;  %v12714_v59 = vld [vmem:[#allocation34_spill] sm:$0xff] }
 0x3c6   :  { %7173 = vperm.xlu1 %9101, %v6108_v36   ;;  %v12327_v2 = vpop.permute.xlu0 %7155  ;;  %v7344_v36 = vrot.slane %v12701_v38, %v11703_v17  ;;  %v7270_v25 = vsel %vm7269_vm14, %v7268_v8, %v7263_v6  ;;  %v12710_v38 = vld [vmem:[#allocation24_spill] sm:$0xff]  ;;  %v7313_v8 = vadd.s32 4294967200, %v9669_v24  ;;  %v12713_v6 = vld [vmem:[#allocation25_spill] sm:$0xff] }
 0x3c7   :  { %v7277_v32 = vsel %vm7276_vm15, %v7275_v37, %v7270_v25  ;;  %v12715_v25 = vld [vmem:[#allocation26_spill] sm:$0xff] }
 0x3c8   :  { %v7349_v18 = vsel %vm7241_vm11, %v7348_v19, %v7344_v36  ;;  %v7310_v19 = vrot.slane %v12712_v16, %v12411_v48  ;;  %v7303_v26 = vrot.slane %v12715_v25, %v12427_v49 }
 0x3c9   :  { %v7354_v34 = vsel %vm7248_vm12, %v7353_v61, %v7349_v18  ;;  %v7368_v18 = vrot.slane %v12714_v59, %v12360_v57 }
 0x3ca   :  { %7176 = vperm.xlu1 %9101, %v6157_v54   ;;  %v12329_v47 = vpop.permute.xlu0 %7188  ;;  %v7320_v54 = vadd.s32 4294967192, %v9669_v24  ;;  %v7359_v62 = vsel %vm7255_vm13, %v7358_v27, %v7354_v34  ;;  %v7334_v34 = vadd.s32 4294967176, %v9669_v24  ;;  %v12448_v27 = vsub.s32 %v7313_v8, %v9666_v22 }
 0x3cb   :  { %v7364_v61 = vsel %vm7262_vm0, %v7363_v56, %v7359_v62 }
 0x3cc   :  { %v12415_v15 = vsub.s32 %v7320_v54, %v9666_v22 }
 0x3ce   :  { %7179 = vperm.xlu1 %9101, %v6206_v45   ;;  %v12331_v12 = vpop.permute.xlu0 %7185  ;;  %v12396_v45 = vsub.s32 %v7278_v29, %v9666_v22  ;;  %v12709_v29 = vld [vmem:[#allocation20_spill] sm:$0xff]  ;;  %v7324_v51 = vrot.slane %v12713_v6, %v12415_v15 }
 0x3d0   :  { %v7282_v13 = vrot.slane %v12709_v29, %v12396_v45  ;;  %v7378_v8 = vrot.slane %v12717_v44, %v12396_v45 }
 0x3d2   :  { %7182 = vperm.xlu1 %9101, %v6255_v60   ;;  %v12333_v42 = vpop.permute.xlu0 %7194  ;;  %v12401_v60 = vsub.s32 %v7285_v52, %v9666_v22  ;;  %v7284_v37 = vsel %vm7283_vm1, %v7282_v13, %v7277_v32  ;;  %v12716_v32 = vld [vmem:[#allocation43_spill] sm:$0xff] }
 0x3d4   :  { %v7289_v36 = vrot.slane %v12710_v38, %v12401_v60  ;;  %v7502_v38 = vrot.slane %v12331_v12, %v11703_v17  ;;  %v12718_v12 = vld [vmem:[#allocation28_spill] sm:$0xff] }
 0x3d6   :  { %v12335_v11 = vpop.permute.xlu0 %7191  ;;  %v7291_v56 = vsel %vm7290_vm3, %v7289_v36, %v7284_v37  ;;  %v7327_v36 = vadd.s32 4294967184, %v9669_v24  ;;  %v7506_v37 = vrot.slane %v12329_v47, %v11706_v41  ;;  %v7317_v24 = vrot.slane %v12718_v12, %v12448_v27  ;;  %v12720_v47 = vld [vmem:[#allocation40_spill] sm:$0xff] }
 0x3d7   :  { %v7388_v25 = vrot.slane %v12720_v47, %v12383_v0  ;;  %v12724_v12 = vld [vmem:[#allocation44_spill] sm:$0xff] }
 0x3d8   :  { %v12479_v41 = vsub.s32 %v7327_v36, %v9666_v22 }
 0x3da   :  { %v12337_v35 = vpop.permute.xlu0 %7197 }
 0x3de   :  { %v12339_v23 = vpop.permute.xlu0 %7206 }
 0x3e2   :  { %v12341_v50 = vpop.permute.xlu0 %7203 }
 0x3e6   :  { %v12343_v39 = vpop.permute.xlu0 %7209 }
 0x3ea   :  { %v12349_v31 = vpop.permute.xlu0 %7212 }
 0x3ee   :  { %v12378_v9 = vpop.permute.xlu0 %7215 }
 0x3f2   :  { %v12419_v5 = vpop.permute.xlu0 %7218 }
 0x3f6   :  { %v12451_v29 = vpop.permute.xlu0 %7221 }
 0x436   :  { %v8449_v28 = vpop.xlane.xlu1 %8448 }
 0x437   :  { %v8450_v52 = vrot.slane %v8449_v28, 4 }
 0x439   :  { %v8451_v54 = vadd.f32 %v8450_v52, %v8449_v28  ;;  %v7369_v28 = vsel %vm7269_vm14, %v7368_v18, %v7364_v61  ;;  %v7383_v52 = vrot.slane %v12716_v32, %v12401_v60  ;;  %v7511_v61 = vrot.slane %v12335_v11, %v11709_v58  ;;  %v12719_v11 = vld [vmem:[#allocation45_spill] sm:$0xff] }
 0x43a   :  { %v12441_v55 = vpop.permute.xlu1 %7164  ;;  %v7374_v13 = vsel %vm7276_vm15, %v7373_v40, %v7369_v28  ;;  %v7298_v40 = vsel %vm7297_vm4, %v7296_v43, %v7291_v56  ;;  %v7442_v18 = vrot.slane %v12323_v14, %v12354_v3  ;;  %v7393_v43 = vrot.slane %v12719_v11, %v12427_v49  ;;  %v12486_v14 = vpop.permute.xlu0 %7224 }
 0x43b   :  { %v8452_v53 = vrot.slane %v8451_v54, 2  ;;  %v7305_v17 = vsel %vm7304_vm5, %v7303_v26, %v7298_v40  ;;  %v7521_v28 = vrot.slane %v12337_v35, %v12354_v3  ;;  %v12491_v32 = vsub.s32 %v7334_v34, %v9666_v22 }
 0x43c   :  { %v7443_v35 = vsel %vm7262_vm0, %v7442_v18, %v11748_v63  ;;  %v7452_v3 = vrot.slane %v12327_v2, %v12371_v10  ;;  %v7447_v34 = vrot.slane %v12321_v20, %v12360_v57  ;;  %v7531_v2 = vrot.slane %v12341_v50, %v12371_v10 }
 0x43d   :  { %v8453_v62 = vadd.f32 %v8452_v53, %v8451_v54  ;;  %v7379_v54 = vsel %vm7283_vm1, %v7378_v8, %v7374_v13  ;;  %v7507_v53 = vsel %vm7241_vm11, %v7506_v37, %v7502_v38  ;;  %v7516_v38 = vrot.slane %v12333_v42, %v11716_v7  ;;  %v12721_v42 = vld [vmem:[#allocation31_spill] sm:$0xff]  ;;  %v12722_v8 = vld [vmem:[#allocation42_spill] sm:$0xff] }
 0x43e   :  { %v12463_v16 = vpop.permute.xlu1 %7167  ;;  %v7384_v58 = vsel %vm7290_vm3, %v7383_v52, %v7379_v54  ;;  %v7512_v26 = vsel %vm7248_vm12, %v7511_v61, %v7507_v53  ;;  %v7312_v52 = vsel %vm7311_vm6, %v7310_v19, %v7305_v17  ;;  %v7403_v19 = vrot.slane %v11678_v30, %v12448_v27  ;;  %v12723_v37 = vld [vmem:[#allocation27_spill] sm:$0xff]  ;;  %v7228_v54 = vpop.permute.xlu0 %7227 }
 0x43f   :  { %v8454_v59 = vrot.slane %v8453_v62, 1  ;;  %v7389_v36 = vsel %vm7297_vm4, %v7388_v25, %v7384_v58  ;;  %v7517_v7 = vsel %vm7255_vm13, %v7516_v38, %v7512_v26  ;;  %v7331_v44 = vrot.slane %v12721_v42, %v12479_v41 }
 0x440   :  { %v7394_v22 = vsel %vm7304_vm5, %v7393_v43, %v7389_v36  ;;  %v7398_v61 = vrot.slane %v12722_v8, %v12411_v48  ;;  %v7522_v63 = vsel %vm7262_vm0, %v7521_v28, %v7517_v7  ;;  %v7338_v30 = vrot.slane %v12723_v37, %v12491_v32 }
 0x441   :  { %v8455_v56 = vadd.f32 %v8454_v59, %v8453_v62  ;;  %v7319_v62 = vsel %vm7318_vm7, %v7317_v24, %v7312_v52  ;;  %v7448_v20 = vsel %vm7269_vm14, %v7447_v34, %v7443_v35  ;;  %v7526_v59 = vrot.slane %v12392_v4, %v12360_v57 }
 0x442   :  { %v12488_v13 = vpop.permute.xlu1 %7170  ;;  %v7326_v17 = vsel %vm7325_vm8, %v7324_v51, %v7319_v62  ;;  %v7408_v24 = vrot.slane %v12724_v12, %v12415_v15  ;;  %v7399_v50 = vsel %vm7311_vm6, %v7398_v61, %v7394_v22  ;;  %v7453_v10 = vsel %vm7276_vm15, %v7452_v3, %v7448_v20  ;;  %v12725_v51 = vld [vmem:[#allocation46_spill] sm:$0xff] }
 0x443   :  { %9095 = vpush %v8455_v56  ;;  %v7404_v18 = vsel %vm7318_vm7, %v7403_v19, %v7399_v50  ;;  %v7413_v58 = vrot.slane %v11691_v1, %v12479_v41  ;;  %v7457_v57 = vrot.slane %v12325_v21, %v12396_v45  ;;  %v7527_v4 = vsel %vm7269_vm14, %v7526_v59, %v7522_v63 }
 0x444   :  { %v7333_v6 = vsel %vm7332_vm9, %v7331_v44, %v7326_v17  ;;  %v7418_v11 = vrot.slane %v12725_v51, %v12491_v32  ;;  %v7532_v43 = vsel %vm7276_vm15, %v7531_v2, %v7527_v4  ;;  %v7541_v53 = vrot.slane %v12343_v39, %v12401_v60 }
 0x445   :  { %v7458_v47 = vsel %vm7283_vm1, %v7457_v57, %v7453_v10  ;;  %v7536_v1 = vrot.slane %v12339_v23, %v12396_v45  ;;  %v7546_v21 = vrot.slane %v12349_v31, %v12383_v0  ;;  %v7467_v25 = vrot.slane %v12441_v55, %v12383_v0 }
 0x446   :  { %v7174_v40 = vpop.permute.xlu1 %7173  ;;  %v7409_v26 = vsel %vm7325_vm8, %v7408_v24, %v7404_v18  ;;  %v7462_v28 = vrot.slane %v12364_v46, %v12401_v60  ;;  %v7551_v39 = vrot.slane %v12378_v9, %v12427_v49  ;;  %v7472_v52 = vrot.slane %v12463_v16, %v12427_v49  ;;  %v7231_v60 = vpop.permute.xlu0 %7230 }
 0x447   :  { %v7414_v38 = vsel %vm7332_vm9, %v7413_v58, %v7409_v26  ;;  %v7537_v23 = vsel %vm7283_vm1, %v7536_v1, %v7532_v43  ;;  %v7556_v31 = vrot.slane %v12419_v5, %v12411_v48  ;;  %v7477_v0 = vrot.slane %v12488_v13, %v12411_v48 }
 0x448   :  { %v7542_v45 = vsel %vm7290_vm3, %v7541_v53, %v7537_v23  ;;  %v7561_v46 = vrot.slane %v12451_v29, %v12448_v27  ;;  %v7463_v9 = vsel %vm7290_vm3, %v7462_v28, %v7458_v47  ;;  %v7482_v49 = vrot.slane %v7174_v40, %v12448_v27 }
 0x449   :  { %v7547_v16 = vsel %vm7297_vm4, %v7546_v21, %v7542_v45  ;;  %v7566_v62 = vrot.slane %v12486_v14, %v12415_v15  ;;  %v7468_v5 = vsel %vm7297_vm4, %v7467_v25, %v7463_v9  ;;  %v7571_v36 = vrot.slane %v7228_v54, %v12479_v41 }
 0x44a   :  { %v7177_v56 = vpop.permute.xlu1 %7176  ;;  %v7552_v13 = vsel %vm7304_vm5, %v7551_v39, %v7547_v16  ;;  %v7473_v29 = vsel %vm7304_vm5, %v7472_v52, %v7468_v5  ;;  %v7419_v27 = vsel %vm7339_vm10, %v7418_v11, %v7414_v38  ;;  %v7576_v22 = vrot.slane %v7231_v60, %v12491_v32 }
 0x44b   :  { %v7487_v48 = vrot.slane %v7177_v56, %v12415_v15  ;;  %v7557_v3 = vsel %vm7311_vm6, %v7556_v31, %v7552_v13  ;;  %v7478_v14 = vsel %vm7311_vm6, %v7477_v0, %v7473_v29  ;;  %v7340_v7 = vsel %vm7339_vm10, %v7338_v30, %v7333_v6 }
 0x44c   :  { %v7562_v19 = vsel %vm7318_vm7, %v7561_v46, %v7557_v3  ;;  %v7483_v15 = vsel %vm7318_vm7, %v7482_v49, %v7478_v14  ;;  %v7578_v8 = vcombine.low %v7340_v7, %v7419_v27  ;;  %v12726_v17 = vlaneseq }
 0x44d   :  { %v7567_v42 = vsel %vm7325_vm8, %v7566_v62, %v7562_v19  ;;  %v7488_v44 = vsel %vm7325_vm8, %v7487_v48, %v7483_v15  ;;  %vm8458_vm11 = vcmask 0  }
 0x44e   :  { %v7180_v55 = vpop.permute.xlu1 %7179  ;;  %v7572_v61 = vsel %vm7332_vm9, %v7571_v36, %v7567_v42  ;;  %v7586_v20 = vrot.slane %v7578_v8, %v9696_v33  ;;  %vm7604_vm2 = vcmp.lt.s32.totalorder %v12726_v17, 512 }
 0x44f   :  { %v7492_v35 = vrot.slane %v7180_v55, %v12479_v41  ;;  %v7577_v2 = vsel %vm7339_vm10, %v7576_v22, %v7572_v61 }
 0x451   :  { %v7493_v63 = vsel %vm7332_vm9, %v7492_v35, %v7488_v44 }
 0x452   :  { %v7183_v34 = vpop.permute.xlu1 %7182 }
 0x453   :  { %v7497_v41 = vrot.slane %v7183_v34, %v12491_v32 }
 0x455   :  { %v7498_v40 = vsel %vm7339_vm10, %v7497_v41, %v7493_v63 }
 0x456   :  { %v7579_v37 = vcombine.low %v7498_v40, %v7577_v2 }
 0x458   :  { %v7593_v30 = vrot.slane %v7579_v37, %v9696_v33 }
 0x45a   :  { %v7594_v59 = vcombine.low %v7586_v20, %v7593_v30 }
 0x45c   :  { %v7601_v12 = vrot.slane %v7594_v59, %v9696_v33 }
 0x45e   :  { %7606 = vst.msk [vmem:[%s12611_s4] sm:$0xf] %vm7604_vm2, %v7601_v12 }
 0x474   :  { %s9096_s10 = spop %9095 }
 0x475   :  { %v8457_v32 = vstv %s9096_s10 }
 0x476   :  { %8459 = vst.msk [vmem:[#allocation2] sm:$0x1] %vm8458_vm11, %v8457_v32 }
 0x477   :  { %9178 = shalt.err (!%p9175_p4)
}
 0x478   :  { %s9179_s1 = scalar_lea.hbm %s12613_s6, 16 }
 0x479   :  { %p9180_p5 = scmp.ne.s32.totalorder %s12613_s6, %s9179_s1  ;;  %p9183_p6 = scmp.lt.u32.totalorder %s9179_s1, %s12613_s6 }
 0x47b   :  { %p9185_p7 = pnand %p9183_p6, %p9180_p5 }
 0x47d   :  { %9188 = shalt.err (!%p9185_p7)
}
 0x47e   :  { %8475 = dma.vmem_to_hbm [thread:$0]  %s8473_s9, 16, %s12613_s6, [#allocation3]  }
 0x47f   :  { %9189 = dma.done.wait [#allocation3], 16  }
 0x480   :  { %9190 = vsyncadd [#allocation3], 4294967280 }
 0x481   :  { %8485 = vsyncpa [#allocation3], 1 }

</bundles_post_ra>
